<compile_context>
chip_gen: v5e
topology: v5e:2x2
jax: 0.10.0
libtpu: 0.0.40
codegen_flags: <defaults>
</compile_context>

<pallas_src>
import functools

import jax
import jax.numpy as jnp
import numpy as np
from jax import lax
from jax.experimental import pallas as pl
from jax.experimental.pallas import tpu as pltpu

LANE = 128
_VMEM_LIMIT = 32 * 1024 * 1024  # explicit scoped-VMEM budget (fits v5e/v6e/v7x)


def _round_up(x, m):
    return ((x + m - 1) // m) * m


def _pick_row_tile(rows):
    # Largest sublane-aligned tile that still leaves >=2 grid steps (so the
    # cross-tile BN reduction path is exercised); falls back to all rows.
    for t in (1024, 512, 256, 128, 64, 32, 16, 8):
        if rows % t == 0 and rows // t >= 2:
            return t
    return rows


# --------------------------------------------------------------------------
# Kernels
# --------------------------------------------------------------------------
def _conv1x1_stats_kernel(x_ref, w_ref, y_ref, psum_ref, psq_ref):
    # x_ref: (TR, CinP) bf16   w_ref: (CinP, MidP) bf16 (resident)
    # y_ref: (TR, MidP) f32    psum/psq: (1, 1, MidP) f32 per-tile partials
    y = jnp.dot(x_ref[...], w_ref[...], preferred_element_type=jnp.float32)
    y_ref[...] = y
    c = y.shape[-1]
    psum_ref[...] = jnp.sum(y, axis=0).reshape(1, 1, c)
    psq_ref[...] = jnp.sum(y * y, axis=0).reshape(1, 1, c)


def _bn_act_kernel(y_ref, scale_ref, shift_ref, o_ref, *, slope):
    # Fused BatchNorm (precomputed scale/shift) + LeakyReLU(slope).
    z = y_ref[...] * scale_ref[...] + shift_ref[...]
    o_ref[...] = jnp.where(z >= 0, z, slope * z).astype(o_ref.dtype)


def _conv3x3_stats_kernel(x_ref, w_ref, y_ref, psum_ref, psq_ref, acc_ref, *,
                          th, ow):
    # x_ref:  (1, H+2, W+2, MidP) bf16  whole padded image (resident across hi)
    # w_ref:  (9, MidP, CoutP)    bf16  (resident)
    # y_ref:  (1, th*ow, CoutP)   f32   conv output rows for this spatial tile
    # psum/psq: (1, 1, CoutP)     f32   per-tile BN partial statistics
    # acc_ref:  (th*ow, CoutP)    f32   VMEM scratch accumulator
    hi = pl.program_id(1)
    midp = x_ref.shape[-1]
    acc_ref[...] = jnp.zeros_like(acc_ref)
    row0 = pl.multiple_of(hi * th, th)
    for kh in range(3):
        for kw in range(3):
            patch = x_ref[:, pl.ds(row0 + kh, th), kw:kw + ow, :]
            patch2d = patch.reshape(th * ow, midp)          # (rows, MidP) bf16
            acc_ref[...] += jnp.dot(patch2d, w_ref[kh * 3 + kw],
                                    preferred_element_type=jnp.float32)
    acc = acc_ref[...]
    c = acc.shape[-1]
    y_ref[...] = acc.reshape(1, th * ow, c)
    psum_ref[...] = jnp.sum(acc, axis=0).reshape(1, 1, c)
    psq_ref[...] = jnp.sum(acc * acc, axis=0).reshape(1, 1, c)


def _bn_act_residual_kernel(y_ref, x_ref, scale_ref, shift_ref, o_ref, *, slope):
    # Fused BatchNorm + LeakyReLU + residual add.
    z = y_ref[...] * scale_ref[...] + shift_ref[...]
    act = jnp.where(z >= 0, z, slope * z)
    o_ref[...] = (x_ref[...].astype(jnp.float32) + act).astype(o_ref.dtype)


# --------------------------------------------------------------------------
# Wrapper
# --------------------------------------------------------------------------
def _bn_scale_shift(psum, psq, count, gamma, beta, eps):
    # Reduce per-tile partials -> per-channel BN scale/shift (one-pass stats).
    s = jnp.sum(psum, axis=(0, 1))
    q = jnp.sum(psq, axis=(0, 1))
    mean = s / count
    var = jnp.maximum(q / count - mean * mean, 0.0)
    inv = lax.rsqrt(var + eps)
    scale = gamma * inv
    shift = beta - mean * scale
    return scale.reshape(1, -1), shift.reshape(1, -1)


def res_layer_pallas(x_nchw, w1, g1, b1, w2, g2, b2, *, eps=1e-5, slope=0.1):
    n, c, h, w = x_nchw.shape
    mid = w1.shape[0]
    assert w1.shape == (mid, c, 1, 1) and w2.shape == (c, mid, 3, 3)
    cp, mp = _round_up(c, LANE), _round_up(mid, LANE)
    rows = n * h * w
    row_tile = _pick_row_tile(rows)
    nt = rows // row_tile
    h_tile = 8 if h % 8 == 0 else h
    nh = h // h_tile

    # ---- glue: NCHW -> flat NHWC, channels zero-padded to 128 lanes --------
    x_flat = jnp.transpose(x_nchw, (0, 2, 3, 1)).reshape(rows, c)
    x_flat_p = jnp.pad(x_flat, ((0, 0), (0, cp - c))).astype(jnp.float32)
    x_bf = x_flat_p.astype(jnp.bfloat16)

    w1_2d = jnp.pad(jnp.transpose(w1.reshape(mid, c)),
                    ((0, cp - c), (0, mp - mid))).astype(jnp.bfloat16)   # (CinP, MidP)
    w2_hwio = jnp.transpose(w2, (2, 3, 1, 0))                            # (3,3,mid,c)
    w2_p = jnp.pad(w2_hwio, ((0, 0), (0, 0), (0, mp - mid), (0, cp - c))
                   ).reshape(9, mp, cp).astype(jnp.bfloat16)

    g1p = jnp.pad(g1.astype(jnp.float32), (0, mp - mid))
    b1p = jnp.pad(b1.astype(jnp.float32), (0, mp - mid))
    g2p = jnp.pad(g2.astype(jnp.float32), (0, cp - c))
    b2p = jnp.pad(b2.astype(jnp.float32), (0, cp - c))

    cparams_1d = pltpu.CompilerParams(dimension_semantics=("parallel",),
                                      vmem_limit_bytes=_VMEM_LIMIT)
    cparams_2d = pltpu.CompilerParams(dimension_semantics=("parallel", "parallel"),
                                      vmem_limit_bytes=_VMEM_LIMIT)

    # ---- layer1: 1x1 conv (single matmul) + per-tile BN partial stats ------
    y1, s1, q1 = pl.pallas_call(
        _conv1x1_stats_kernel,
        grid=(nt,),
        in_specs=[pl.BlockSpec((row_tile, cp), lambda i: (i, 0)),
                  pl.BlockSpec((cp, mp), lambda i: (0, 0))],
        out_specs=[pl.BlockSpec((row_tile, mp), lambda i: (i, 0)),
                   pl.BlockSpec((1, 1, mp), lambda i: (i, 0, 0)),
                   pl.BlockSpec((1, 1, mp), lambda i: (i, 0, 0))],
        out_shape=[jax.ShapeDtypeStruct((rows, mp), jnp.float32),
                   jax.ShapeDtypeStruct((nt, 1, mp), jnp.float32),
                   jax.ShapeDtypeStruct((nt, 1, mp), jnp.float32)],
        compiler_params=cparams_1d,
        cost_estimate=pl.CostEstimate(
            flops=2 * rows * cp * mp, transcendentals=0,
            bytes_accessed=rows * cp * 2 + cp * mp * 2 + rows * mp * 4),
    )(x_bf, w1_2d)

    scale1, shift1 = _bn_scale_shift(s1, q1, float(rows), g1p, b1p, eps)

    # ---- layer1: BN + LeakyReLU (bf16 output feeds the conv2 MXU) ----------
    act1 = pl.pallas_call(
        functools.partial(_bn_act_kernel, slope=slope),
        grid=(nt,),
        in_specs=[pl.BlockSpec((row_tile, mp), lambda i: (i, 0)),
                  pl.BlockSpec((1, mp), lambda i: (0, 0)),
                  pl.BlockSpec((1, mp), lambda i: (0, 0))],
        out_specs=pl.BlockSpec((row_tile, mp), lambda i: (i, 0)),
        out_shape=jax.ShapeDtypeStruct((rows, mp), jnp.bfloat16),
        compiler_params=cparams_1d,
    )(y1, scale1, shift1)

    # glue: spatial zero pad AFTER activation (matches Conv2d zero padding)
    act1_pad = jnp.pad(act1.reshape(n, h, w, mp),
                       ((0, 0), (1, 1), (1, 1), (0, 0)))

    # ---- layer2: 3x3 conv (9 full-depth taps) + per-tile BN partial stats --
    y2, s2, q2 = pl.pallas_call(
        functools.partial(_conv3x3_stats_kernel, th=h_tile, ow=w),
        grid=(n, nh),
        in_specs=[pl.BlockSpec((1, h + 2, w + 2, mp),
                               lambda ni, hi: (ni, 0, 0, 0)),
                  pl.BlockSpec((9, mp, cp), lambda ni, hi: (0, 0, 0))],
        out_specs=[pl.BlockSpec((1, h_tile * w, cp), lambda ni, hi: (ni, hi, 0)),
                   pl.BlockSpec((1, 1, cp), lambda ni, hi: (ni * nh + hi, 0, 0)),
                   pl.BlockSpec((1, 1, cp), lambda ni, hi: (ni * nh + hi, 0, 0))],
        out_shape=[jax.ShapeDtypeStruct((n, h * w, cp), jnp.float32),
                   jax.ShapeDtypeStruct((n * nh, 1, cp), jnp.float32),
                   jax.ShapeDtypeStruct((n * nh, 1, cp), jnp.float32)],
        scratch_shapes=[pltpu.VMEM((h_tile * w, cp), jnp.float32)],
        compiler_params=cparams_2d,
        cost_estimate=pl.CostEstimate(
            flops=2 * rows * 9 * mp * cp, transcendentals=0,
            bytes_accessed=n * (h + 2) * (w + 2) * mp * 2 + 9 * mp * cp * 2
                           + rows * cp * 4),
    )(act1_pad, w2_p)

    scale2, shift2 = _bn_scale_shift(s2, q2, float(rows), g2p, b2p, eps)

    # ---- layer2: BN + LeakyReLU + residual add ------------------------------
    out_flat = pl.pallas_call(
        functools.partial(_bn_act_residual_kernel, slope=slope),
        grid=(nt,),
        in_specs=[pl.BlockSpec((row_tile, cp), lambda i: (i, 0)),
                  pl.BlockSpec((row_tile, cp), lambda i: (i, 0)),
                  pl.BlockSpec((1, cp), lambda i: (0, 0)),
                  pl.BlockSpec((1, cp), lambda i: (0, 0))],
        out_specs=pl.BlockSpec((row_tile, cp), lambda i: (i, 0)),
        out_shape=jax.ShapeDtypeStruct((rows, cp), jnp.float32),
        compiler_params=cparams_1d,
    )(y2.reshape(rows, cp), x_flat_p, scale2, shift2)

    out = out_flat.reshape(n, h, w, cp)[..., :c]
    return jnp.transpose(out, (0, 3, 1, 2)).astype(x_nchw.dtype)


# --------------------------------------------------------------------------
# Pure-JAX reference (same semantics as the PyTorch module in train mode)
# --------------------------------------------------------------------------
def res_layer_ref(x, w1, g1, b1, w2, g2, b2, *, eps=1e-5, slope=0.1):
    def base_conv(xx, wgt, gamma, beta, pad):
        y = lax.conv_general_dilated(
            xx.astype(jnp.float32), wgt.astype(jnp.float32),
            window_strides=(1, 1), padding=[(pad, pad), (pad, pad)],
            dimension_numbers=('NCHW', 'OIHW', 'NCHW'))
        mean = jnp.mean(y, axis=(0, 2, 3), keepdims=True)
        var = jnp.mean((y - mean) ** 2, axis=(0, 2, 3), keepdims=True)
        y = (y - mean) * lax.rsqrt(var + eps)
        y = y * gamma.reshape(1, -1, 1, 1) + beta.reshape(1, -1, 1, 1)
        return jnp.where(y >= 0, y, slope * y)

    out = base_conv(x, w1, g1, b1, 0)
    out = base_conv(out, w2, g2, b2, 1)
    return x + out


if __name__ == "__main__":
    # ResLayer(in_channels=8): layer1 = BaseConv(8->4, k=1), layer2 = BaseConv(4->8, k=3)
    N, C, H, W = 2, 8, 16, 16
    MID = C // 2

    key = jax.random.PRNGKey(0)
    kx, k1, k2, kg1, kb1, kg2, kb2 = jax.random.split(key, 7)
    x = jax.random.normal(kx, (N, C, H, W), dtype=jnp.float32)
    w1 = 0.2 * jax.random.normal(k1, (MID, C, 1, 1), dtype=jnp.float32)
    w2 = 0.1 * jax.random.normal(k2, (C, MID, 3, 3), dtype=jnp.float32)
    g1 = 1.0 + 0.1 * jax.random.normal(kg1, (MID,), dtype=jnp.float32)
    b1 = 0.1 * jax.random.normal(kb1, (MID,), dtype=jnp.float32)
    g2 = 1.0 + 0.1 * jax.random.normal(kg2, (C,), dtype=jnp.float32)
    b2 = 0.1 * jax.random.normal(kb2, (C,), dtype=jnp.float32)

    fwd = jax.jit(res_layer_pallas)
    out = jax.block_until_ready(fwd(x, w1, g1, b1, w2, g2, b2))

    ref = jax.block_until_ready(res_layer_ref(x, w1, g1, b1, w2, g2, b2))
    # Tolerance reflects bf16 MXU operands (f32 accumulation) vs the f32 reference.
    np.testing.assert_allclose(np.asarray(out), np.asarray(ref),
                               atol=8e-2, rtol=5e-2)

    print("KERNEL_OK")
</pallas_src>

<mosaic_0001>
module attributes {stable_mosaic.version = 11 : i64} {
  func.func @_conv1x1_stats_kernel(%arg0: i32, %arg1: memref<256x128xbf16, #tpu.memory_space<vmem>>, %arg2: memref<128x128xbf16, #tpu.memory_space<vmem>>, %arg3: memref<256x128xf32, #tpu.memory_space<vmem>>, %arg4: memref<1x1x128xf32, #tpu.memory_space<vmem>>, %arg5: memref<1x1x128xf32, #tpu.memory_space<vmem>>) attributes {dimension_semantics = [#tpu.dimension_semantics<parallel>], iteration_bounds = array<i64: 2>, scalar_prefetch = 0 : i64, scratch_operands = 0 : i64, tpu.core_type = #tpu.core_type<tc>, window_params = [{transform_indices = @transform_0, window_bounds = array<i64: 256, 128>}, {pipeline_mode = #tpu.pipeline_mode<synchronous>, transform_indices = @transform_1, window_bounds = array<i64: 128, 128>}, {transform_indices = @transform_2, window_bounds = array<i64: 256, 128>}, {transform_indices = @transform_3, window_bounds = array<i64: 1, 1, 128>}, {transform_indices = @transform_4, window_bounds = array<i64: 1, 1, 128>}]} {
    %c0 = arith.constant 0 : index
    %c0_0 = arith.constant 0 : index
    %0 = vector.load %arg1[%c0, %c0_0] : memref<256x128xbf16, #tpu.memory_space<vmem>>, vector<256x128xbf16>
    %c0_1 = arith.constant 0 : index
    %c0_2 = arith.constant 0 : index
    %1 = vector.load %arg2[%c0_1, %c0_2] : memref<128x128xbf16, #tpu.memory_space<vmem>>, vector<128x128xbf16>
    %cst = arith.constant dense<0.000000e+00> : vector<256x128xf32>
    %2 = tpu.matmul %0, %1, %cst {dimension_numbers = #tpu.dot_dimension_numbers<[1], [0], [0], [1], [0, 0, 1, 1], [], []>} : vector<256x128xbf16>, vector<128x128xbf16>, vector<256x128xf32> -> vector<256x128xf32>
    %c0_3 = arith.constant 0 : index
    %c0_4 = arith.constant 0 : index
    %3 = vector.load %arg3[%c0_3, %c0_4] : memref<256x128xf32, #tpu.memory_space<vmem>>, vector<256x128xf32>
    tpu.vector_store %arg3[%c0_3, %c0_4], %2 {strides = array<i32>} : memref<256x128xf32, #tpu.memory_space<vmem>>, vector<256x128xf32>,
    %cst_5 = arith.constant dense<0.000000e+00> : vector<128xf32>
    %4 = vector.multi_reduction <add>, %2, %cst_5 [0] : vector<256x128xf32> to vector<128xf32>
    %5 = vector.shape_cast %4 : vector<128xf32> to vector<1x1x128xf32>
    %c0_6 = arith.constant 0 : index
    %c0_7 = arith.constant 0 : index
    %c0_8 = arith.constant 0 : index
    %6 = vector.load %arg4[%c0_6, %c0_7, %c0_8] : memref<1x1x128xf32, #tpu.memory_space<vmem>>, vector<1x1x128xf32>
    tpu.vector_store %arg4[%c0_6, %c0_7, %c0_8], %5 {strides = array<i32>} : memref<1x1x128xf32, #tpu.memory_space<vmem>>, vector<1x1x128xf32>,
    %7 = arith.mulf %2, %2 : vector<256x128xf32>
    %cst_9 = arith.constant dense<0.000000e+00> : vector<128xf32>
    %8 = vector.multi_reduction <add>, %7, %cst_9 [0] : vector<256x128xf32> to vector<128xf32>
    %9 = vector.shape_cast %8 : vector<128xf32> to vector<1x1x128xf32>
    %c0_10 = arith.constant 0 : index
    %c0_11 = arith.constant 0 : index
    %c0_12 = arith.constant 0 : index
    %10 = vector.load %arg5[%c0_10, %c0_11, %c0_12] : memref<1x1x128xf32, #tpu.memory_space<vmem>>, vector<1x1x128xf32>
    tpu.vector_store %arg5[%c0_10, %c0_11, %c0_12], %9 {strides = array<i32>} : memref<1x1x128xf32, #tpu.memory_space<vmem>>, vector<1x1x128xf32>,
    return
  }
  func.func @transform_0(%arg0: i32) -> (i32, i32) {
    %c0_i32 = arith.constant 0 : i32
    %c0_i32_0 = arith.constant 0 : i32
    return %arg0, %c0_i32 : i32, i32
  }
  func.func @transform_1(%arg0: i32) -> (i32, i32) {
    %c0_i32 = arith.constant 0 : i32
    %c0_i32_0 = arith.constant 0 : i32
    %c0_i32_1 = arith.constant 0 : i32
    return %c0_i32, %c0_i32_0 : i32, i32
  }
  func.func @transform_2(%arg0: i32) -> (i32, i32) {
    %c0_i32 = arith.constant 0 : i32
    %c0_i32_0 = arith.constant 0 : i32
    return %arg0, %c0_i32 : i32, i32
  }
  func.func @transform_3(%arg0: i32) -> (i32, i32, i32) {
    %c0_i32 = arith.constant 0 : i32
    %c0_i32_0 = arith.constant 0 : i32
    %c0_i32_1 = arith.constant 0 : i32
    return %arg0, %c0_i32, %c0_i32_0 : i32, i32, i32
  }
  func.func @transform_4(%arg0: i32) -> (i32, i32, i32) {
    %c0_i32 = arith.constant 0 : i32
    %c0_i32_0 = arith.constant 0 : i32
    %c0_i32_1 = arith.constant 0 : i32
    return %arg0, %c0_i32, %c0_i32_0 : i32, i32, i32
  }
}

module attributes {stable_mosaic.version = 11 : i64} {
  func.func @_bn_act_kernel(%arg0: i32, %arg1: memref<256x128xf32, #tpu.memory_space<vmem>>, %arg2: memref<1x128xf32, #tpu.memory_space<vmem>>, %arg3: memref<1x128xf32, #tpu.memory_space<vmem>>, %arg4: memref<256x128xbf16, #tpu.memory_space<vmem>>) attributes {dimension_semantics = [#tpu.dimension_semantics<parallel>], iteration_bounds = array<i64: 2>, scalar_prefetch = 0 : i64, scratch_operands = 0 : i64, tpu.core_type = #tpu.core_type<tc>, window_params = [{transform_indices = @transform_0, window_bounds = array<i64: 256, 128>}, {pipeline_mode = #tpu.pipeline_mode<synchronous>, transform_indices = @transform_1, window_bounds = array<i64: 1, 128>}, {pipeline_mode = #tpu.pipeline_mode<synchronous>, transform_indices = @transform_2, window_bounds = array<i64: 1, 128>}, {transform_indices = @transform_3, window_bounds = array<i64: 256, 128>}]} {
    %c0 = arith.constant 0 : index
    %c0_0 = arith.constant 0 : index
    %0 = vector.load %arg1[%c0, %c0_0] : memref<256x128xf32, #tpu.memory_space<vmem>>, vector<256x128xf32>
    %c0_1 = arith.constant 0 : index
    %c0_2 = arith.constant 0 : index
    %1 = vector.load %arg2[%c0_1, %c0_2] : memref<1x128xf32, #tpu.memory_space<vmem>>, vector<1x128xf32>
    %2 = vector.broadcast %1 : vector<1x128xf32> to vector<256x128xf32>
    %3 = arith.mulf %0, %2 : vector<256x128xf32>
    %c0_3 = arith.constant 0 : index
    %c0_4 = arith.constant 0 : index
    %4 = vector.load %arg3[%c0_3, %c0_4] : memref<1x128xf32, #tpu.memory_space<vmem>>, vector<1x128xf32>
    %5 = vector.broadcast %4 : vector<1x128xf32> to vector<256x128xf32>
    %6 = arith.addf %3, %5 : vector<256x128xf32>
    %cst = arith.constant 0.000000e+00 : f32
    %7 = vector.broadcast %cst : f32 to vector<256x128xf32>
    %8 = arith.cmpf oge, %6, %7 : vector<256x128xf32>
    %cst_5 = arith.constant 1.000000e-01 : f32
    %9 = vector.broadcast %cst_5 : f32 to vector<256x128xf32>
    %10 = arith.mulf %9, %6 : vector<256x128xf32>
    %11 = arith.select %8, %6, %10 : vector<256x128xi1>, vector<256x128xf32>
    %12 = arith.truncf %11 : vector<256x128xf32> to vector<256x128xbf16>
    %c0_6 = arith.constant 0 : index
    %c0_7 = arith.constant 0 : index
    %13 = vector.load %arg4[%c0_6, %c0_7] : memref<256x128xbf16, #tpu.memory_space<vmem>>, vector<256x128xbf16>
    tpu.vector_store %arg4[%c0_6, %c0_7], %12 {strides = array<i32>} : memref<256x128xbf16, #tpu.memory_space<vmem>>, vector<256x128xbf16>,
    return
  }
  func.func @transform_0(%arg0: i32) -> (i32, i32) {
    %c0_i32 = arith.constant 0 : i32
    %c0_i32_0 = arith.constant 0 : i32
    return %arg0, %c0_i32 : i32, i32
  }
  func.func @transform_1(%arg0: i32) -> (i32, i32) {
    %c0_i32 = arith.constant 0 : i32
    %c0_i32_0 = arith.constant 0 : i32
    %c0_i32_1 = arith.constant 0 : i32
    return %c0_i32, %c0_i32_0 : i32, i32
  }
  func.func @transform_2(%arg0: i32) -> (i32, i32) {
    %c0_i32 = arith.constant 0 : i32
    %c0_i32_0 = arith.constant 0 : i32
    %c0_i32_1 = arith.constant 0 : i32
    return %c0_i32, %c0_i32_0 : i32, i32
  }
  func.func @transform_3(%arg0: i32) -> (i32, i32) {
    %c0_i32 = arith.constant 0 : i32
    %c0_i32_0 = arith.constant 0 : i32
    return %arg0, %c0_i32 : i32, i32
  }
}

module attributes {stable_mosaic.version = 11 : i64} {
  func.func @_conv3x3_stats_kernel(%arg0: i32, %arg1: i32, %arg2: memref<1x18x18x128xbf16, #tpu.memory_space<vmem>>, %arg3: memref<9x128x128xbf16, #tpu.memory_space<vmem>>, %arg4: memref<1x128x128xf32, #tpu.memory_space<vmem>>, %arg5: memref<1x1x128xf32, #tpu.memory_space<vmem>>, %arg6: memref<1x1x128xf32, #tpu.memory_space<vmem>>, %arg7: memref<128x128xf32, #tpu.memory_space<vmem>>) attributes {dimension_semantics = [#tpu.dimension_semantics<parallel>, #tpu.dimension_semantics<parallel>], iteration_bounds = array<i64: 2, 2>, scalar_prefetch = 0 : i64, scratch_operands = 1 : i64, tpu.core_type = #tpu.core_type<tc>, window_params = [{transform_indices = @transform_0, window_bounds = array<i64: 1, 18, 18, 128>}, {pipeline_mode = #tpu.pipeline_mode<synchronous>, transform_indices = @transform_1, window_bounds = array<i64: 9, 128, 128>}, {transform_indices = @transform_2, window_bounds = array<i64: 1, 128, 128>}, {transform_indices = @transform_3, window_bounds = array<i64: 1, 1, 128>}, {transform_indices = @transform_4, window_bounds = array<i64: 1, 1, 128>}]} {
    %cst = arith.constant 0.000000e+00 : f32
    %0 = vector.broadcast %cst : f32 to vector<128x128xf32>
    %c0 = arith.constant 0 : index
    %c0_0 = arith.constant 0 : index
    %1 = vector.load %arg7[%c0, %c0_0] : memref<128x128xf32, #tpu.memory_space<vmem>>, vector<128x128xf32>
    tpu.vector_store %arg7[%c0, %c0_0], %0 {strides = array<i32>} : memref<128x128xf32, #tpu.memory_space<vmem>>, vector<128x128xf32>,
    %c8_i32 = arith.constant 8 : i32
    %2 = arith.muli %arg1, %c8_i32 : i32
    %3 = tpu.assume_multiple %2, 8 : i32
    %c0_i32 = arith.constant 0 : i32
    %4 = arith.addi %3, %c0_i32 : i32
    %c0_1 = arith.constant 0 : index
    %5 = arith.index_cast %4 : i32 to index
    %c0_2 = arith.constant 0 : index
    %c0_3 = arith.constant 0 : index
    %6 = vector.load %arg2[%c0_1, %5, %c0_2, %c0_3] : memref<1x18x18x128xbf16, #tpu.memory_space<vmem>>, vector<1x8x16x128xbf16>
    %7 = vector.shape_cast %6 : vector<1x8x16x128xbf16> to vector<128x128xbf16>
    %c0_4 = arith.constant 0 : index
    %c0_5 = arith.constant 0 : index
    %8 = vector.load %arg7[%c0_4, %c0_5] : memref<128x128xf32, #tpu.memory_space<vmem>>, vector<128x128xf32>
    %c0_6 = arith.constant 0 : index
    %c0_7 = arith.constant 0 : index
    %c0_8 = arith.constant 0 : index
    %9 = vector.load %arg3[%c0_6, %c0_7, %c0_8] : memref<9x128x128xbf16, #tpu.memory_space<vmem>>, vector<1x128x128xbf16>
    %10 = vector.shape_cast %9 : vector<1x128x128xbf16> to vector<128x128xbf16>
    %cst_9 = arith.constant dense<0.000000e+00> : vector<128x128xf32>
    %11 = tpu.matmul %7, %10, %cst_9 {dimension_numbers = #tpu.dot_dimension_numbers<[1], [0], [0], [1], [0, 0, 1, 1], [], []>} : vector<128x128xbf16>, vector<128x128xbf16>, vector<128x128xf32> -> vector<128x128xf32>
    %12 = arith.addf %8, %11 : vector<128x128xf32>
    %c0_10 = arith.constant 0 : index
    %c0_11 = arith.constant 0 : index
    %13 = vector.load %arg7[%c0_10, %c0_11] : memref<128x128xf32, #tpu.memory_space<vmem>>, vector<128x128xf32>
    tpu.vector_store %arg7[%c0_10, %c0_11], %12 {strides = array<i32>} : memref<128x128xf32, #tpu.memory_space<vmem>>, vector<128x128xf32>,
    %c0_i32_12 = arith.constant 0 : i32
    %14 = arith.addi %3, %c0_i32_12 : i32
    %c0_13 = arith.constant 0 : index
    %15 = arith.index_cast %14 : i32 to index
    %c1 = arith.constant 1 : index
    %c0_14 = arith.constant 0 : index
    %16 = vector.load %arg2[%c0_13, %15, %c1, %c0_14] : memref<1x18x18x128xbf16, #tpu.memory_space<vmem>>, vector<1x8x16x128xbf16>
    %17 = vector.shape_cast %16 : vector<1x8x16x128xbf16> to vector<128x128xbf16>
    %c0_15 = arith.constant 0 : index
    %c0_16 = arith.constant 0 : index
    %18 = vector.load %arg7[%c0_15, %c0_16] : memref<128x128xf32, #tpu.memory_space<vmem>>, vector<128x128xf32>
    %c1_17 = arith.constant 1 : index
    %c0_18 = arith.constant 0 : index
    %c0_19 = arith.constant 0 : index
    %19 = vector.load %arg3[%c1_17, %c0_18, %c0_19] : memref<9x128x128xbf16, #tpu.memory_space<vmem>>, vector<1x128x128xbf16>
    %20 = vector.shape_cast %19 : vector<1x128x128xbf16> to vector<128x128xbf16>
    %cst_20 = arith.constant dense<0.000000e+00> : vector<128x128xf32>
    %21 = tpu.matmul %17, %20, %cst_20 {dimension_numbers = #tpu.dot_dimension_numbers<[1], [0], [0], [1], [0, 0, 1, 1], [], []>} : vector<128x128xbf16>, vector<128x128xbf16>, vector<128x128xf32> -> vector<128x128xf32>
    %22 = arith.addf %18, %21 : vector<128x128xf32>
    %c0_21 = arith.constant 0 : index
    %c0_22 = arith.constant 0 : index
    %23 = vector.load %arg7[%c0_21, %c0_22] : memref<128x128xf32, #tpu.memory_space<vmem>>, vector<128x128xf32>
    tpu.vector_store %arg7[%c0_21, %c0_22], %22 {strides = array<i32>} : memref<128x128xf32, #tpu.memory_space<vmem>>, vector<128x128xf32>,
    %c0_i32_23 = arith.constant 0 : i32
    %24 = arith.addi %3, %c0_i32_23 : i32
    %c0_24 = arith.constant 0 : index
    %25 = arith.index_cast %24 : i32 to index
    %c2 = arith.constant 2 : index
    %c0_25 = arith.constant 0 : index
    %26 = vector.load %arg2[%c0_24, %25, %c2, %c0_25] : memref<1x18x18x128xbf16, #tpu.memory_space<vmem>>, vector<1x8x16x128xbf16>
    %27 = vector.shape_cast %26 : vector<1x8x16x128xbf16> to vector<128x128xbf16>
    %c0_26 = arith.constant 0 : index
    %c0_27 = arith.constant 0 : index
    %28 = vector.load %arg7[%c0_26, %c0_27] : memref<128x128xf32, #tpu.memory_space<vmem>>, vector<128x128xf32>
    %c2_28 = arith.constant 2 : index
    %c0_29 = arith.constant 0 : index
    %c0_30 = arith.constant 0 : index
    %29 = vector.load %arg3[%c2_28, %c0_29, %c0_30] : memref<9x128x128xbf16, #tpu.memory_space<vmem>>, vector<1x128x128xbf16>
    %30 = vector.shape_cast %29 : vector<1x128x128xbf16> to vector<128x128xbf16>
    %cst_31 = arith.constant dense<0.000000e+00> : vector<128x128xf32>
    %31 = tpu.matmul %27, %30, %cst_31 {dimension_numbers = #tpu.dot_dimension_numbers<[1], [0], [0], [1], [0, 0, 1, 1], [], []>} : vector<128x128xbf16>, vector<128x128xbf16>, vector<128x128xf32> -> vector<128x128xf32>
    %32 = arith.addf %28, %31 : vector<128x128xf32>
    %c0_32 = arith.constant 0 : index
    %c0_33 = arith.constant 0 : index
    %33 = vector.load %arg7[%c0_32, %c0_33] : memref<128x128xf32, #tpu.memory_space<vmem>>, vector<128x128xf32>
    tpu.vector_store %arg7[%c0_32, %c0_33], %32 {strides = array<i32>} : memref<128x128xf32, #tpu.memory_space<vmem>>, vector<128x128xf32>,
    %c1_i32 = arith.constant 1 : i32
    %34 = arith.addi %3, %c1_i32 : i32
    %c0_34 = arith.constant 0 : index
    %35 = arith.index_cast %34 : i32 to index
    %c0_35 = arith.constant 0 : index
    %c0_36 = arith.constant 0 : index
    %36 = vector.load %arg2[%c0_34, %35, %c0_35, %c0_36] : memref<1x18x18x128xbf16, #tpu.memory_space<vmem>>, vector<1x8x16x128xbf16>
    %37 = vector.shape_cast %36 : vector<1x8x16x128xbf16> to vector<128x128xbf16>
    %c0_37 = arith.constant 0 : index
    %c0_38 = arith.constant 0 : index
    %38 = vector.load %arg7[%c0_37, %c0_38] : memref<128x128xf32, #tpu.memory_space<vmem>>, vector<128x128xf32>
    %c3 = arith.constant 3 : index
    %c0_39 = arith.constant 0 : index
    %c0_40 = arith.constant 0 : index
    %39 = vector.load %arg3[%c3, %c0_39, %c0_40] : memref<9x128x128xbf16, #tpu.memory_space<vmem>>, vector<1x128x128xbf16>
    %40 = vector.shape_cast %39 : vector<1x128x128xbf16> to vector<128x128xbf16>
    %cst_41 = arith.constant dense<0.000000e+00> : vector<128x128xf32>
    %41 = tpu.matmul %37, %40, %cst_41 {dimension_numbers = #tpu.dot_dimension_numbers<[1], [0], [0], [1], [0, 0, 1, 1], [], []>} : vector<128x128xbf16>, vector<128x128xbf16>, vector<128x128xf32> -> vector<128x128xf32>
    %42 = arith.addf %38, %41 : vector<128x128xf32>
    %c0_42 = arith.constant 0 : index
    %c0_43 = arith.constant 0 : index
    %43 = vector.load %arg7[%c0_42, %c0_43] : memref<128x128xf32, #tpu.memory_space<vmem>>, vector<128x128xf32>
    tpu.vector_store %arg7[%c0_42, %c0_43], %42 {strides = array<i32>} : memref<128x128xf32, #tpu.memory_space<vmem>>, vector<128x128xf32>,
    %c1_i32_44 = arith.constant 1 : i32
    %44 = arith.addi %3, %c1_i32_44 : i32
    %c0_45 = arith.constant 0 : index
    %45 = arith.index_cast %44 : i32 to index
    %c1_46 = arith.constant 1 : index
    %c0_47 = arith.constant 0 : index
    %46 = vector.load %arg2[%c0_45, %45, %c1_46, %c0_47] : memref<1x18x18x128xbf16, #tpu.memory_space<vmem>>, vector<1x8x16x128xbf16>
    %47 = vector.shape_cast %46 : vector<1x8x16x128xbf16> to vector<128x128xbf16>
    %c0_48 = arith.constant 0 : index
    %c0_49 = arith.constant 0 : index
    %48 = vector.load %arg7[%c0_48, %c0_49] : memref<128x128xf32, #tpu.memory_space<vmem>>, vector<128x128xf32>
    %c4 = arith.constant 4 : index
    %c0_50 = arith.constant 0 : index
    %c0_51 = arith.constant 0 : index
    %49 = vector.load %arg3[%c4, %c0_50, %c0_51] : memref<9x128x128xbf16, #tpu.memory_space<vmem>>, vector<1x128x128xbf16>
    %50 = vector.shape_cast %49 : vector<1x128x128xbf16> to vector<128x128xbf16>
    %cst_52 = arith.constant dense<0.000000e+00> : vector<128x128xf32>
    %51 = tpu.matmul %47, %50, %cst_52 {dimension_numbers = #tpu.dot_dimension_numbers<[1], [0], [0], [1], [0, 0, 1, 1], [], []>} : vector<128x128xbf16>, vector<128x128xbf16>, vector<128x128xf32> -> vector<128x128xf32>
    %52 = arith.addf %48, %51 : vector<128x128xf32>
    %c0_53 = arith.constant 0 : index
    %c0_54 = arith.constant 0 : index
    %53 = vector.load %arg7[%c0_53, %c0_54] : memref<128x128xf32, #tpu.memory_space<vmem>>, vector<128x128xf32>
    tpu.vector_store %arg7[%c0_53, %c0_54], %52 {strides = array<i32>} : memref<128x128xf32, #tpu.memory_space<vmem>>, vector<128x128xf32>,
    %c1_i32_55 = arith.constant 1 : i32
    %54 = arith.addi %3, %c1_i32_55 : i32
    %c0_56 = arith.constant 0 : index
    %55 = arith.index_cast %54 : i32 to index
    %c2_57 = arith.constant 2 : index
    %c0_58 = arith.constant 0 : index
    %56 = vector.load %arg2[%c0_56, %55, %c2_57, %c0_58] : memref<1x18x18x128xbf16, #tpu.memory_space<vmem>>, vector<1x8x16x128xbf16>
    %57 = vector.shape_cast %56 : vector<1x8x16x128xbf16> to vector<128x128xbf16>
    %c0_59 = arith.constant 0 : index
    %c0_60 = arith.constant 0 : index
    %58 = vector.load %arg7[%c0_59, %c0_60] : memref<128x128xf32, #tpu.memory_space<vmem>>, vector<128x128xf32>
    %c5 = arith.constant 5 : index
    %c0_61 = arith.constant 0 : index
    %c0_62 = arith.constant 0 : index
    %59 = vector.load %arg3[%c5, %c0_61, %c0_62] : memref<9x128x128xbf16, #tpu.memory_space<vmem>>, vector<1x128x128xbf16>
    %60 = vector.shape_cast %59 : vector<1x128x128xbf16> to vector<128x128xbf16>
    %cst_63 = arith.constant dense<0.000000e+00> : vector<128x128xf32>
    %61 = tpu.matmul %57, %60, %cst_63 {dimension_numbers = #tpu.dot_dimension_numbers<[1], [0], [0], [1], [0, 0, 1, 1], [], []>} : vector<128x128xbf16>, vector<128x128xbf16>, vector<128x128xf32> -> vector<128x128xf32>
    %62 = arith.addf %58, %61 : vector<128x128xf32>
    %c0_64 = arith.constant 0 : index
    %c0_65 = arith.constant 0 : index
    %63 = vector.load %arg7[%c0_64, %c0_65] : memref<128x128xf32, #tpu.memory_space<vmem>>, vector<128x128xf32>
    tpu.vector_store %arg7[%c0_64, %c0_65], %62 {strides = array<i32>} : memref<128x128xf32, #tpu.memory_space<vmem>>, vector<128x128xf32>,
    %c2_i32 = arith.constant 2 : i32
    %64 = arith.addi %3, %c2_i32 : i32
    %c0_66 = arith.constant 0 : index
    %65 = arith.index_cast %64 : i32 to index
    %c0_67 = arith.constant 0 : index
    %c0_68 = arith.constant 0 : index
    %66 = vector.load %arg2[%c0_66, %65, %c0_67, %c0_68] : memref<1x18x18x128xbf16, #tpu.memory_space<vmem>>, vector<1x8x16x128xbf16>
    %67 = vector.shape_cast %66 : vector<1x8x16x128xbf16> to vector<128x128xbf16>
    %c0_69 = arith.constant 0 : index
    %c0_70 = arith.constant 0 : index
    %68 = vector.load %arg7[%c0_69, %c0_70] : memref<128x128xf32, #tpu.memory_space<vmem>>, vector<128x128xf32>
    %c6 = arith.constant 6 : index
    %c0_71 = arith.constant 0 : index
    %c0_72 = arith.constant 0 : index
    %69 = vector.load %arg3[%c6, %c0_71, %c0_72] : memref<9x128x128xbf16, #tpu.memory_space<vmem>>, vector<1x128x128xbf16>
    %70 = vector.shape_cast %69 : vector<1x128x128xbf16> to vector<128x128xbf16>
    %cst_73 = arith.constant dense<0.000000e+00> : vector<128x128xf32>
    %71 = tpu.matmul %67, %70, %cst_73 {dimension_numbers = #tpu.dot_dimension_numbers<[1], [0], [0], [1], [0, 0, 1, 1], [], []>} : vector<128x128xbf16>, vector<128x128xbf16>, vector<128x128xf32> -> vector<128x128xf32>
    %72 = arith.addf %68, %71 : vector<128x128xf32>
    %c0_74 = arith.constant 0 : index
    %c0_75 = arith.constant 0 : index
    %73 = vector.load %arg7[%c0_74, %c0_75] : memref<128x128xf32, #tpu.memory_space<vmem>>, vector<128x128xf32>
    tpu.vector_store %arg7[%c0_74, %c0_75], %72 {strides = array<i32>} : memref<128x128xf32, #tpu.memory_space<vmem>>, vector<128x128xf32>,
    %c2_i32_76 = arith.constant 2 : i32
    %74 = arith.addi %3, %c2_i32_76 : i32
    %c0_77 = arith.constant 0 : index
    %75 = arith.index_cast %74 : i32 to index
    %c1_78 = arith.constant 1 : index
    %c0_79 = arith.constant 0 : index
    %76 = vector.load %arg2[%c0_77, %75, %c1_78, %c0_79] : memref<1x18x18x128xbf16, #tpu.memory_space<vmem>>, vector<1x8x16x128xbf16>
    %77 = vector.shape_cast %76 : vector<1x8x16x128xbf16> to vector<128x128xbf16>
    %c0_80 = arith.constant 0 : index
    %c0_81 = arith.constant 0 : index
    %78 = vector.load %arg7[%c0_80, %c0_81] : memref<128x128xf32, #tpu.memory_space<vmem>>, vector<128x128xf32>
    %c7 = arith.constant 7 : index
    %c0_82 = arith.constant 0 : index
    %c0_83 = arith.constant 0 : index
    %79 = vector.load %arg3[%c7, %c0_82, %c0_83] : memref<9x128x128xbf16, #tpu.memory_space<vmem>>, vector<1x128x128xbf16>
    %80 = vector.shape_cast %79 : vector<1x128x128xbf16> to vector<128x128xbf16>
    %cst_84 = arith.constant dense<0.000000e+00> : vector<128x128xf32>
    %81 = tpu.matmul %77, %80, %cst_84 {dimension_numbers = #tpu.dot_dimension_numbers<[1], [0], [0], [1], [0, 0, 1, 1], [], []>} : vector<128x128xbf16>, vector<128x128xbf16>, vector<128x128xf32> -> vector<128x128xf32>
    %82 = arith.addf %78, %81 : vector<128x128xf32>
    %c0_85 = arith.constant 0 : index
    %c0_86 = arith.constant 0 : index
    %83 = vector.load %arg7[%c0_85, %c0_86] : memref<128x128xf32, #tpu.memory_space<vmem>>, vector<128x128xf32>
    tpu.vector_store %arg7[%c0_85, %c0_86], %82 {strides = array<i32>} : memref<128x128xf32, #tpu.memory_space<vmem>>, vector<128x128xf32>,
    %c2_i32_87 = arith.constant 2 : i32
    %84 = arith.addi %3, %c2_i32_87 : i32
    %c0_88 = arith.constant 0 : index
    %85 = arith.index_cast %84 : i32 to index
    %c2_89 = arith.constant 2 : index
    %c0_90 = arith.constant 0 : index
    %86 = vector.load %arg2[%c0_88, %85, %c2_89, %c0_90] : memref<1x18x18x128xbf16, #tpu.memory_space<vmem>>, vector<1x8x16x128xbf16>
    %87 = vector.shape_cast %86 : vector<1x8x16x128xbf16> to vector<128x128xbf16>
    %c0_91 = arith.constant 0 : index
    %c0_92 = arith.constant 0 : index
    %88 = vector.load %arg7[%c0_91, %c0_92] : memref<128x128xf32, #tpu.memory_space<vmem>>, vector<128x128xf32>
    %c8 = arith.constant 8 : index
    %c0_93 = arith.constant 0 : index
    %c0_94 = arith.constant 0 : index
    %89 = vector.load %arg3[%c8, %c0_93, %c0_94] : memref<9x128x128xbf16, #tpu.memory_space<vmem>>, vector<1x128x128xbf16>
    %90 = vector.shape_cast %89 : vector<1x128x128xbf16> to vector<128x128xbf16>
    %cst_95 = arith.constant dense<0.000000e+00> : vector<128x128xf32>
    %91 = tpu.matmul %87, %90, %cst_95 {dimension_numbers = #tpu.dot_dimension_numbers<[1], [0], [0], [1], [0, 0, 1, 1], [], []>} : vector<128x128xbf16>, vector<128x128xbf16>, vector<128x128xf32> -> vector<128x128xf32>
    %92 = arith.addf %88, %91 : vector<128x128xf32>
    %c0_96 = arith.constant 0 : index
    %c0_97 = arith.constant 0 : index
    %93 = vector.load %arg7[%c0_96, %c0_97] : memref<128x128xf32, #tpu.memory_space<vmem>>, vector<128x128xf32>
    tpu.vector_store %arg7[%c0_96, %c0_97], %92 {strides = array<i32>} : memref<128x128xf32, #tpu.memory_space<vmem>>, vector<128x128xf32>,
    %c0_98 = arith.constant 0 : index
    %c0_99 = arith.constant 0 : index
    %94 = vector.load %arg7[%c0_98, %c0_99] : memref<128x128xf32, #tpu.memory_space<vmem>>, vector<128x128xf32>
    %95 = vector.shape_cast %94 : vector<128x128xf32> to vector<1x128x128xf32>
    %c0_100 = arith.constant 0 : index
    %c0_101 = arith.constant 0 : index
    %c0_102 = arith.constant 0 : index
    %96 = vector.load %arg4[%c0_100, %c0_101, %c0_102] : memref<1x128x128xf32, #tpu.memory_space<vmem>>, vector<1x128x128xf32>
    tpu.vector_store %arg4[%c0_100, %c0_101, %c0_102], %95 {strides = array<i32>} : memref<1x128x128xf32, #tpu.memory_space<vmem>>, vector<1x128x128xf32>,
    %cst_103 = arith.constant dense<0.000000e+00> : vector<128xf32>
    %97 = vector.multi_reduction <add>, %94, %cst_103 [0] : vector<128x128xf32> to vector<128xf32>
    %98 = vector.shape_cast %97 : vector<128xf32> to vector<1x1x128xf32>
    %c0_104 = arith.constant 0 : index
    %c0_105 = arith.constant 0 : index
    %c0_106 = arith.constant 0 : index
    %99 = vector.load %arg5[%c0_104, %c0_105, %c0_106] : memref<1x1x128xf32, #tpu.memory_space<vmem>>, vector<1x1x128xf32>
    tpu.vector_store %arg5[%c0_104, %c0_105, %c0_106], %98 {strides = array<i32>} : memref<1x1x128xf32, #tpu.memory_space<vmem>>, vector<1x1x128xf32>,
    %100 = arith.mulf %94, %94 : vector<128x128xf32>
    %cst_107 = arith.constant dense<0.000000e+00> : vector<128xf32>
    %101 = vector.multi_reduction <add>, %100, %cst_107 [0] : vector<128x128xf32> to vector<128xf32>
    %102 = vector.shape_cast %101 : vector<128xf32> to vector<1x1x128xf32>
    %c0_108 = arith.constant 0 : index
    %c0_109 = arith.constant 0 : index
    %c0_110 = arith.constant 0 : index
    %103 = vector.load %arg6[%c0_108, %c0_109, %c0_110] : memref<1x1x128xf32, #tpu.memory_space<vmem>>, vector<1x1x128xf32>
    tpu.vector_store %arg6[%c0_108, %c0_109, %c0_110], %102 {strides = array<i32>} : memref<1x1x128xf32, #tpu.memory_space<vmem>>, vector<1x1x128xf32>,
    return
  }
  func.func @transform_0(%arg0: i32, %arg1: i32) -> (i32, i32, i32, i32) {
    %c0_i32 = arith.constant 0 : i32
    %c0_i32_0 = arith.constant 0 : i32
    %c0_i32_1 = arith.constant 0 : i32
    %c0_i32_2 = arith.constant 0 : i32
    return %arg0, %c0_i32, %c0_i32_0, %c0_i32_1 : i32, i32, i32, i32
  }
  func.func @transform_1(%arg0: i32, %arg1: i32) -> (i32, i32, i32) {
    %c0_i32 = arith.constant 0 : i32
    %c0_i32_0 = arith.constant 0 : i32
    %c0_i32_1 = arith.constant 0 : i32
    %c0_i32_2 = arith.constant 0 : i32
    return %c0_i32, %c0_i32_0, %c0_i32_1 : i32, i32, i32
  }
  func.func @transform_2(%arg0: i32, %arg1: i32) -> (i32, i32, i32) {
    %c0_i32 = arith.constant 0 : i32
    %c0_i32_0 = arith.constant 0 : i32
    return %arg0, %arg1, %c0_i32 : i32, i32, i32
  }
  func.func @transform_3(%arg0: i32, %arg1: i32) -> (i32, i32, i32) {
    %c2_i32 = arith.constant 2 : i32
    %0 = arith.muli %arg0, %c2_i32 : i32
    %1 = arith.addi %0, %arg1 : i32
    %c0_i32 = arith.constant 0 : i32
    %c0_i32_0 = arith.constant 0 : i32
    %c0_i32_1 = arith.constant 0 : i32
    return %1, %c0_i32, %c0_i32_0 : i32, i32, i32
  }
  func.func @transform_4(%arg0: i32, %arg1: i32) -> (i32, i32, i32) {
    %c2_i32 = arith.constant 2 : i32
    %0 = arith.muli %arg0, %c2_i32 : i32
    %1 = arith.addi %0, %arg1 : i32
    %c0_i32 = arith.constant 0 : i32
    %c0_i32_0 = arith.constant 0 : i32
    %c0_i32_1 = arith.constant 0 : i32
    return %1, %c0_i32, %c0_i32_0 : i32, i32, i32
  }
}

module attributes {stable_mosaic.version = 11 : i64} {
  func.func @_bn_act_residual_kernel(%arg0: i32, %arg1: memref<256x128xf32, #tpu.memory_space<vmem>>, %arg2: memref<256x128xf32, #tpu.memory_space<vmem>>, %arg3: memref<1x128xf32, #tpu.memory_space<vmem>>, %arg4: memref<1x128xf32, #tpu.memory_space<vmem>>, %arg5: memref<256x128xf32, #tpu.memory_space<vmem>>) attributes {dimension_semantics = [#tpu.dimension_semantics<parallel>], iteration_bounds = array<i64: 2>, scalar_prefetch = 0 : i64, scratch_operands = 0 : i64, tpu.core_type = #tpu.core_type<tc>, window_params = [{transform_indices = @transform_0, window_bounds = array<i64: 256, 128>}, {transform_indices = @transform_1, window_bounds = array<i64: 256, 128>}, {pipeline_mode = #tpu.pipeline_mode<synchronous>, transform_indices = @transform_2, window_bounds = array<i64: 1, 128>}, {pipeline_mode = #tpu.pipeline_mode<synchronous>, transform_indices = @transform_3, window_bounds = array<i64: 1, 128>}, {transform_indices = @transform_4, window_bounds = array<i64: 256, 128>}]} {
    %c0 = arith.constant 0 : index
    %c0_0 = arith.constant 0 : index
    %0 = vector.load %arg1[%c0, %c0_0] : memref<256x128xf32, #tpu.memory_space<vmem>>, vector<256x128xf32>
    %c0_1 = arith.constant 0 : index
    %c0_2 = arith.constant 0 : index
    %1 = vector.load %arg3[%c0_1, %c0_2] : memref<1x128xf32, #tpu.memory_space<vmem>>, vector<1x128xf32>
    %2 = vector.broadcast %1 : vector<1x128xf32> to vector<256x128xf32>
    %3 = arith.mulf %0, %2 : vector<256x128xf32>
    %c0_3 = arith.constant 0 : index
    %c0_4 = arith.constant 0 : index
    %4 = vector.load %arg4[%c0_3, %c0_4] : memref<1x128xf32, #tpu.memory_space<vmem>>, vector<1x128xf32>
    %5 = vector.broadcast %4 : vector<1x128xf32> to vector<256x128xf32>
    %6 = arith.addf %3, %5 : vector<256x128xf32>
    %cst = arith.constant 0.000000e+00 : f32
    %7 = vector.broadcast %cst : f32 to vector<256x128xf32>
    %8 = arith.cmpf oge, %6, %7 : vector<256x128xf32>
    %cst_5 = arith.constant 1.000000e-01 : f32
    %9 = vector.broadcast %cst_5 : f32 to vector<256x128xf32>
    %10 = arith.mulf %9, %6 : vector<256x128xf32>
    %11 = arith.select %8, %6, %10 : vector<256x128xi1>, vector<256x128xf32>
    %c0_6 = arith.constant 0 : index
    %c0_7 = arith.constant 0 : index
    %12 = vector.load %arg2[%c0_6, %c0_7] : memref<256x128xf32, #tpu.memory_space<vmem>>, vector<256x128xf32>
    %13 = arith.addf %12, %11 : vector<256x128xf32>
    %c0_8 = arith.constant 0 : index
    %c0_9 = arith.constant 0 : index
    %14 = vector.load %arg5[%c0_8, %c0_9] : memref<256x128xf32, #tpu.memory_space<vmem>>, vector<256x128xf32>
    tpu.vector_store %arg5[%c0_8, %c0_9], %13 {strides = array<i32>} : memref<256x128xf32, #tpu.memory_space<vmem>>, vector<256x128xf32>,
    return
  }
  func.func @transform_0(%arg0: i32) -> (i32, i32) {
    %c0_i32 = arith.constant 0 : i32
    %c0_i32_0 = arith.constant 0 : i32
    return %arg0, %c0_i32 : i32, i32
  }
  func.func @transform_1(%arg0: i32) -> (i32, i32) {
    %c0_i32 = arith.constant 0 : i32
    %c0_i32_0 = arith.constant 0 : i32
    return %arg0, %c0_i32 : i32, i32
  }
  func.func @transform_2(%arg0: i32) -> (i32, i32) {
    %c0_i32 = arith.constant 0 : i32
    %c0_i32_0 = arith.constant 0 : i32
    %c0_i32_1 = arith.constant 0 : i32
    return %c0_i32, %c0_i32_0 : i32, i32
  }
  func.func @transform_3(%arg0: i32) -> (i32, i32) {
    %c0_i32 = arith.constant 0 : i32
    %c0_i32_0 = arith.constant 0 : i32
    %c0_i32_1 = arith.constant 0 : i32
    return %c0_i32, %c0_i32_0 : i32, i32
  }
  func.func @transform_4(%arg0: i32) -> (i32, i32) {
    %c0_i32 = arith.constant 0 : i32
    %c0_i32_0 = arith.constant 0 : i32
    return %arg0, %c0_i32 : i32, i32
  }
}

</mosaic_0001>

<bundles_post_ra>
// kernel: res_layer_pallas.5
= control target key start
LH: loop header
LB: loop body
LE: loop exit
PB: predicated region body
PF: predicated region fallthrough
CT: control target
= control target key end

     0   :  { %s638_s12 = smov 0   ;;  %s786_s0 = inlined_call_operand.vmem [shape: f32[512,128], index: 0, kind: input, shape index: {}]   ;;  %s787_s1 = inlined_call_operand.vmem [shape: f32[1,128], index: 1, kind: input, shape index: {}]   ;;  %s788_s2 = inlined_call_operand.vmem [shape: f32[1,128], index: 2, kind: input, shape index: {}]   ;;  %s789_s3 = inlined_call_operand.vmem [shape: bf16[512,128], index: 3, kind: output, shape index: {}]  }
   0x1 LB: > { %s494_s13 = sadd.s32 4294967295, %s616_s12   ;;  %p498_p0 = scmp.ge.s32.totalorder %s616_s12, 1  ;;  %s616_s12 = sphi %s638_s12, %s13_s12  }
   0x2   : > { %p138_p1 = scmp.lt.s32.totalorder %s616_s12, 3 }
   0x4   : > { %p139_p2 = pnand %p498_p0, %p138_p1 }
   0x5   : > { %s499_s14 = sshll.u32 (!%p139_p2), %s494_s13, 5 }
   0x6   : > { %142 = sbr.rel (%p139_p2) target bundleno = 65 (0x41), region = 32  ;;  %p163_p3 = scmp.lt.s32.totalorder (!%p139_p2), %s499_s14, 63 }
   0xb   : > { %s791_s14 = smov (!%p163_p3, %s499_s14), 63  ;;  %v651_v0 = vld [vmem:[%s787_s1] ss:$0 sm:$0xff] }
   0xc   : > { %s500_s17 = sshll.u32 %s791_s14, 3  ;;  %v662_v1 = vld [vmem:[%s788_s2] ss:$0 sm:$0xff]  ;;  %s502_s23 = sshll.u32 %s791_s14, 2 }
   0xd   : > { %s657_s20 = scalar_lea.vmem %s786_s0, %s500_s17  ;;  %s690_s26 = scalar_lea.vmem %s789_s3, %s502_s23 }
   0xe   : > { %v174_v2 = vld [vmem:[%s657_s20] sm:$0xff]  ;;  %v175_v3 = vld [vmem:[%s657_s20 + $0x8] sm:$0xff]  ;;  %v176_v4 = vld [vmem:[%s657_s20 + $0x10] sm:$0xff] }
   0xf   : > { %v210_v5 = vmul.f32 %v651_v0, %v174_v2  ;;  %v211_v6 = vmul.f32 %v651_v0, %v175_v3  ;;  %v177_v7 = vld [vmem:[%s657_s20 + $0x18] sm:$0xff]  ;;  %v212_v8 = vmul.f32 %v651_v0, %v176_v4  ;;  %v178_v9 = vld [vmem:[%s657_s20 + $0x20] sm:$0xff]  ;;  %v179_v10 = vld [vmem:[%s657_s20 + $0x28] sm:$0xff] }
  0x10   : > { %v213_v11 = vmul.f32 %v651_v0, %v177_v7  ;;  %v214_v12 = vmul.f32 %v651_v0, %v178_v9  ;;  %v215_v13 = vmul.f32 %v651_v0, %v179_v10  ;;  %v180_v14 = vld [vmem:[%s657_s20 + $0x30] sm:$0xff]  ;;  %v181_v15 = vld [vmem:[%s657_s20 + $0x38] sm:$0xff]  ;;  %v182_v30 = vld [vmem:[%s657_s20 + $0x40] sm:$0xff] }
  0x11   : > { %v246_v16 = vadd.f32 %v662_v1, %v210_v5  ;;  %v247_v17 = vadd.f32 %v662_v1, %v211_v6  ;;  %v248_v18 = vadd.f32 %v662_v1, %v212_v8  ;;  %v216_v19 = vmul.f32 %v651_v0, %v180_v14  ;;  %v183_v31 = vld [vmem:[%s657_s20 + $0x48] sm:$0xff]  ;;  %v184_v32 = vld [vmem:[%s657_s20 + $0x50] sm:$0xff]  ;;  %v185_v44 = vld [vmem:[%s657_s20 + $0x58] sm:$0xff] }
  0x12   : > { %v249_v20 = vadd.f32 %v662_v1, %v213_v11  ;;  %v250_v21 = vadd.f32 %v662_v1, %v214_v12  ;;  %v251_v22 = vadd.f32 %v662_v1, %v215_v13  ;;  %v217_v23 = vmul.f32 %v651_v0, %v181_v15  ;;  %v186_v46 = vld [vmem:[%s657_s20 + $0x60] sm:$0xff]  ;;  %v187_v56 = vld [vmem:[%s657_s20 + $0x68] sm:$0xff]  ;;  %v188_v60 = vld [vmem:[%s657_s20 + $0x70] sm:$0xff] }
  0x13   : > { %vm278_vm0 = vcmp.ge.f32.partialorder %v246_v16, 0.0  ;;  %vm279_vm1 = vcmp.ge.f32.partialorder %v247_v17, 0.0  ;;  %v310_v24 = vmul.f32 0.1, %v246_v16  ;;  %v311_v25 = vmul.f32 0.1, %v247_v17 }
  0x14   : > { %vm280_vm2 = vcmp.ge.f32.partialorder %v248_v18, 0.0  ;;  %vm281_vm3 = vcmp.ge.f32.partialorder %v249_v20, 0.0  ;;  %v312_v26 = vmul.f32 0.1, %v248_v18  ;;  %v313_v27 = vmul.f32 0.1, %v249_v20 }
  0x15   : > { %v342_v28 = vsel %vm278_vm0, %v246_v16, %v310_v24  ;;  %v343_v29 = vsel %vm279_vm1, %v247_v17, %v311_v25  ;;  %vm282_vm4 = vcmp.ge.f32.partialorder %v250_v21, 0.0  ;;  %vm283_vm5 = vcmp.ge.f32.partialorder %v251_v22, 0.0  ;;  %v189_v6 = vld [vmem:[%s657_s20 + $0x78] sm:$0xff]  ;;  %v190_v10 = vld [vmem:[%s657_s20 + $0x80] sm:$0xff] }
  0x16   : > { %v508_v33 = vpack.c.bf16 %v343_v29, %v342_v28  ;;  %v344_v34 = vsel %vm280_vm2, %v248_v18, %v312_v26  ;;  %v345_v35 = vsel %vm281_vm3, %v249_v20, %v313_v27  ;;  %v314_v36 = vmul.f32 0.1, %v250_v21  ;;  %v191_v18 = vld [vmem:[%s657_s20 + $0x88] sm:$0xff]  ;;  %v193_v26 = vld [vmem:[%s657_s20 + $0x98] sm:$0xff] }
  0x17   : > { %v513_v37 = vpack.c.bf16 %v345_v35, %v344_v34  ;;  %v315_v38 = vmul.f32 0.1, %v251_v22  ;;  %v252_v39 = vadd.f32 %v662_v1, %v216_v19  ;;  %v253_v40 = vadd.f32 %v662_v1, %v217_v23  ;;  %v192_v19 = vld [vmem:[%s657_s20 + $0x90] sm:$0xff] }
  0x18   : > { %509 = vst [vmem:[%s690_s26] sm:$0xff] %v508_v33   ;;  %v346_v41 = vsel %vm282_vm4, %v250_v21, %v314_v36  ;;  %v218_v42 = vmul.f32 %v651_v0, %v182_v30  ;;  %v219_v43 = vmul.f32 %v651_v0, %v183_v31  ;;  %v220_v45 = vmul.f32 %v651_v0, %v184_v32  ;;  %v194_v31 = vld [vmem:[%s657_s20 + $0xa0] sm:$0xff]  ;;  %v195_v32 = vld [vmem:[%s657_s20 + $0xa8] sm:$0xff] }
  0x19   : > { %585 = vst [vmem:[%s690_s26 + $0x8] sm:$0xff] %v513_v37   ;;  %v347_v47 = vsel %vm283_vm5, %v251_v22, %v315_v38  ;;  %vm284_vm6 = vcmp.ge.f32.partialorder %v252_v39, 0.0  ;;  %vm285_vm7 = vcmp.ge.f32.partialorder %v253_v40, 0.0  ;;  %v316_v48 = vmul.f32 0.1, %v252_v39 }
  0x1a   : > { %v518_v49 = vpack.c.bf16 %v347_v47, %v346_v41  ;;  %v317_v50 = vmul.f32 0.1, %v253_v40  ;;  %v254_v51 = vadd.f32 %v662_v1, %v218_v42  ;;  %v255_v52 = vadd.f32 %v662_v1, %v219_v43  ;;  %v196_v43 = vld [vmem:[%s657_s20 + $0xb0] sm:$0xff] }
  0x1b   : > { %v348_v53 = vsel %vm284_vm6, %v252_v39, %v316_v48  ;;  %v221_v54 = vmul.f32 %v651_v0, %v185_v44  ;;  %v256_v55 = vadd.f32 %v662_v1, %v220_v45  ;;  %v222_v57 = vmul.f32 %v651_v0, %v186_v46  ;;  %v197_v44 = vld [vmem:[%s657_s20 + $0xb8] sm:$0xff] }
  0x1c   : > { %586 = vst [vmem:[%s690_s26 + $0x10] sm:$0xff] %v518_v49   ;;  %v349_v58 = vsel %vm285_vm7, %v253_v40, %v317_v50  ;;  %vm286_vm8 = vcmp.ge.f32.partialorder %v254_v51, 0.0  ;;  %vm287_vm9 = vcmp.ge.f32.partialorder %v255_v52, 0.0  ;;  %v318_v59 = vmul.f32 0.1, %v254_v51 }
  0x1d   : > { %v523_v61 = vpack.c.bf16 %v349_v58, %v348_v53  ;;  %v319_v62 = vmul.f32 0.1, %v255_v52  ;;  %v257_v63 = vadd.f32 %v662_v1, %v221_v54  ;;  %vm288_vm10 = vcmp.ge.f32.partialorder %v256_v55, 0.0 }
  0x1e   : > { %v350_v2 = vsel %vm286_vm8, %v254_v51, %v318_v59  ;;  %v320_v3 = vmul.f32 0.1, %v256_v55  ;;  %v223_v4 = vmul.f32 %v651_v0, %v187_v56  ;;  %v258_v5 = vadd.f32 %v662_v1, %v222_v57  ;;  %v199_v59 = vld [vmem:[%s657_s20 + $0xc8] sm:$0xff] }
  0x1f   : > { %587 = vst [vmem:[%s690_s26 + $0x18] sm:$0xff] %v523_v61   ;;  %v351_v7 = vsel %vm287_vm9, %v255_v52, %v319_v62  ;;  %vm289_vm11 = vcmp.ge.f32.partialorder %v257_v63, 0.0  ;;  %v321_v8 = vmul.f32 0.1, %v257_v63  ;;  %v224_v9 = vmul.f32 %v651_v0, %v188_v60 }
  0x20   : > { %v528_v11 = vpack.c.bf16 %v351_v7, %v350_v2  ;;  %v352_v12 = vsel %vm288_vm10, %v256_v55, %v320_v3  ;;  %v259_v13 = vadd.f32 %v662_v1, %v223_v4  ;;  %vm290_vm12 = vcmp.ge.f32.partialorder %v258_v5, 0.0  ;;  %v198_v55 = vld [vmem:[%s657_s20 + $0xc0] sm:$0xff]  ;;  %v200_v4 = vld [vmem:[%s657_s20 + $0xd0] sm:$0xff] }
  0x21   : > { %v353_v14 = vsel %vm289_vm11, %v257_v63, %v321_v8  ;;  %v322_v15 = vmul.f32 0.1, %v258_v5  ;;  %v225_v16 = vmul.f32 %v651_v0, %v189_v6  ;;  %v260_v17 = vadd.f32 %v662_v1, %v224_v9  ;;  %v201_v9 = vld [vmem:[%s657_s20 + $0xd8] sm:$0xff] }
  0x22   : > { %588 = vst [vmem:[%s690_s26 + $0x20] sm:$0xff] %v528_v11   ;;  %v533_v20 = vpack.c.bf16 %v353_v14, %v352_v12  ;;  %vm291_vm13 = vcmp.ge.f32.partialorder %v259_v13, 0.0  ;;  %v323_v21 = vmul.f32 0.1, %v259_v13  ;;  %v226_v22 = vmul.f32 %v651_v0, %v190_v10  ;;  %v202_v10 = vld [vmem:[%s657_s20 + $0xe0] sm:$0xff]  ;;  %v203_v11 = vld [vmem:[%s657_s20 + $0xe8] sm:$0xff] }
  0x23   : > { %v354_v23 = vsel %vm290_vm12, %v258_v5, %v322_v15  ;;  %v261_v24 = vadd.f32 %v662_v1, %v225_v16  ;;  %vm292_vm14 = vcmp.ge.f32.partialorder %v260_v17, 0.0  ;;  %v324_v25 = vmul.f32 0.1, %v260_v17 }
  0x24   : > { %589 = vst [vmem:[%s690_s26 + $0x28] sm:$0xff] %v533_v20   ;;  %v355_v27 = vsel %vm291_vm13, %v259_v13, %v323_v21  ;;  %v227_v28 = vmul.f32 %v651_v0, %v191_v18  ;;  %v262_v29 = vadd.f32 %v662_v1, %v226_v22  ;;  %v228_v30 = vmul.f32 %v651_v0, %v192_v19  ;;  %v204_v22 = vld [vmem:[%s657_s20 + $0xf0] sm:$0xff] }
  0x25   : > { %v538_v33 = vpack.c.bf16 %v355_v27, %v354_v23  ;;  %vm293_vm15 = vcmp.ge.f32.partialorder %v261_v24, 0.0  ;;  %v325_v34 = vmul.f32 0.1, %v261_v24  ;;  %v356_v35 = vsel %vm292_vm14, %v260_v17, %v324_v25 }
  0x26   : > { %v263_v36 = vadd.f32 %v662_v1, %v227_v28  ;;  %vm294_vm0 = vcmp.ge.f32.partialorder %v262_v29, 0.0  ;;  %v326_v37 = vmul.f32 0.1, %v262_v29  ;;  %v229_v38 = vmul.f32 %v651_v0, %v193_v26 }
  0x27   : > { %590 = vst [vmem:[%s690_s26 + $0x30] sm:$0xff] %v538_v33   ;;  %v357_v39 = vsel %vm293_vm15, %v261_v24, %v325_v34  ;;  %v264_v40 = vadd.f32 %v662_v1, %v228_v30  ;;  %v230_v41 = vmul.f32 %v651_v0, %v194_v31  ;;  %v231_v42 = vmul.f32 %v651_v0, %v195_v32  ;;  %v205_v32 = vld [vmem:[%s657_s20 + $0xf8] sm:$0xff] }
  0x28   : > { %v543_v45 = vpack.c.bf16 %v357_v39, %v356_v35  ;;  %vm295_vm1 = vcmp.ge.f32.partialorder %v263_v36, 0.0  ;;  %v327_v46 = vmul.f32 0.1, %v263_v36  ;;  %v358_v47 = vsel %vm294_vm0, %v262_v29, %v326_v37 }
  0x29   : > { %v265_v48 = vadd.f32 %v662_v1, %v229_v38  ;;  %vm296_vm2 = vcmp.ge.f32.partialorder %v264_v40, 0.0  ;;  %v328_v49 = vmul.f32 0.1, %v264_v40  ;;  %v266_v50 = vadd.f32 %v662_v1, %v230_v41 }
  0x2a   : > { %591 = vst [vmem:[%s690_s26 + $0x38] sm:$0xff] %v543_v45   ;;  %v359_v51 = vsel %vm295_vm1, %v263_v36, %v327_v46  ;;  %v267_v52 = vadd.f32 %v662_v1, %v231_v42  ;;  %v232_v53 = vmul.f32 %v651_v0, %v196_v43  ;;  %v233_v54 = vmul.f32 %v651_v0, %v197_v44 }
  0x2b   : > { %v548_v56 = vpack.c.bf16 %v359_v51, %v358_v47  ;;  %vm297_vm3 = vcmp.ge.f32.partialorder %v265_v48, 0.0  ;;  %v329_v57 = vmul.f32 0.1, %v265_v48  ;;  %v360_v58 = vsel %vm296_vm2, %v264_v40, %v328_v49 }
  0x2c   : > { %vm298_vm4 = vcmp.ge.f32.partialorder %v266_v50, 0.0  ;;  %vm299_vm5 = vcmp.ge.f32.partialorder %v267_v52, 0.0  ;;  %v330_v60 = vmul.f32 0.1, %v266_v50  ;;  %v331_v61 = vmul.f32 0.1, %v267_v52 }
  0x2d   : > { %592 = vst [vmem:[%s690_s26 + $0x40] sm:$0xff] %v548_v56   ;;  %v361_v62 = vsel %vm297_vm3, %v265_v48, %v329_v57  ;;  %v268_v63 = vadd.f32 %v662_v1, %v232_v53  ;;  %v269_v2 = vadd.f32 %v662_v1, %v233_v54  ;;  %v234_v3 = vmul.f32 %v651_v0, %v198_v55 }
  0x2e   : > { %v553_v5 = vpack.c.bf16 %v361_v62, %v360_v58  ;;  %v362_v6 = vsel %vm298_vm4, %v266_v50, %v330_v60  ;;  %v363_v7 = vsel %vm299_vm5, %v267_v52, %v331_v61  ;;  %v235_v8 = vmul.f32 %v651_v0, %v199_v59 }
  0x2f   : > { %v558_v12 = vpack.c.bf16 %v363_v7, %v362_v6  ;;  %vm300_vm6 = vcmp.ge.f32.partialorder %v268_v63, 0.0  ;;  %vm301_vm7 = vcmp.ge.f32.partialorder %v269_v2, 0.0  ;;  %v332_v13 = vmul.f32 0.1, %v268_v63 }
  0x30   : > { %593 = vst [vmem:[%s690_s26 + $0x48] sm:$0xff] %v553_v5   ;;  %v333_v14 = vmul.f32 0.1, %v269_v2  ;;  %v270_v15 = vadd.f32 %v662_v1, %v234_v3  ;;  %v271_v16 = vadd.f32 %v662_v1, %v235_v8  ;;  %v236_v17 = vmul.f32 %v651_v0, %v200_v4 }
  0x31   : > { %594 = vst [vmem:[%s690_s26 + $0x50] sm:$0xff] %v558_v12   ;;  %v364_v18 = vsel %vm300_vm6, %v268_v63, %v332_v13  ;;  %v237_v19 = vmul.f32 %v651_v0, %v201_v9  ;;  %v238_v20 = vmul.f32 %v651_v0, %v202_v10  ;;  %v239_v21 = vmul.f32 %v651_v0, %v203_v11 }
  0x32   : > { %v365_v23 = vsel %vm301_vm7, %v269_v2, %v333_v14  ;;  %vm302_vm8 = vcmp.ge.f32.partialorder %v270_v15, 0.0  ;;  %vm303_vm9 = vcmp.ge.f32.partialorder %v271_v16, 0.0  ;;  %v334_v24 = vmul.f32 0.1, %v270_v15 }
  0x33   : > { %v563_v25 = vpack.c.bf16 %v365_v23, %v364_v18  ;;  %v335_v26 = vmul.f32 0.1, %v271_v16  ;;  %v272_v27 = vadd.f32 %v662_v1, %v236_v17  ;;  %v273_v28 = vadd.f32 %v662_v1, %v237_v19 }
  0x34   : > { %v366_v29 = vsel %vm302_vm8, %v270_v15, %v334_v24  ;;  %v274_v30 = vadd.f32 %v662_v1, %v238_v20  ;;  %v275_v31 = vadd.f32 %v662_v1, %v239_v21  ;;  %v240_v33 = vmul.f32 %v651_v0, %v204_v22 }
  0x35   : > { %595 = vst [vmem:[%s690_s26 + $0x58] sm:$0xff] %v563_v25   ;;  %v367_v34 = vsel %vm303_vm9, %v271_v16, %v335_v26  ;;  %vm304_vm10 = vcmp.ge.f32.partialorder %v272_v27, 0.0  ;;  %vm305_vm11 = vcmp.ge.f32.partialorder %v273_v28, 0.0  ;;  %v336_v35 = vmul.f32 0.1, %v272_v27 }
  0x36   : > { %v568_v36 = vpack.c.bf16 %v367_v34, %v366_v29  ;;  %v337_v37 = vmul.f32 0.1, %v273_v28  ;;  %vm306_vm12 = vcmp.ge.f32.partialorder %v274_v30, 0.0  ;;  %vm307_vm13 = vcmp.ge.f32.partialorder %v275_v31, 0.0 }
  0x37   : > { %v368_v38 = vsel %vm304_vm10, %v272_v27, %v336_v35  ;;  %v338_v39 = vmul.f32 0.1, %v274_v30  ;;  %v339_v40 = vmul.f32 0.1, %v275_v31  ;;  %v241_v41 = vmul.f32 %v651_v0, %v205_v32 }
  0x38   : > { %596 = vst [vmem:[%s690_s26 + $0x60] sm:$0xff] %v568_v36   ;;  %v369_v42 = vsel %vm305_vm11, %v273_v28, %v337_v37  ;;  %v276_v43 = vadd.f32 %v662_v1, %v240_v33 }
  0x39   : > { %v573_v44 = vpack.c.bf16 %v369_v42, %v368_v38  ;;  %v370_v45 = vsel %vm306_vm12, %v274_v30, %v338_v39  ;;  %v371_v46 = vsel %vm307_vm13, %v275_v31, %v339_v40  ;;  %v277_v47 = vadd.f32 %v662_v1, %v241_v41 }
  0x3a   : > { %v578_v48 = vpack.c.bf16 %v371_v46, %v370_v45  ;;  %vm308_vm14 = vcmp.ge.f32.partialorder %v276_v43, 0.0  ;;  %v340_v49 = vmul.f32 0.1, %v276_v43 }
  0x3b   : > { %597 = vst [vmem:[%s690_s26 + $0x68] sm:$0xff] %v573_v44   ;;  %vm309_vm15 = vcmp.ge.f32.partialorder %v277_v47, 0.0  ;;  %v341_v50 = vmul.f32 0.1, %v277_v47 }
  0x3c   : > { %598 = vst [vmem:[%s690_s26 + $0x70] sm:$0xff] %v578_v48   ;;  %v372_v51 = vsel %vm308_vm14, %v276_v43, %v340_v49 }
  0x3d   : > { %v373_v52 = vsel %vm309_vm15, %v277_v47, %v341_v50 }
  0x3e   : > { %v583_v0 = vpack.c.bf16 %v373_v52, %v372_v51 }
  0x40   : > { %599 = vst [vmem:[%s690_s26 + $0x78] sm:$0xff] %v583_v0  }
  0x41 PF: > { %s13_s12 = sadd.s32 1, %s616_s12  }
  0x42   : > { %p10_p4 = scmp.ge.s32.totalorder %s13_s12, 4  }
  0x44   :  { %12 = sbr.rel (!%p10_p4) target bundleno = 1 (0x1), region = 62 }

// kernel: res_layer_pallas.4
= control target key start
LH: loop header
LB: loop body
LE: loop exit
PB: predicated region body
PF: predicated region fallthrough
CT: control target
= control target key end

     0   :  { %s941_s15 = smov 0   ;;  %s1163_s0 = inlined_call_operand.vmem [shape: bf16[512,128], index: 0, kind: input, shape index: {}]   ;;  %s1164_s1 = inlined_call_operand.vmem [shape: bf16[128,128], index: 1, kind: input, shape index: {}]   ;;  %s1165_s2 = inlined_call_operand.vmem [shape: f32[512,128], index: 2, kind: output, shape index: {0}]   ;;  %s1166_s3 = inlined_call_operand.vmem [shape: f32[2,1,128], index: 3, kind: output, shape index: {1}]   ;;  %s1167_s4 = inlined_call_operand.vmem [shape: f32[2,1,128], index: 4, kind: output, shape index: {2}]  }
   0x1 LB: > { %s947_s16 = sadd.s32 4294967295, %s914_s15   ;;  %p749_p0 = scmp.ge.s32.totalorder %s914_s15, 1  ;;  %s914_s15 = sphi %s941_s15, %s15_s15  }
   0x2   : > { %p168_p1 = scmp.lt.s32.totalorder %s914_s15, 3 }
   0x4   : > { %p169_p2 = pnand %p749_p0, %p168_p1 }
   0x5   : > { %s750_s25 = sshll.u32 (!%p169_p2), %s947_s16, 5  ;;  %p212_p4 = scmp.lt.s32.totalorder (!%p169_p2), %s947_s16, 1 }
   0x6   : > { %172 = sbr.rel (%p169_p2) target bundleno = 290 (0x122), region = 28  ;;  %p201_p3 = scmp.lt.s32.totalorder (!%p169_p2), %s750_s25, 63 }
   0xb   : > { %v875_v0 = vld [vmem:[%s1164_s1 + $0x38] sm:$0xff]  ;;  %v874_v1 = vld [vmem:[%s1164_s1 + $0x30] sm:$0xff]  ;;  %v873_v2 = vld [vmem:[%s1164_s1 + $0x28] sm:$0xff]  ;;  %s1169_s25 = smov (!%p201_p3, %s750_s25), 63  ;;  %s1171_s16 = smov (!%p212_p4, %s947_s16), 1 }
   0xc   : > { %410 = vmatpush.bf16.msra.mxu0 %v875_v0  ;;  %876 = vmatpush.bf16.msra.mxu1 %v875_v0  ;;  %v872_v3 = vld [vmem:[%s1164_s1 + $0x20] sm:$0xff]  ;;  %v871_v4 = vld [vmem:[%s1164_s1 + $0x18] sm:$0xff]  ;;  %v870_v5 = vld [vmem:[%s1164_s1 + $0x10] sm:$0xff]  ;;  %s751_s6 = sshll.u32 %s1169_s25, 2  ;;  %s753_s12 = sshll.u32 %s1169_s25, 3 }
   0xd   : > { %877 = vmatpush.bf16.msra.mxu2 %v875_v0  ;;  %878 = vmatpush.bf16.msra.mxu3 %v875_v0  ;;  %v869_v6 = vld [vmem:[%s1164_s1 + $0x8] sm:$0xff]  ;;  %v868_v7 = vld [vmem:[%s1164_s1] sm:$0xff]  ;;  %s982_s11 = scalar_lea.vmem %s1163_s0, %s751_s6  ;;  %s1004_s17 = scalar_lea.vmem %s1165_s2, %s753_s12 }
   0xe   : > { %v852_v8 = vld [vmem:[%s982_s11] sm:$0xff]  ;;  %v853_v12 = vld [vmem:[%s982_s11 + $0x8] sm:$0xff]  ;;  %v854_v16 = vld [vmem:[%s982_s11 + $0x10] sm:$0xff]  ;;  %s214_s20 = scalar_lea.vmem %s1166_s3, %s1171_s16  ;;  %s217_s23 = scalar_lea.vmem %s1167_s4, %s1171_s16 }
   0xf   : > { %v856_v9 = vld [vmem:[%s982_s11 + $0x20] sm:$0xff]  ;;  %v857_v13 = vld [vmem:[%s982_s11 + $0x28] sm:$0xff]  ;;  %v858_v17 = vld [vmem:[%s982_s11 + $0x30] sm:$0xff] }
  0x10   : > { %411 = vmatpush.bf16.msra.mxu0 %v874_v1  ;;  %879 = vmatpush.bf16.msra.mxu1 %v874_v1  ;;  %v860_v10 = vld [vmem:[%s982_s11 + $0x40] sm:$0xff]  ;;  %v861_v14 = vld [vmem:[%s982_s11 + $0x48] sm:$0xff]  ;;  %v862_v18 = vld [vmem:[%s982_s11 + $0x50] sm:$0xff] }
  0x11   : > { %880 = vmatpush.bf16.msra.mxu2 %v874_v1  ;;  %881 = vmatpush.bf16.msra.mxu3 %v874_v1  ;;  %v864_v11 = vld [vmem:[%s982_s11 + $0x60] sm:$0xff]  ;;  %v865_v15 = vld [vmem:[%s982_s11 + $0x68] sm:$0xff]  ;;  %v866_v19 = vld [vmem:[%s982_s11 + $0x70] sm:$0xff] }
  0x12   : > { %v855_v20 = vld [vmem:[%s982_s11 + $0x18] sm:$0xff] }
  0x13   : > { %v859_v21 = vld [vmem:[%s982_s11 + $0x38] sm:$0xff] }
  0x14   : > { %412 = vmatpush.bf16.msra.mxu0 %v873_v2  ;;  %882 = vmatpush.bf16.msra.mxu1 %v873_v2  ;;  %v863_v22 = vld [vmem:[%s982_s11 + $0x58] sm:$0xff] }
  0x15   : > { %883 = vmatpush.bf16.msra.mxu2 %v873_v2  ;;  %884 = vmatpush.bf16.msra.mxu3 %v873_v2  ;;  %v867_v23 = vld [vmem:[%s982_s11 + $0x78] sm:$0xff] }
  0x18   : > { %413 = vmatpush.bf16.msra.mxu0 %v872_v3  ;;  %885 = vmatpush.bf16.msra.mxu1 %v872_v3 }
  0x19   : > { %886 = vmatpush.bf16.msra.mxu2 %v872_v3  ;;  %887 = vmatpush.bf16.msra.mxu3 %v872_v3 }
  0x1c   : > { %414 = vmatpush.bf16.msra.mxu0 %v871_v4  ;;  %888 = vmatpush.bf16.msra.mxu1 %v871_v4 }
  0x1d   : > { %889 = vmatpush.bf16.msra.mxu2 %v871_v4  ;;  %890 = vmatpush.bf16.msra.mxu3 %v871_v4 }
  0x20   : > { %415 = vmatpush.bf16.msra.mxu0 %v870_v5  ;;  %891 = vmatpush.bf16.msra.mxu1 %v870_v5 }
  0x21   : > { %892 = vmatpush.bf16.msra.mxu2 %v870_v5  ;;  %893 = vmatpush.bf16.msra.mxu3 %v870_v5 }
  0x24   : > { %416 = vmatpush.bf16.msra.mxu0 %v869_v6  ;;  %894 = vmatpush.bf16.msra.mxu1 %v869_v6 }
  0x25   : > { %895 = vmatpush.bf16.msra.mxu2 %v869_v6  ;;  %896 = vmatpush.bf16.msra.mxu3 %v869_v6 }
  0x28   : > { %417 = vmatpush.bf16.msra.mxu0 %v868_v7  ;;  %897 = vmatpush.bf16.msra.mxu1 %v868_v7 }
  0x29   : > { %898 = vmatpush.bf16.msra.mxu2 %v868_v7  ;;  %899 = vmatpush.bf16.msra.mxu3 %v868_v7 }
  0x2b   : > { %418 = vmatmul.bf16.vlgmr.msra.gmra.mxu0 %v852_v8  ;;  %438 = vmatmul.bf16.vlgmr.msra.gmra.mxu1 %v856_v9 }
  0x2c   : > { %458 = vmatmul.bf16.vlgmr.msra.gmra.mxu2 %v860_v10  ;;  %478 = vmatmul.bf16.vlgmr.msra.gmra.mxu3 %v864_v11 }
  0x3b   : > { %423 = vmatmul.bf16.gmra.mxu0 %v853_v12  ;;  %443 = vmatmul.bf16.gmra.mxu1 %v857_v13 }
  0x3c   : > { %463 = vmatmul.bf16.gmra.mxu2 %v861_v14  ;;  %483 = vmatmul.bf16.gmra.mxu3 %v865_v15 }
  0x4b   : > { %428 = vmatmul.bf16.gmra.mxu0 %v854_v16  ;;  %448 = vmatmul.bf16.gmra.mxu1 %v858_v17 }
  0x4c   : > { %468 = vmatmul.bf16.gmra.mxu2 %v862_v18  ;;  %488 = vmatmul.bf16.gmra.mxu3 %v866_v19 }
  0x5b   : > { %433 = vmatmul.bf16.gmra.mxu0 %v855_v20  ;;  %453 = vmatmul.bf16.gmra.mxu1 %v859_v21 }
  0x5c   : > { %473 = vmatmul.bf16.gmra.mxu2 %v863_v22  ;;  %493 = vmatmul.bf16.gmra.mxu3 %v867_v23 }
  0xa8   : > { %v419_v24 = vpop.f32.mrf.mxu0  ;;  %v1006_v25 = vpop.f32.mrf.mxu1 }
  0xa9   : > { %499 = vst [vmem:[%s1004_s17] sm:$0xff] %v419_v24  ;;  %v569_v47 = vmul.f32 %v419_v24, %v419_v24  ;;  %v577_v11 = vmul.f32 %v1006_v25, %v1006_v25 }
  0xaa   : > { %507 = vst [vmem:[%s1004_s17 + $0x40] sm:$0xff] %v1006_v25 }
  0xaf   : > { %v1011_v26 = vpop.f32.mrf.mxu2  ;;  %v1018_v29 = vpop.f32.mrf.mxu3 }
  0xb0   : > { %v421_v27 = vpop.f32.mrf.mxu0  ;;  %v1013_v28 = vpop.f32.mrf.mxu1  ;;  %515 = vst [vmem:[%s1004_s17 + $0x80] sm:$0xff] %v1011_v26 }
  0xb1   : > { %500 = vst [vmem:[%s1004_s17 + $0x8] sm:$0xff] %v421_v27  ;;  %v570_v46 = vmul.f32 %v421_v27, %v421_v27  ;;  %v531_v48 = vadd.f32 %v421_v27, %v419_v24  ;;  %v578_v14 = vmul.f32 %v1013_v28, %v1013_v28 }
  0xb2   : > { %508 = vst [vmem:[%s1004_s17 + $0x48] sm:$0xff] %v1013_v28 }
  0xb3   : > { %523 = vst [vmem:[%s1004_s17 + $0xc0] sm:$0xff] %v1018_v29  ;;  %v601_v50 = vadd.f32 %v570_v46, %v569_v47 }
  0xb7   : > { %v1024_v30 = vpop.f32.mrf.mxu2  ;;  %v1031_v33 = vpop.f32.mrf.mxu3 }
  0xb8   : > { %v424_v31 = vpop.f32.mrf.mxu0  ;;  %v1026_v32 = vpop.f32.mrf.mxu1  ;;  %516 = vst [vmem:[%s1004_s17 + $0x88] sm:$0xff] %v1024_v30 }
  0xb9   : > { %501 = vst [vmem:[%s1004_s17 + $0x10] sm:$0xff] %v424_v31  ;;  %v571_v49 = vmul.f32 %v424_v31, %v424_v31  ;;  %v532_v51 = vadd.f32 %v531_v48, %v424_v31  ;;  %v579_v17 = vmul.f32 %v1026_v32, %v1026_v32 }
  0xba   : > { %509 = vst [vmem:[%s1004_s17 + $0x50] sm:$0xff] %v1026_v32 }
  0xbb   : > { %524 = vst [vmem:[%s1004_s17 + $0xc8] sm:$0xff] %v1031_v33  ;;  %v602_v56 = vadd.f32 %v601_v50, %v571_v49  ;;  %v585_v49 = vmul.f32 %v1011_v26, %v1011_v26 }
  0xbf   : > { %v1037_v34 = vpop.f32.mrf.mxu2  ;;  %v1044_v37 = vpop.f32.mrf.mxu3 }
  0xc0   : > { %v426_v35 = vpop.f32.mrf.mxu0  ;;  %v1039_v36 = vpop.f32.mrf.mxu1  ;;  %517 = vst [vmem:[%s1004_s17 + $0x90] sm:$0xff] %v1037_v34 }
  0xc1   : > { %502 = vst [vmem:[%s1004_s17 + $0x18] sm:$0xff] %v426_v35  ;;  %v572_v52 = vmul.f32 %v426_v35, %v426_v35  ;;  %v533_v57 = vadd.f32 %v532_v51, %v426_v35  ;;  %v580_v21 = vmul.f32 %v1039_v36, %v1039_v36 }
  0xc2   : > { %510 = vst [vmem:[%s1004_s17 + $0x58] sm:$0xff] %v1039_v36 }
  0xc3   : > { %525 = vst [vmem:[%s1004_s17 + $0xd0] sm:$0xff] %v1044_v37  ;;  %v603_v60 = vadd.f32 %v602_v56, %v572_v52 }
  0xc7   : > { %v1050_v38 = vpop.f32.mrf.mxu2  ;;  %v1057_v41 = vpop.f32.mrf.mxu3 }
  0xc8   : > { %v429_v39 = vpop.f32.mrf.mxu0  ;;  %v1052_v40 = vpop.f32.mrf.mxu1  ;;  %518 = vst [vmem:[%s1004_s17 + $0x98] sm:$0xff] %v1050_v38 }
  0xc9   : > { %503 = vst [vmem:[%s1004_s17 + $0x20] sm:$0xff] %v429_v39  ;;  %v573_v58 = vmul.f32 %v429_v39, %v429_v39  ;;  %v534_v61 = vadd.f32 %v533_v57, %v429_v39  ;;  %v588_v57 = vmul.f32 %v1050_v38, %v1050_v38 }
  0xca   : > { %511 = vst [vmem:[%s1004_s17 + $0x60] sm:$0xff] %v1052_v40 }
  0xcb   : > { %526 = vst [vmem:[%s1004_s17 + $0xd8] sm:$0xff] %v1057_v41  ;;  %v604_v63 = vadd.f32 %v603_v60, %v573_v58 }
  0xcf   : > { %v1063_v42 = vpop.f32.mrf.mxu2  ;;  %v1070_v45 = vpop.f32.mrf.mxu3 }
  0xd0   : > { %v431_v43 = vpop.f32.mrf.mxu0  ;;  %v1065_v44 = vpop.f32.mrf.mxu1  ;;  %519 = vst [vmem:[%s1004_s17 + $0xa0] sm:$0xff] %v1063_v42 }
  0xd1   : > { %504 = vst [vmem:[%s1004_s17 + $0x28] sm:$0xff] %v431_v43  ;;  %v574_v62 = vmul.f32 %v431_v43, %v431_v43  ;;  %v535_v0 = vadd.f32 %v534_v61, %v431_v43  ;;  %v582_v31 = vmul.f32 %v1065_v44, %v1065_v44 }
  0xd2   : > { %512 = vst [vmem:[%s1004_s17 + $0x68] sm:$0xff] %v1065_v44 }
  0xd3   : > { %527 = vst [vmem:[%s1004_s17 + $0xe0] sm:$0xff] %v1070_v45  ;;  %v605_v2 = vadd.f32 %v604_v63, %v574_v62 }
  0xd7   : > { %v1076_v53 = vpop.f32.mrf.mxu2  ;;  %v1081_v59 = vpop.f32.mrf.mxu3 }
  0xd8   : > { %v434_v54 = vpop.f32.mrf.mxu0  ;;  %v454_v55 = vpop.f32.mrf.mxu1  ;;  %520 = vst [vmem:[%s1004_s17 + $0xa8] sm:$0xff] %v1076_v53  ;;  %v590_v63 = vmul.f32 %v1076_v53, %v1076_v53 }
  0xd9   : > { %505 = vst [vmem:[%s1004_s17 + $0x30] sm:$0xff] %v434_v54  ;;  %v575_v1 = vmul.f32 %v434_v54, %v434_v54  ;;  %v536_v3 = vadd.f32 %v535_v0, %v434_v54  ;;  %v583_v43 = vmul.f32 %v454_v55, %v454_v55 }
  0xda   : > { %513 = vst [vmem:[%s1004_s17 + $0x70] sm:$0xff] %v454_v55 }
  0xdb   : > { %528 = vst [vmem:[%s1004_s17 + $0xe8] sm:$0xff] %v1081_v59  ;;  %v606_v7 = vadd.f32 %v605_v2, %v575_v1 }
  0xdf   : > { %v474_v4 = vpop.f32.mrf.mxu2  ;;  %v1088_v10 = vpop.f32.mrf.mxu3 }
  0xe0   : > { %v436_v5 = vpop.f32.mrf.mxu0  ;;  %v456_v6 = vpop.f32.mrf.mxu1  ;;  %521 = vst [vmem:[%s1004_s17 + $0xb0] sm:$0xff] %v474_v4  ;;  %v591_v2 = vmul.f32 %v474_v4, %v474_v4 }
  0xe1   : > { %506 = vst [vmem:[%s1004_s17 + $0x38] sm:$0xff] %v436_v5  ;;  %v537_v8 = vadd.f32 %v536_v3, %v436_v5  ;;  %v576_v9 = vmul.f32 %v436_v5, %v436_v5 }
  0xe2   : > { %514 = vst [vmem:[%s1004_s17 + $0x78] sm:$0xff] %v456_v6 }
  0xe3   : > { %v538_v12 = vadd.f32 %v537_v8, %v1006_v25  ;;  %v607_v13 = vadd.f32 %v606_v7, %v576_v9  ;;  %529 = vst [vmem:[%s1004_s17 + $0xf0] sm:$0xff] %v1088_v10  ;;  %v581_v25 = vmul.f32 %v1052_v40, %v1052_v40 }
  0xe5   : > { %v539_v15 = vadd.f32 %v538_v12, %v1013_v28  ;;  %v608_v16 = vadd.f32 %v607_v13, %v577_v11  ;;  %v596_v13 = vmul.f32 %v1057_v41, %v1057_v41 }
  0xe7   : > { %v540_v18 = vadd.f32 %v539_v15, %v1026_v32  ;;  %v609_v19 = vadd.f32 %v608_v16, %v578_v14  ;;  %v476_v20 = vpop.f32.mrf.mxu2  ;;  %v496_v24 = vpop.f32.mrf.mxu3  ;;  %v597_v15 = vmul.f32 %v1070_v45, %v1070_v45 }
  0xe8   : > { %522 = vst [vmem:[%s1004_s17 + $0xb8] sm:$0xff] %v476_v20 }
  0xe9   : > { %v610_v22 = vadd.f32 %v609_v19, %v579_v17  ;;  %v541_v23 = vadd.f32 %v540_v18, %v1039_v36  ;;  %530 = vst [vmem:[%s1004_s17 + $0xf8] sm:$0xff] %v496_v24  ;;  %v584_v36 = vmul.f32 %v456_v6, %v456_v6 }
  0xeb   : > { %v542_v27 = vadd.f32 %v541_v23, %v1052_v40  ;;  %v611_v28 = vadd.f32 %v610_v22, %v580_v21  ;;  %v586_v40 = vmul.f32 %v1024_v30, %v1024_v30  ;;  %v599_v21 = vmul.f32 %v1088_v10, %v1088_v10 }
  0xec   : > { %v600_v23 = vmul.f32 %v496_v24, %v496_v24 }
  0xed   : > { %v543_v32 = vadd.f32 %v542_v27, %v1065_v44  ;;  %v612_v35 = vadd.f32 %v611_v28, %v581_v25  ;;  %v587_v44 = vmul.f32 %v1037_v34, %v1037_v34 }
  0xef   : > { %v544_v39 = vadd.f32 %v543_v32, %v454_v55  ;;  %v613_v46 = vadd.f32 %v612_v35, %v582_v31 }
  0xf1   : > { %v614_v47 = vadd.f32 %v613_v46, %v583_v43  ;;  %v545_v48 = vadd.f32 %v544_v39, %v456_v6  ;;  %v592_v6 = vmul.f32 %v476_v20, %v476_v20 }
  0xf3   : > { %v546_v50 = vadd.f32 %v545_v48, %v1011_v26  ;;  %v615_v51 = vadd.f32 %v614_v47, %v584_v36  ;;  %v589_v26 = vmul.f32 %v1063_v42, %v1063_v42 }
  0xf5   : > { %v547_v52 = vadd.f32 %v546_v50, %v1024_v30  ;;  %v616_v54 = vadd.f32 %v615_v51, %v585_v49 }
  0xf7   : > { %v548_v55 = vadd.f32 %v547_v52, %v1037_v34  ;;  %v617_v56 = vadd.f32 %v616_v54, %v586_v40 }
  0xf9   : > { %v618_v58 = vadd.f32 %v617_v56, %v587_v44  ;;  %v549_v60 = vadd.f32 %v548_v55, %v1050_v38  ;;  %v593_v38 = vmul.f32 %v1018_v29, %v1018_v29 }
  0xfb   : > { %v550_v61 = vadd.f32 %v549_v60, %v1063_v42  ;;  %v619_v62 = vadd.f32 %v618_v58, %v588_v57  ;;  %v594_v42 = vmul.f32 %v1031_v33, %v1031_v33 }
  0xfd   : > { %v551_v30 = vadd.f32 %v550_v61, %v1076_v53  ;;  %v620_v0 = vadd.f32 %v619_v62, %v589_v26  ;;  %v595_v53 = vmul.f32 %v1044_v37, %v1044_v37 }
  0xff   : > { %v621_v34 = vadd.f32 %v620_v0, %v590_v63  ;;  %v552_v1 = vadd.f32 %v551_v30, %v474_v4 }
 0x101   : > { %v622_v3 = vadd.f32 %v621_v34, %v591_v2  ;;  %v553_v5 = vadd.f32 %v552_v1, %v476_v20 }
 0x103   : > { %v554_v7 = vadd.f32 %v553_v5, %v1018_v29  ;;  %v623_v8 = vadd.f32 %v622_v3, %v592_v6 }
 0x105   : > { %v555_v9 = vadd.f32 %v554_v7, %v1031_v33  ;;  %v624_v11 = vadd.f32 %v623_v8, %v593_v38 }
 0x107   : > { %v556_v4 = vadd.f32 %v555_v9, %v1044_v37  ;;  %v625_v12 = vadd.f32 %v624_v11, %v594_v42  ;;  %v598_v37 = vmul.f32 %v1081_v59, %v1081_v59 }
 0x109   : > { %v626_v14 = vadd.f32 %v625_v12, %v595_v53  ;;  %v557_v29 = vadd.f32 %v556_v4, %v1057_v41 }
 0x10b   : > { %v558_v16 = vadd.f32 %v557_v29, %v1070_v45  ;;  %v627_v33 = vadd.f32 %v626_v14, %v596_v13 }
 0x10d   : > { %v559_v17 = vadd.f32 %v558_v16, %v1081_v59  ;;  %v628_v18 = vadd.f32 %v627_v33, %v597_v15 }
 0x10f   : > { %v629_v19 = vadd.f32 %v628_v18, %v598_v37  ;;  %v560_v20 = vadd.f32 %v559_v17, %v1088_v10 }
 0x111   : > { %v630_v41 = vadd.f32 %v629_v19, %v599_v21  ;;  %v561_v22 = vadd.f32 %v560_v20, %v496_v24 }
 0x113   : > { %v562_v25 = vrot.slane %v561_v22, 4  ;;  %v631_v27 = vadd.f32 %v630_v41, %v600_v23 }
 0x115   : > { %v563_v45 = vadd.f32 %v562_v25, %v561_v22  ;;  %v632_v28 = vrot.slane %v631_v27, 4 }
 0x117   : > { %v564_v31 = vrot.slane %v563_v45, 2  ;;  %v633_v32 = vadd.f32 %v632_v28, %v631_v27 }
 0x119   : > { %v565_v35 = vadd.f32 %v564_v31, %v563_v45  ;;  %v634_v59 = vrot.slane %v633_v32, 2 }
 0x11b   : > { %v566_v39 = vrot.slane %v565_v35, 1  ;;  %v635_v43 = vadd.f32 %v634_v59, %v633_v32 }
 0x11d   : > { %v567_v10 = vadd.f32 %v566_v39, %v565_v35  ;;  %v636_v46 = vrot.slane %v635_v43, 1 }
 0x11f   : > { %568 = vst [vmem:[%s214_s20] sm:$0x1] %v567_v10  ;;  %v637_v24 = vadd.f32 %v636_v46, %v635_v43 }
 0x121   : > { %638 = vst [vmem:[%s217_s23] sm:$0x1] %v637_v24 }
 0x122 PF: > { %s15_s15 = sadd.s32 1, %s914_s15  }
 0x123   : > { %p12_p5 = scmp.ge.s32.totalorder %s15_s15, 4  }
 0x125   :  { %14 = sbr.rel (!%p12_p5) target bundleno = 1 (0x1), region = 82 }

// kernel: res_layer_pallas.7
= control target key start
LH: loop header
LB: loop body
LE: loop exit
PB: predicated region body
PF: predicated region fallthrough
CT: control target
= control target key end

     0   :  { %s643_s15 = smov 0   ;;  %s849_s0 = inlined_call_operand.vmem [shape: f32[512,128], index: 0, kind: input, shape index: {}]   ;;  %s850_s1 = inlined_call_operand.vmem [shape: f32[512,128], index: 1, kind: input, shape index: {}]   ;;  %s851_s2 = inlined_call_operand.vmem [shape: f32[1,128], index: 2, kind: input, shape index: {}]   ;;  %s852_s3 = inlined_call_operand.vmem [shape: f32[1,128], index: 3, kind: input, shape index: {}]   ;;  %s853_s4 = inlined_call_operand.vmem [shape: f32[512,128], index: 4, kind: output, shape index: {}]  }
   0x1 LB: > { %s587_s16 = sadd.s32 4294967295, %s616_s15   ;;  %p591_p0 = scmp.ge.s32.totalorder %s616_s15, 1  ;;  %s616_s15 = sphi %s643_s15, %s14_s15  }
   0x2   : > { %p174_p1 = scmp.lt.s32.totalorder %s616_s15, 3 }
   0x4   : > { %p175_p2 = pnand %p591_p0, %p174_p1 }
   0x5   : > { %s592_s17 = sshll.u32 (!%p175_p2), %s587_s16, 5 }
   0x6   : > { %178 = sbr.rel (%p175_p2) target bundleno = 69 (0x45), region = 36  ;;  %p206_p3 = scmp.lt.s32.totalorder (!%p175_p2), %s592_s17, 63 }
   0xb   : > { %s855_s17 = smov (!%p206_p3, %s592_s17), 63  ;;  %v654_v0 = vld [vmem:[%s851_s2] ss:$0 sm:$0xff] }
   0xc   : > { %s656_s20 = sshll.u32 %s855_s17, 3  ;;  %v667_v1 = vld [vmem:[%s852_s3] ss:$0 sm:$0xff] }
   0xd   : > { %s662_s23 = scalar_lea.vmem %s849_s0, %s656_s20  ;;  %s675_s28 = scalar_lea.vmem %s850_s1, %s656_s20 }
   0xe   : > { %v223_v2 = vld [vmem:[%s662_s23] sm:$0xff]  ;;  %v224_v3 = vld [vmem:[%s662_s23 + $0x8] sm:$0xff]  ;;  %v225_v6 = vld [vmem:[%s662_s23 + $0x10] sm:$0xff]  ;;  %s700_s5 = scalar_lea.vmem %s853_s4, %s656_s20 }
   0xf   : > { %v259_v4 = vmul.f32 %v654_v0, %v223_v2  ;;  %v260_v5 = vmul.f32 %v654_v0, %v224_v3  ;;  %v261_v7 = vmul.f32 %v654_v0, %v225_v6  ;;  %v226_v8 = vld [vmem:[%s662_s23 + $0x18] sm:$0xff]  ;;  %v227_v9 = vld [vmem:[%s662_s23 + $0x20] sm:$0xff]  ;;  %v228_v14 = vld [vmem:[%s662_s23 + $0x28] sm:$0xff] }
  0x10   : > { %v262_v12 = vmul.f32 %v654_v0, %v226_v8  ;;  %v263_v13 = vmul.f32 %v654_v0, %v227_v9  ;;  %v423_v15 = vld [vmem:[%s675_s28] sm:$0xff]  ;;  %v424_v16 = vld [vmem:[%s675_s28 + $0x8] sm:$0xff]  ;;  %v264_v18 = vmul.f32 %v654_v0, %v228_v14  ;;  %v229_v19 = vld [vmem:[%s662_s23 + $0x30] sm:$0xff] }
  0x11   : > { %v295_v10 = vadd.f32 %v667_v1, %v259_v4  ;;  %v296_v11 = vadd.f32 %v667_v1, %v260_v5  ;;  %v297_v17 = vadd.f32 %v667_v1, %v261_v7  ;;  %v425_v23 = vld [vmem:[%s675_s28 + $0x10] sm:$0xff]  ;;  %v265_v29 = vmul.f32 %v654_v0, %v229_v19  ;;  %v230_v30 = vld [vmem:[%s662_s23 + $0x38] sm:$0xff]  ;;  %v231_v35 = vld [vmem:[%s662_s23 + $0x40] sm:$0xff] }
  0x12   : > { %v298_v24 = vadd.f32 %v667_v1, %v262_v12  ;;  %v299_v25 = vadd.f32 %v667_v1, %v263_v13  ;;  %v300_v28 = vadd.f32 %v667_v1, %v264_v18  ;;  %v426_v34 = vld [vmem:[%s675_s28 + $0x18] sm:$0xff]  ;;  %v232_v36 = vld [vmem:[%s662_s23 + $0x48] sm:$0xff]  ;;  %v427_v40 = vld [vmem:[%s675_s28 + $0x20] sm:$0xff]  ;;  %v266_v44 = vmul.f32 %v654_v0, %v230_v30 }
  0x13   : > { %vm327_vm0 = vcmp.ge.f32.partialorder %v295_v10, 0.0  ;;  %v359_v20 = vmul.f32 0.1, %v295_v10  ;;  %vm328_vm1 = vcmp.ge.f32.partialorder %v296_v11, 0.0  ;;  %v360_v21 = vmul.f32 0.1, %v296_v11 }
  0x14   : > { %vm329_vm2 = vcmp.ge.f32.partialorder %v297_v17, 0.0  ;;  %v361_v22 = vmul.f32 0.1, %v297_v17  ;;  %vm330_vm3 = vcmp.ge.f32.partialorder %v298_v24, 0.0  ;;  %v362_v38 = vmul.f32 0.1, %v298_v24 }
  0x15   : > { %v391_v26 = vsel %vm327_vm0, %v295_v10, %v359_v20  ;;  %v392_v27 = vsel %vm328_vm1, %v296_v11, %v360_v21  ;;  %vm331_vm4 = vcmp.ge.f32.partialorder %v299_v25, 0.0  ;;  %v363_v39 = vmul.f32 0.1, %v299_v25  ;;  %v428_v42 = vld [vmem:[%s675_s28 + $0x28] sm:$0xff]  ;;  %v233_v49 = vld [vmem:[%s662_s23 + $0x50] sm:$0xff]  ;;  %v234_v50 = vld [vmem:[%s662_s23 + $0x58] sm:$0xff] }
  0x16   : > { %v455_v31 = vadd.f32 %v423_v15, %v391_v26  ;;  %v456_v32 = vadd.f32 %v424_v16, %v392_v27  ;;  %v393_v33 = vsel %vm329_vm2, %v297_v17, %v361_v22  ;;  %vm332_vm5 = vcmp.ge.f32.partialorder %v300_v28, 0.0  ;;  %v235_v51 = vld [vmem:[%s662_s23 + $0x60] sm:$0xff]  ;;  %v429_v57 = vld [vmem:[%s675_s28 + $0x30] sm:$0xff]  ;;  %v430_v60 = vld [vmem:[%s675_s28 + $0x38] sm:$0xff] }
  0x17   : > { %v457_v37 = vadd.f32 %v425_v23, %v393_v33  ;;  %v364_v41 = vmul.f32 0.1, %v300_v28  ;;  %v301_v43 = vadd.f32 %v667_v1, %v265_v29  ;;  %v394_v45 = vsel %vm330_vm3, %v298_v24, %v362_v38  ;;  %v431_v61 = vld [vmem:[%s675_s28 + $0x40] sm:$0xff]  ;;  %v432_v63 = vld [vmem:[%s675_s28 + $0x48] sm:$0xff]  ;;  %v237_v19 = vld [vmem:[%s662_s23 + $0x70] sm:$0xff] }
  0x18   : > { %487 = vst [vmem:[%s700_s5] sm:$0xff] %v455_v31  ;;  %v395_v46 = vsel %vm331_vm4, %v299_v25, %v363_v39  ;;  %v267_v47 = vmul.f32 %v654_v0, %v231_v35  ;;  %v268_v48 = vmul.f32 %v654_v0, %v232_v36  ;;  %v458_v52 = vadd.f32 %v426_v34, %v394_v45  ;;  %v236_v7 = vld [vmem:[%s662_s23 + $0x68] sm:$0xff]  ;;  %v238_v20 = vld [vmem:[%s662_s23 + $0x78] sm:$0xff]  ;;  %v433_v24 = vld [vmem:[%s675_s28 + $0x50] sm:$0xff] }
  0x19   : > { %488 = vst [vmem:[%s700_s5 + $0x8] sm:$0xff] %v456_v32  ;;  %v459_v53 = vadd.f32 %v427_v40, %v395_v46  ;;  %v396_v54 = vsel %vm332_vm5, %v300_v28, %v364_v41  ;;  %vm333_vm6 = vcmp.ge.f32.partialorder %v301_v43, 0.0  ;;  %v365_v56 = vmul.f32 0.1, %v301_v43  ;;  %v434_v26 = vld [vmem:[%s675_s28 + $0x58] sm:$0xff]  ;;  %v435_v30 = vld [vmem:[%s675_s28 + $0x60] sm:$0xff] }
  0x1a   : > { %489 = vst [vmem:[%s700_s5 + $0x10] sm:$0xff] %v457_v37  ;;  %v460_v55 = vadd.f32 %v428_v42, %v396_v54  ;;  %v302_v58 = vadd.f32 %v667_v1, %v266_v44  ;;  %v303_v59 = vadd.f32 %v667_v1, %v267_v47  ;;  %v304_v62 = vadd.f32 %v667_v1, %v268_v48  ;;  %v239_v33 = vld [vmem:[%s662_s23 + $0x80] sm:$0xff]  ;;  %v240_v34 = vld [vmem:[%s662_s23 + $0x88] sm:$0xff]  ;;  %v242_v48 = vld [vmem:[%s662_s23 + $0x98] sm:$0xff] }
  0x1b   : > { %490 = vst [vmem:[%s700_s5 + $0x18] sm:$0xff] %v458_v52  ;;  %v269_v2 = vmul.f32 %v654_v0, %v233_v49  ;;  %v270_v3 = vmul.f32 %v654_v0, %v234_v50  ;;  %v271_v4 = vmul.f32 %v654_v0, %v235_v51  ;;  %v397_v5 = vsel %vm333_vm6, %v301_v43, %v365_v56  ;;  %v436_v38 = vld [vmem:[%s675_s28 + $0x68] sm:$0xff]  ;;  %v241_v43 = vld [vmem:[%s662_s23 + $0x90] sm:$0xff]  ;;  %v243_v49 = vld [vmem:[%s662_s23 + $0xa0] sm:$0xff] }
  0x1c   : > { %491 = vst [vmem:[%s700_s5 + $0x20] sm:$0xff] %v459_v53  ;;  %vm334_vm7 = vcmp.ge.f32.partialorder %v302_v58, 0.0  ;;  %v366_v6 = vmul.f32 0.1, %v302_v58  ;;  %vm335_vm8 = vcmp.ge.f32.partialorder %v303_v59, 0.0  ;;  %v461_v8 = vadd.f32 %v429_v57, %v397_v5  ;;  %v244_v50 = vld [vmem:[%s662_s23 + $0xa8] sm:$0xff] }
  0x1d   : > { %492 = vst [vmem:[%s700_s5 + $0x28] sm:$0xff] %v460_v55  ;;  %v367_v9 = vmul.f32 0.1, %v303_v59  ;;  %vm336_vm9 = vcmp.ge.f32.partialorder %v304_v62, 0.0  ;;  %v368_v10 = vmul.f32 0.1, %v304_v62  ;;  %v305_v12 = vadd.f32 %v667_v1, %v269_v2 }
  0x1e   : > { %v398_v11 = vsel %vm334_vm7, %v302_v58, %v366_v6  ;;  %v306_v13 = vadd.f32 %v667_v1, %v270_v3  ;;  %v307_v14 = vadd.f32 %v667_v1, %v271_v4  ;;  %493 = vst [vmem:[%s700_s5 + $0x30] sm:$0xff] %v461_v8  ;;  %v272_v18 = vmul.f32 %v654_v0, %v236_v7  ;;  %v437_v53 = vld [vmem:[%s675_s28 + $0x70] sm:$0xff]  ;;  %v438_v55 = vld [vmem:[%s675_s28 + $0x78] sm:$0xff]  ;;  %v439_v4 = vld [vmem:[%s675_s28 + $0x80] sm:$0xff] }
  0x1f   : > { %v462_v15 = vadd.f32 %v430_v60, %v398_v11  ;;  %v399_v16 = vsel %vm335_vm8, %v303_v59, %v367_v9  ;;  %v400_v17 = vsel %vm336_vm9, %v304_v62, %v368_v10  ;;  %vm337_vm10 = vcmp.ge.f32.partialorder %v305_v12, 0.0  ;;  %v440_v7 = vld [vmem:[%s675_s28 + $0x88] sm:$0xff]  ;;  %v441_v10 = vld [vmem:[%s675_s28 + $0x90] sm:$0xff] }
  0x20   : > { %v463_v21 = vadd.f32 %v431_v61, %v399_v16  ;;  %v464_v22 = vadd.f32 %v432_v63, %v400_v17  ;;  %v369_v23 = vmul.f32 0.1, %v305_v12  ;;  %vm338_vm11 = vcmp.ge.f32.partialorder %v306_v13, 0.0 }
  0x21   : > { %494 = vst [vmem:[%s700_s5 + $0x38] sm:$0xff] %v462_v15  ;;  %v370_v25 = vmul.f32 0.1, %v306_v13  ;;  %vm339_vm12 = vcmp.ge.f32.partialorder %v307_v14, 0.0  ;;  %v308_v27 = vadd.f32 %v667_v1, %v272_v18  ;;  %v371_v29 = vmul.f32 0.1, %v307_v14 }
  0x22   : > { %495 = vst [vmem:[%s700_s5 + $0x40] sm:$0xff] %v463_v21  ;;  %v401_v28 = vsel %vm337_vm10, %v305_v12, %v369_v23  ;;  %v273_v31 = vmul.f32 %v654_v0, %v237_v19  ;;  %v274_v32 = vmul.f32 %v654_v0, %v238_v20  ;;  %v275_v46 = vmul.f32 %v654_v0, %v239_v33  ;;  %v442_v12 = vld [vmem:[%s675_s28 + $0x98] sm:$0xff]  ;;  %v443_v18 = vld [vmem:[%s675_s28 + $0xa0] sm:$0xff]  ;;  %v245_v19 = vld [vmem:[%s662_s23 + $0xb0] sm:$0xff] }
  0x23   : > { %496 = vst [vmem:[%s700_s5 + $0x48] sm:$0xff] %v464_v22  ;;  %v465_v35 = vadd.f32 %v433_v24, %v401_v28  ;;  %v402_v36 = vsel %vm338_vm11, %v306_v13, %v370_v25  ;;  %vm340_vm13 = vcmp.ge.f32.partialorder %v308_v27, 0.0  ;;  %v372_v37 = vmul.f32 0.1, %v308_v27  ;;  %v246_v20 = vld [vmem:[%s662_s23 + $0xb8] sm:$0xff]  ;;  %v444_v23 = vld [vmem:[%s675_s28 + $0xa8] sm:$0xff] }
  0x24   : > { %v466_v39 = vadd.f32 %v434_v26, %v402_v36  ;;  %v403_v40 = vsel %vm339_vm12, %v307_v14, %v371_v29  ;;  %v309_v41 = vadd.f32 %v667_v1, %v273_v31  ;;  %v310_v42 = vadd.f32 %v667_v1, %v274_v32  ;;  %v247_v24 = vld [vmem:[%s662_s23 + $0xc0] sm:$0xff]  ;;  %v248_v32 = vld [vmem:[%s662_s23 + $0xc8] sm:$0xff]  ;;  %v249_v33 = vld [vmem:[%s662_s23 + $0xd0] sm:$0xff] }
  0x25   : > { %497 = vst [vmem:[%s700_s5 + $0x50] sm:$0xff] %v465_v35  ;;  %v467_v44 = vadd.f32 %v435_v30, %v403_v40  ;;  %v404_v45 = vsel %vm340_vm13, %v308_v27, %v372_v37  ;;  %v276_v47 = vmul.f32 %v654_v0, %v240_v34  ;;  %v311_v56 = vadd.f32 %v667_v1, %v275_v46  ;;  %v250_v34 = vld [vmem:[%s662_s23 + $0xd8] sm:$0xff] }
  0x26   : > { %498 = vst [vmem:[%s700_s5 + $0x58] sm:$0xff] %v466_v39  ;;  %v468_v51 = vadd.f32 %v436_v38, %v404_v45  ;;  %vm341_vm14 = vcmp.ge.f32.partialorder %v309_v41, 0.0  ;;  %v373_v52 = vmul.f32 0.1, %v309_v41  ;;  %vm342_vm15 = vcmp.ge.f32.partialorder %v310_v42, 0.0  ;;  %v251_v39 = vld [vmem:[%s662_s23 + $0xe0] sm:$0xff] }
  0x27   : > { %499 = vst [vmem:[%s700_s5 + $0x60] sm:$0xff] %v467_v44  ;;  %v374_v54 = vmul.f32 0.1, %v310_v42  ;;  %v312_v57 = vadd.f32 %v667_v1, %v276_v47  ;;  %v277_v58 = vmul.f32 %v654_v0, %v241_v43  ;;  %v278_v60 = vmul.f32 %v654_v0, %v242_v48  ;;  %v445_v44 = vld [vmem:[%s675_s28 + $0xb0] sm:$0xff]  ;;  %v446_v45 = vld [vmem:[%s675_s28 + $0xb8] sm:$0xff] }
  0x28   : > { %500 = vst [vmem:[%s700_s5 + $0x68] sm:$0xff] %v468_v51  ;;  %v405_v59 = vsel %vm341_vm14, %v309_v41, %v373_v52  ;;  %v279_v61 = vmul.f32 %v654_v0, %v243_v49  ;;  %v280_v62 = vmul.f32 %v654_v0, %v244_v50  ;;  %vm343_vm0 = vcmp.ge.f32.partialorder %v311_v56, 0.0  ;;  %v447_v51 = vld [vmem:[%s675_s28 + $0xc0] sm:$0xff] }
  0x29   : > { %v469_v63 = vadd.f32 %v437_v53, %v405_v59  ;;  %v406_v2 = vsel %vm342_vm15, %v310_v42, %v374_v54  ;;  %v375_v3 = vmul.f32 0.1, %v311_v56  ;;  %vm344_vm1 = vcmp.ge.f32.partialorder %v312_v57, 0.0 }
  0x2a   : > { %v470_v5 = vadd.f32 %v438_v55, %v406_v2  ;;  %v376_v6 = vmul.f32 0.1, %v312_v57  ;;  %v313_v8 = vadd.f32 %v667_v1, %v277_v58  ;;  %v314_v11 = vadd.f32 %v667_v1, %v278_v60  ;;  %v252_v60 = vld [vmem:[%s662_s23 + $0xe8] sm:$0xff]  ;;  %v253_v2 = vld [vmem:[%s662_s23 + $0xf0] sm:$0xff] }
  0x2b   : > { %501 = vst [vmem:[%s700_s5 + $0x70] sm:$0xff] %v469_v63  ;;  %v407_v9 = vsel %vm343_vm0, %v311_v56, %v375_v3  ;;  %v315_v13 = vadd.f32 %v667_v1, %v279_v61  ;;  %v316_v14 = vadd.f32 %v667_v1, %v280_v62  ;;  %v281_v30 = vmul.f32 %v654_v0, %v245_v19 }
  0x2c   : > { %502 = vst [vmem:[%s700_s5 + $0x78] sm:$0xff] %v470_v5  ;;  %v471_v15 = vadd.f32 %v439_v4, %v407_v9  ;;  %v408_v16 = vsel %vm344_vm1, %v312_v57, %v376_v6  ;;  %vm345_vm2 = vcmp.ge.f32.partialorder %v313_v8, 0.0  ;;  %v377_v17 = vmul.f32 0.1, %v313_v8  ;;  %v448_v6 = vld [vmem:[%s675_s28 + $0xc8] sm:$0xff] }
  0x2d   : > { %v472_v21 = vadd.f32 %v440_v7, %v408_v16  ;;  %vm346_vm3 = vcmp.ge.f32.partialorder %v314_v11, 0.0  ;;  %v378_v22 = vmul.f32 0.1, %v314_v11  ;;  %vm347_vm4 = vcmp.ge.f32.partialorder %v315_v13, 0.0  ;;  %v449_v7 = vld [vmem:[%s675_s28 + $0xd0] sm:$0xff]  ;;  %v254_v16 = vld [vmem:[%s662_s23 + $0xf8] sm:$0xff] }
  0x2e   : > { %503 = vst [vmem:[%s700_s5 + $0x80] sm:$0xff] %v471_v15  ;;  %v409_v25 = vsel %vm345_vm2, %v313_v8, %v377_v17  ;;  %v379_v26 = vmul.f32 0.1, %v315_v13  ;;  %vm348_vm5 = vcmp.ge.f32.partialorder %v316_v14, 0.0  ;;  %v380_v27 = vmul.f32 0.1, %v316_v14 }
  0x2f   : > { %504 = vst [vmem:[%s700_s5 + $0x88] sm:$0xff] %v472_v21  ;;  %v473_v28 = vadd.f32 %v441_v10, %v409_v25  ;;  %v410_v29 = vsel %vm346_vm3, %v314_v11, %v378_v22  ;;  %v282_v31 = vmul.f32 %v654_v0, %v246_v20  ;;  %v283_v38 = vmul.f32 %v654_v0, %v247_v24  ;;  %v450_v8 = vld [vmem:[%s675_s28 + $0xd8] sm:$0xff] }
  0x30   : > { %v474_v35 = vadd.f32 %v442_v12, %v410_v29  ;;  %v411_v36 = vsel %vm347_vm4, %v315_v13, %v379_v26  ;;  %v412_v37 = vsel %vm348_vm5, %v316_v14, %v380_v27  ;;  %v317_v42 = vadd.f32 %v667_v1, %v281_v30  ;;  %v451_v14 = vld [vmem:[%s675_s28 + $0xe0] sm:$0xff]  ;;  %v452_v27 = vld [vmem:[%s675_s28 + $0xe8] sm:$0xff]  ;;  %v453_v30 = vld [vmem:[%s675_s28 + $0xf0] sm:$0xff] }
  0x31   : > { %505 = vst [vmem:[%s700_s5 + $0x90] sm:$0xff] %v473_v28  ;;  %v475_v40 = vadd.f32 %v443_v18, %v411_v36  ;;  %v476_v41 = vadd.f32 %v444_v23, %v412_v37  ;;  %v318_v43 = vadd.f32 %v667_v1, %v282_v31  ;;  %v319_v46 = vadd.f32 %v667_v1, %v283_v38  ;;  %v454_v37 = vld [vmem:[%s675_s28 + $0xf8] sm:$0xff] }
  0x32   : > { %506 = vst [vmem:[%s700_s5 + $0x98] sm:$0xff] %v474_v35  ;;  %v284_v47 = vmul.f32 %v654_v0, %v248_v32  ;;  %v285_v48 = vmul.f32 %v654_v0, %v249_v33  ;;  %v286_v49 = vmul.f32 %v654_v0, %v250_v34  ;;  %vm349_vm6 = vcmp.ge.f32.partialorder %v317_v42, 0.0 }
  0x33   : > { %507 = vst [vmem:[%s700_s5 + $0xa0] sm:$0xff] %v475_v40  ;;  %v381_v50 = vmul.f32 0.1, %v317_v42  ;;  %vm350_vm7 = vcmp.ge.f32.partialorder %v318_v43, 0.0  ;;  %v287_v52 = vmul.f32 %v654_v0, %v251_v39  ;;  %v382_v53 = vmul.f32 0.1, %v318_v43 }
  0x34   : > { %508 = vst [vmem:[%s700_s5 + $0xa8] sm:$0xff] %v476_v41  ;;  %vm351_vm8 = vcmp.ge.f32.partialorder %v319_v46, 0.0  ;;  %v383_v54 = vmul.f32 0.1, %v319_v46  ;;  %v320_v55 = vadd.f32 %v667_v1, %v284_v47  ;;  %v321_v57 = vadd.f32 %v667_v1, %v285_v48 }
  0x35   : > { %v413_v56 = vsel %vm349_vm6, %v317_v42, %v381_v50  ;;  %v322_v58 = vadd.f32 %v667_v1, %v286_v49  ;;  %v323_v59 = vadd.f32 %v667_v1, %v287_v52  ;;  %v414_v62 = vsel %vm350_vm7, %v318_v43, %v382_v53 }
  0x36   : > { %v477_v61 = vadd.f32 %v445_v44, %v413_v56  ;;  %v415_v63 = vsel %vm351_vm8, %v319_v46, %v383_v54  ;;  %vm352_vm9 = vcmp.ge.f32.partialorder %v320_v55, 0.0  ;;  %v478_v3 = vadd.f32 %v446_v45, %v414_v62 }
  0x37   : > { %v479_v4 = vadd.f32 %v447_v51, %v415_v63  ;;  %v384_v5 = vmul.f32 0.1, %v320_v55  ;;  %vm353_vm10 = vcmp.ge.f32.partialorder %v321_v57, 0.0  ;;  %v385_v9 = vmul.f32 0.1, %v321_v57 }
  0x38   : > { %509 = vst [vmem:[%s700_s5 + $0xb0] sm:$0xff] %v477_v61  ;;  %vm354_vm11 = vcmp.ge.f32.partialorder %v322_v58, 0.0  ;;  %v386_v10 = vmul.f32 0.1, %v322_v58  ;;  %v288_v11 = vmul.f32 %v654_v0, %v252_v60  ;;  %vm355_vm12 = vcmp.ge.f32.partialorder %v323_v59, 0.0 }
  0x39   : > { %510 = vst [vmem:[%s700_s5 + $0xb8] sm:$0xff] %v478_v3  ;;  %v416_v12 = vsel %vm352_vm9, %v320_v55, %v384_v5  ;;  %v387_v13 = vmul.f32 0.1, %v323_v59  ;;  %v289_v15 = vmul.f32 %v654_v0, %v253_v2  ;;  %v417_v18 = vsel %vm353_vm10, %v321_v57, %v385_v9 }
  0x3a   : > { %511 = vst [vmem:[%s700_s5 + $0xc0] sm:$0xff] %v479_v4  ;;  %v480_v17 = vadd.f32 %v448_v6, %v416_v12  ;;  %v418_v19 = vsel %vm354_vm11, %v322_v58, %v386_v10  ;;  %v324_v20 = vadd.f32 %v667_v1, %v288_v11  ;;  %v481_v21 = vadd.f32 %v449_v7, %v417_v18 }
  0x3b   : > { %v482_v22 = vadd.f32 %v450_v8, %v418_v19  ;;  %v419_v23 = vsel %vm355_vm12, %v323_v59, %v387_v13  ;;  %v325_v24 = vadd.f32 %v667_v1, %v289_v15  ;;  %v290_v28 = vmul.f32 %v654_v0, %v254_v16 }
  0x3c   : > { %512 = vst [vmem:[%s700_s5 + $0xc8] sm:$0xff] %v480_v17  ;;  %v483_v25 = vadd.f32 %v451_v14, %v419_v23  ;;  %vm356_vm13 = vcmp.ge.f32.partialorder %v324_v20, 0.0  ;;  %v388_v26 = vmul.f32 0.1, %v324_v20 }
  0x3d   : > { %513 = vst [vmem:[%s700_s5 + $0xd0] sm:$0xff] %v481_v21  ;;  %vm357_vm14 = vcmp.ge.f32.partialorder %v325_v24, 0.0  ;;  %v389_v29 = vmul.f32 0.1, %v325_v24  ;;  %v326_v32 = vadd.f32 %v667_v1, %v290_v28 }
  0x3e   : > { %514 = vst [vmem:[%s700_s5 + $0xd8] sm:$0xff] %v482_v22  ;;  %v420_v31 = vsel %vm356_vm13, %v324_v20, %v388_v26 }
  0x3f   : > { %515 = vst [vmem:[%s700_s5 + $0xe0] sm:$0xff] %v483_v25  ;;  %v484_v33 = vadd.f32 %v452_v27, %v420_v31  ;;  %v421_v34 = vsel %vm357_vm14, %v325_v24, %v389_v29  ;;  %vm358_vm15 = vcmp.ge.f32.partialorder %v326_v32, 0.0  ;;  %v390_v36 = vmul.f32 0.1, %v326_v32 }
  0x40   : > { %v485_v35 = vadd.f32 %v453_v30, %v421_v34 }
  0x41   : > { %516 = vst [vmem:[%s700_s5 + $0xe8] sm:$0xff] %v484_v33  ;;  %v422_v0 = vsel %vm358_vm15, %v326_v32, %v390_v36 }
  0x42   : > { %517 = vst [vmem:[%s700_s5 + $0xf0] sm:$0xff] %v485_v35  ;;  %v486_v38 = vadd.f32 %v454_v37, %v422_v0 }
  0x44   : > { %518 = vst [vmem:[%s700_s5 + $0xf8] sm:$0xff] %v486_v38 }
  0x45 PF: > { %s14_s15 = sadd.s32 1, %s616_s15  }
  0x46   : > { %p11_p4 = scmp.ge.s32.totalorder %s14_s15, 4  }
  0x48   :  { %13 = sbr.rel (!%p11_p4) target bundleno = 1 (0x1), region = 69 }

// kernel: res_layer_pallas.6
= control target key start
LH: loop header
LB: loop body
LE: loop exit
PB: predicated region body
PF: predicated region fallthrough
CT: control target
= control target key end

     0   :  { %s4256_s15 = smov 0   ;;  %s4258_s16 = smov 0   ;;  %s5113_s0 = inlined_call_operand.vmem [shape: bf16[2,18,18,128], index: 0, kind: input, shape index: {}]   ;;  %s5114_s1 = inlined_call_operand.vmem [shape: bf16[9,128,128], index: 1, kind: input, shape index: {}]   ;;  %s5115_s2 = inlined_call_operand.vmem [shape: f32[2,256,128], index: 2, kind: output, shape index: {0}]   ;;  %s5116_s3 = inlined_call_operand.vmem [shape: f32[4,1,128], index: 3, kind: output, shape index: {1}]   ;;  %s5117_s4 = inlined_call_operand.vmem [shape: f32[4,1,128], index: 4, kind: output, shape index: {2}]  }
   0x1   :  { %s4260_s17 = smov 0   ;;  %s4262_s18 = smov 0  }
   0x2   :  { %s4264_s19 = smov 0  }
   0x3 LB: > { %s24_s20 = sadd.s32 1, %s4221_s17  ;;  %s27_s21 = sadd.s32 1, %s4225_s18  ;;  %s4229_s19 = sphi %s4264_s19, %s15_s19   ;;  %s4225_s18 = sphi %s4262_s18, %s5125_s18   ;;  %s4221_s17 = sphi %s4260_s17, %s5124_s17   ;;  %s4217_s16 = sphi %s4258_s16, %s5123_s16   ;;  %s4213_s15 = sphi %s4256_s15, %s5122_s15  }
   0x4   : > { %p25_p0 = scmp.ge.s32.totalorder %s24_s20, 2  ;;  %p3349_p1 = scmp.ge.s32.totalorder %s4229_s19, 1 }
   0x5   : > { %p189_p2 = scmp.lt.s32.totalorder %s4229_s19, 5 }
   0x6   : > { %s5127_s20 = smov (%p25_p0, %s24_s20), 0  ;;  %s5129_s21 = smov (!%p25_p0, %s27_s21), %s4225_s18 }
   0x7   : > { %p190_p3 = pnand %p3349_p1, %p189_p2  ;;  %p29_p4 = scmp.ge.s32.totalorder %s5129_s21, 2 }
   0x8   : > { %p229_p5 = scmp.lt.s32.totalorder (!%p190_p3), %s4217_s16, 1  ;;  %s4029_s12 = smul.u32 (!%p190_p3), 96, %s4213_s15 }
   0x9   : > { %s5131_s21 = smov (%p29_p4, %s5129_s21), 0  ;;  %193 = sbr.rel (%p190_p3) target bundleno = 481 (0x1e1), region = 28 }
   0xe   : > { %v4045_v0 = vld [vmem:[%s5114_s1 + $0x38] sm:$0xff]  ;;  %v4044_v1 = vld [vmem:[%s5114_s1 + $0x30] sm:$0xff]  ;;  %v4043_v2 = vld [vmem:[%s5114_s1 + $0x28] sm:$0xff]  ;;  %s4307_s6 = scalar_select %p229_p5, %s4217_s16, 1  ;;  %vm527_vm0 = vsmask.f32 3328 }
   0xf   : > { %4126 = vmatpush.bf16.msra.mxu1 %v4045_v0  ;;  %4127 = vmatpush.bf16.msra.mxu2 %v4045_v0  ;;  %v4042_v3 = vld [vmem:[%s5114_s1 + $0x20] sm:$0xff]  ;;  %v4041_v4 = vld [vmem:[%s5114_s1 + $0x18] sm:$0xff]  ;;  %v4040_v5 = vld [vmem:[%s5114_s1 + $0x10] sm:$0xff]  ;;  %vm528_vm1 = vsmask.f32 7440  ;;  %vm964_vm2 = vcmask 1042432  }
  0x10   : > { %4128 = vmatpush.bf16.msra.mxu3 %v4045_v0  ;;  %422 = vmatpush.bf16.msra.mxu0 %v4045_v0  ;;  %s4150_s9 = smul.u32 216, %s4307_s6  ;;  %v4039_v6 = vld [vmem:[%s5114_s1 + $0x8] sm:$0xff]  ;;  %v4038_v7 = vld [vmem:[%s5114_s1] sm:$0xff]  ;;  %v4061_v8 = vld [vmem:[%s5114_s1 + $0xb8] sm:$0xff]  ;;  %vm965_vm3 = vcmask 1046532   ;;  %s3352_s10 = sshll.u32 %s4307_s6, 5 }
  0x11   : > { %v4053_v9 = vld [vmem:[%s5114_s1 + $0x78] sm:$0xff]  ;;  %v4060_v16 = vld [vmem:[%s5114_s1 + $0xb0] sm:$0xff]  ;;  %v4059_v28 = vld [vmem:[%s5114_s1 + $0xa8] sm:$0xff]  ;;  %s3354_s6 = sshll.u32 %s4217_s16, 1 }
  0x12   : > { %s233_s22 = scalar_lea.vmem %s5113_s0, %s4150_s9  ;;  %v4077_v14 = vld [vmem:[%s5114_s1 + $0xf8] sm:$0xff]  ;;  %v4052_v17 = vld [vmem:[%s5114_s1 + $0x70] sm:$0xff]  ;;  %v4051_v29 = vld [vmem:[%s5114_s1 + $0x68] sm:$0xff]  ;;  %s245_s23 = sadd.s32 %s4213_s15, %s3354_s6 }
  0x13   : > { %4129 = vmatpush.bf16.msra.mxu1 %v4044_v1  ;;  %4130 = vmatpush.bf16.msra.mxu2 %v4044_v1  ;;  %s4323_s25 = scalar_lea.vmem %s233_s22, %s4029_s12  ;;  %v4085_v15 = vld [vmem:[%s5114_s1 + $0x138] sm:$0xff]  ;;  %v4076_v21 = vld [vmem:[%s5114_s1 + $0xf0] sm:$0xff]  ;;  %v4075_v34 = vld [vmem:[%s5114_s1 + $0xe8] sm:$0xff]  ;;  %p246_p7 = scmp.lt.s32.totalorder %s245_s23, 3 }
  0x14   : > { %4131 = vmatpush.bf16.msra.mxu3 %v4044_v1  ;;  %423 = vmatpush.bf16.msra.mxu0 %v4044_v1  ;;  %v4032_v10 = vld [vmem:[%s4323_s25 + $0x18] sm:$0xff]  ;;  %v4034_v11 = vld [vmem:[%s4323_s25 + $0x30] sm:$0xff]  ;;  %v4036_v12 = vld [vmem:[%s4323_s25 + $0x48] sm:$0xff] }
  0x15   : > { %v4030_v13 = vld [vmem:[%s4323_s25] sm:$0xff]  ;;  %v3625_v20 = vld [vmem:[%s4323_s25 + $0xc] sm:$0xf]  ;;  %v4084_v22 = vld [vmem:[%s5114_s1 + $0x130] sm:$0xff]  ;;  %s5135_s23 = smov (!%p246_p7, %s245_s23), 3 }
  0x16   : > { %v503_v18 = vld [vmem:[%s4323_s25] sm:$0xf]  ;;  %v504_v19 = vld [vmem:[%s4323_s25 + $0x4] sm:$0xf]  ;;  %v3626_v27 = vld [vmem:[%s4323_s25 + $0x10] sm:$0xf]  ;;  %s248_s16 = scalar_lea.vmem %s5116_s3, %s5135_s23  ;;  %s255_s28 = scalar_lea.vmem %s5117_s4, %s5135_s23 }
  0x17   : > { %4132 = vmatpush.bf16.msra.mxu1 %v4043_v2  ;;  %4133 = vmatpush.bf16.msra.mxu2 %v4043_v2  ;;  %v531_v23 = vshrl.u32 %v503_v18, 16  ;;  %v534_v24 = vshll.u32 %v503_v18, 16  ;;  %v540_v25 = vshll.u32 %v504_v19, 16  ;;  %v544_v26 = vshrl.u32 %v504_v19, 16  ;;  %v4083_v35 = vld [vmem:[%s5114_s1 + $0x128] sm:$0xff]  ;;  %v4058_v40 = vld [vmem:[%s5114_s1 + $0xa0] sm:$0xff]  ;;  %vm4419_vm4 = vmor %vm527_vm0, %vm528_vm1 }
  0x18   : > { %4134 = vmatpush.bf16.msra.mxu3 %v4043_v2  ;;  %424 = vmatpush.bf16.msra.mxu0 %v4043_v2  ;;  %v1472_v30 = vshrl.u32 %v3625_v20, 16  ;;  %v1475_v31 = vshll.u32 %v3625_v20, 16  ;;  %v1481_v32 = vshll.u32 %v3626_v27, 16  ;;  %v1485_v33 = vshrl.u32 %v3626_v27, 16  ;;  %v4050_v41 = vld [vmem:[%s5114_s1 + $0x60] sm:$0xff]  ;;  %v4057_v56 = vld [vmem:[%s5114_s1 + $0x98] sm:$0xff]  ;;  %vm4425_vm5 = vmor %vm964_vm2, %vm965_vm3 }
  0x19   : > { %v533_v36 = vrot.slane %v531_v23, 4  ;;  %v536_v37 = vrot.slane %v534_v24, 5  ;;  %v4369_v38 = vrot.slane %v540_v25, 5  ;;  %v546_v39 = vrot.slane %v544_v26, 4  ;;  %v505_v42 = vld [vmem:[%s4323_s25 + $0x8] sm:$0x1] }
  0x1a   : > { %v1474_v43 = vrot.slane %v1472_v30, 4  ;;  %v1477_v44 = vrot.slane %v1475_v31, 5  ;;  %v4379_v45 = vld [vmem:[%s4323_s25 + $0x4] sm:$0xf]  ;;  %v4387_v48 = vrot.slane %v1481_v32, 5  ;;  %v1487_v49 = vrot.slane %v1485_v33, 4 }
  0x1b   : > { %4135 = vmatpush.bf16.msra.mxu1 %v4042_v3  ;;  %4136 = vmatpush.bf16.msra.mxu2 %v4042_v3  ;;  %v4074_v46 = vld [vmem:[%s5114_s1 + $0xe0] sm:$0xff]  ;;  %v537_v52 = vor.u32 %v536_v37, %v533_v36  ;;  %v547_v53 = vor.u32 %v546_v39, %v4369_v38  ;;  %v550_v54 = vshll.u32 %v505_v42, 16  ;;  %v3627_v55 = vld [vmem:[%s4323_s25 + $0x14] sm:$0x1]  ;;  %v4049_v57 = vld [vmem:[%s5114_s1 + $0x58] sm:$0xff]  ;;  %v969_v59 = vrot.slane %v4379_v45, 5 }
  0x1c   : > { %4137 = vmatpush.bf16.msra.mxu3 %v4042_v3  ;;  %425 = vmatpush.bf16.msra.mxu0 %v4042_v3  ;;  %v4082_v47 = vld [vmem:[%s5114_s1 + $0x120] sm:$0xff]  ;;  %v1478_v60 = vor.u32 %v1477_v44, %v1474_v43  ;;  %v918_v61 = vld [vmem:[%s4323_s25 + $0x8] sm:$0x1]  ;;  %v4037_v62 = vld [vmem:[%s4323_s25 + $0x54] sm:$0xff]  ;;  %v1488_v0 = vor.u32 %v1487_v49, %v4387_v48  ;;  %v1491_v1 = vshll.u32 %v3627_v55, 16 }
  0x1d   : > { %v4033_v50 = vld [vmem:[%s4323_s25 + $0x24] sm:$0xff]  ;;  %v4035_v51 = vld [vmem:[%s4323_s25 + $0x3c] sm:$0xff]  ;;  %v4031_v63 = vld [vmem:[%s4323_s25 + $0xc] sm:$0xff] }
  0x1e   : > { %v916_v58 = vld [vmem:[%s4323_s25] sm:$0xe]  ;;  %v4073_v2 = vld [vmem:[%s5114_s1 + $0xd8] sm:$0xff]  ;;  %v507_v18 = vld [vmem:[%s4323_s25 + $0x10] sm:$0xf] }
  0x1f   : > { %4138 = vmatpush.bf16.msra.mxu1 %v4041_v4  ;;  %4139 = vmatpush.bf16.msra.mxu2 %v4041_v4  ;;  %v4081_v3 = vld [vmem:[%s5114_s1 + $0x118] sm:$0xff]  ;;  %v4072_v20 = vld [vmem:[%s5114_s1 + $0xd0] sm:$0xff]  ;;  %v4055_v25 = vld [vmem:[%s5114_s1 + $0x88] sm:$0xff]  ;;  %v564_v32 = vshll.u32 %v507_v18, 16  ;;  %v568_v33 = vshrl.u32 %v507_v18, 16 }
  0x20   : > { %4140 = vmatpush.bf16.msra.mxu3 %v4041_v4  ;;  %426 = vmatpush.bf16.msra.mxu0 %v4041_v4  ;;  %v538_v4 = vrot.slane %v537_v52, 4  ;;  %v3628_v19 = vld [vmem:[%s4323_s25 + $0x18] sm:$0xf]  ;;  %v3629_v24 = vld [vmem:[%s4323_s25 + $0x1c] sm:$0xf]  ;;  %v4047_v26 = vld [vmem:[%s5114_s1 + $0x48] sm:$0xff] }
  0x21   : > { %v1499_v36 = vshll.u32 %v3628_v19, 16  ;;  %v1505_v37 = vshll.u32 %v3629_v24, 16  ;;  %v4071_v39 = vld [vmem:[%s5114_s1 + $0xc8] sm:$0xff]  ;;  %v4054_v43 = vld [vmem:[%s5114_s1 + $0x80] sm:$0xff]  ;;  %v508_v52 = vld [vmem:[%s4323_s25 + $0x14] sm:$0x1] }
  0x22   : > { %v4046_v44 = vld [vmem:[%s5114_s1 + $0x40] sm:$0xff]  ;;  %v570_v55 = vrot.slane %v568_v33, 4  ;;  %v4116_v18 = vld [vmem:[%s5114_s1 + $0x1f0] sm:$0xff]  ;;  %v3632_v33 = vld [vmem:[%s4323_s25 + $0x28] sm:$0xf] }
  0x23   : > { %4141 = vmatpush.bf16.msra.mxu1 %v4040_v5  ;;  %4142 = vmatpush.bf16.msra.mxu2 %v4040_v5 }
  0x24   : > { %4143 = vmatpush.bf16.msra.mxu3 %v4040_v5  ;;  %427 = vmatpush.bf16.msra.mxu0 %v4040_v5  ;;  %v548_v5 = vrot.slane %v547_v53, 4 }
  0x27   : > { %4144 = vmatpush.bf16.msra.mxu1 %v4039_v6  ;;  %4145 = vmatpush.bf16.msra.mxu2 %v4039_v6 }
  0x28   : > { %4146 = vmatpush.bf16.msra.mxu3 %v4039_v6  ;;  %428 = vmatpush.bf16.msra.mxu0 %v4039_v6  ;;  %v552_v6 = vrot.slane %v550_v54, 5  ;;  %v4478_v54 = vrot.slane %v564_v32, 5 }
  0x2a   : > { %v553_v23 = vsel %vm4419_vm4, %v548_v5, %v552_v6  ;;  %v571_v6 = vor.u32 %v570_v55, %v4478_v54 }
  0x2b   : > { %4147 = vmatpush.bf16.msra.mxu1 %v4038_v7  ;;  %4148 = vmatpush.bf16.msra.mxu2 %v4038_v7  ;;  %v756_v42 = vunpack.c.l.b16 %v553_v23  ;;  %v510_v23 = vld [vmem:[%s4323_s25 + $0x1c] sm:$0xf] }
  0x2c   : > { %4149 = vmatpush.bf16.msra.mxu3 %v4038_v7  ;;  %429 = vmatpush.bf16.msra.mxu0 %v4038_v7  ;;  %v4056_v7 = vld [vmem:[%s5114_s1 + $0x90] sm:$0xff] }
  0x2e   : > { %440 = vmatmul.bf16.vlgmr.msra.gmra.mxu1 %v4032_v10  ;;  %450 = vmatmul.bf16.vlgmr.msra.gmra.mxu2 %v4034_v11  ;;  %v3471_v10 = vrot.slane %v916_v58, 9  ;;  %v971_v11 = vrot.slane %v969_v59, 4  ;;  %v1501_v58 = vrot.slane %v1499_v36, 5  ;;  %v588_v36 = vshll.u32 %v510_v23, 16 }
  0x2f   : > { %1136 = vmatpush.bf16.msrb.mxu2 %v4061_v8  ;;  %835 = vmatpush.bf16.msrb.mxu1 %v4053_v9  ;;  %v4048_v8 = vld [vmem:[%s5114_s1 + $0x50] sm:$0xff] }
  0x30   : > { %460 = vmatmul.bf16.vlgmr.msra.gmra.mxu3 %v4036_v12  ;;  %430 = vmatmul.bf16.vlgmr.msra.gmra.mxu0 %v4030_v13  ;;  %v972_v12 = vrot.slane %v918_v61, 5  ;;  %v1479_v13 = vrot.slane %v1478_v60, 4  ;;  %v970_v27 = vsel %vm4425_vm5, %v3471_v10, %v969_v59  ;;  %v4483_v59 = vrot.slane %v1505_v37, 5  ;;  %v4070_v61 = vld [vmem:[%s5114_s1 + $0xc0] sm:$0xff] }
  0x31   : > { %1366 = vmatpush.bf16.msrb.mxu3 %v4077_v14  ;;  %1776 = vmatpush.bf16.msrb.mxu0 %v4085_v15  ;;  %v506_v15 = vld [vmem:[%s4323_s25 + $0xc] sm:$0xf]  ;;  %v1056_v45 = vunpack.c.l.b16 %v970_v27  ;;  %v592_v37 = vshrl.u32 %v510_v23, 16 }
  0x32   : > { %v555_v30 = vshrl.u32 %v506_v15, 16  ;;  %v558_v31 = vshll.u32 %v506_v15, 16 }
  0x33   : > { %1137 = vmatpush.bf16.msrb.mxu2 %v4060_v16  ;;  %836 = vmatpush.bf16.msrb.mxu1 %v4052_v17  ;;  %v1489_v16 = vrot.slane %v1488_v0, 4  ;;  %v1493_v17 = vrot.slane %v1491_v1, 5  ;;  %v4117_v1 = vld [vmem:[%s5114_s1 + $0x1f8] sm:$0xff]  ;;  %v594_v55 = vrot.slane %v592_v37, 4  ;;  %v4090_v37 = vld [vmem:[%s5114_s1 + $0x160] sm:$0xff] }
  0x34   : > { %v557_v49 = vrot.slane %v555_v30, 4  ;;  %v560_v53 = vrot.slane %v558_v31, 5 }
  0x35   : > { %1367 = vmatpush.bf16.msrb.mxu3 %v4076_v21  ;;  %1777 = vmatpush.bf16.msrb.mxu0 %v4084_v22  ;;  %v4080_v21 = vld [vmem:[%s5114_s1 + $0x110] sm:$0xff]  ;;  %v543_v22 = vsel %vm4419_vm4, %v538_v4, %v4369_v38  ;;  %v1509_v38 = vshrl.u32 %v3629_v24, 16 }
  0x36   : > { %v561_v5 = vor.u32 %v560_v53, %v557_v49 }
  0x37   : > { %1138 = vmatpush.bf16.msrb.mxu2 %v4059_v28  ;;  %837 = vmatpush.bf16.msrb.mxu1 %v4051_v29  ;;  %v973_v28 = vsel %vm4425_vm5, %v971_v11, %v972_v12  ;;  %v1484_v29 = vsel %vm4419_vm4, %v1479_v13, %v4387_v48  ;;  %v1511_v60 = vrot.slane %v1509_v38, 4  ;;  %v919_v11 = vld [vmem:[%s4323_s25 + $0xc] sm:$0xe]  ;;  %v921_v12 = vld [vmem:[%s4323_s25 + $0x14] sm:$0x1] }
  0x38   : > { %v1696_v48 = vunpack.c.l.b16 %v1484_v29  ;;  %v562_v24 = vrot.slane %v561_v5, 4  ;;  %v979_v29 = vrot.slane %v921_v12, 5  ;;  %v4107_v38 = vld [vmem:[%s5114_s1 + $0x1a8] sm:$0xff] }
  0x39   : > { %1368 = vmatpush.bf16.msrb.mxu3 %v4075_v34  ;;  %1778 = vmatpush.bf16.msrb.mxu0 %v4083_v35  ;;  %v1496_v34 = vshrl.u32 %v3628_v19, 16  ;;  %v1494_v35 = vsel %vm4419_vm4, %v1489_v16, %v1493_v17  ;;  %v1512_v15 = vor.u32 %v1511_v60, %v4483_v59  ;;  %v4108_v17 = vld [vmem:[%s5114_s1 + $0x1b0] sm:$0xff] }
  0x3a   : > { %v4092_v19 = vld [vmem:[%s5114_s1 + $0x170] sm:$0xff] }
  0x3b   : > { %1139 = vmatpush.bf16.msrb.mxu2 %v4058_v40  ;;  %838 = vmatpush.bf16.msrb.mxu1 %v4050_v41  ;;  %v4079_v40 = vld [vmem:[%s5114_s1 + $0x108] sm:$0xff]  ;;  %v755_v41 = vunpack.c.l.b16 %v543_v22  ;;  %v509_v22 = vld [vmem:[%s4323_s25 + $0x18] sm:$0xf]  ;;  %v1513_v31 = vrot.slane %v1512_v15, 4  ;;  %v924_v15 = vld [vmem:[%s4323_s25 + $0x20] sm:$0x1] }
  0x3d   : > { %1369 = vmatpush.bf16.msrb.mxu3 %v4074_v46  ;;  %1779 = vmatpush.bf16.msrb.mxu0 %v4082_v47  ;;  %v1057_v46 = vunpack.c.l.b16 %v973_v28  ;;  %v4109_v47 = vld [vmem:[%s5114_s1 + $0x1b8] sm:$0xff]  ;;  %v771_v0 = vpack.c.b16 %v756_v42, %v755_v41  ;;  %v3631_v28 = vld [vmem:[%s4323_s25 + $0x24] sm:$0xf]  ;;  %v4115_v42 = vld [vmem:[%s5114_s1 + $0x1e8] sm:$0xff] }
  0x3e   : > { %445 = vmatmul.bf16.gmra.mxu1 %v4033_v50  ;;  %455 = vmatmul.bf16.gmra.mxu2 %v4035_v51  ;;  %v1697_v50 = vunpack.c.l.b16 %v1494_v35  ;;  %v4093_v51 = vld [vmem:[%s5114_s1 + $0x178] sm:$0xff]  ;;  %v582_v35 = vshll.u32 %v509_v22, 16  ;;  %v1523_v41 = vshll.u32 %v3631_v28, 16 }
  0x3f   : > { %1140 = vmatpush.bf16.msrb.mxu2 %v4057_v56  ;;  %839 = vmatpush.bf16.msrb.mxu1 %v4049_v57  ;;  %v4481_v56 = vld [vmem:[%s4323_s25 + $0x10] sm:$0xf]  ;;  %v1498_v57 = vrot.slane %v1496_v34, 4  ;;  %v1072_v4 = vpack.c.b16 %v1057_v46, %v1056_v45  ;;  %v579_v34 = vshrl.u32 %v509_v22, 16  ;;  %v1529_v46 = vshll.u32 %v3632_v33, 16 }
  0x40   : > { %465 = vmatmul.bf16.gmra.mxu3 %v4037_v62  ;;  %435 = vmatmul.bf16.gmra.mxu0 %v4031_v63  ;;  %v4078_v62 = vld [vmem:[%s5114_s1 + $0x100] sm:$0xff]  ;;  %v1712_v10 = vpack.c.b16 %v1697_v50, %v1696_v48  ;;  %v584_v53 = vrot.slane %v582_v35, 5 }
  0x41   : > { %1370 = vmatpush.bf16.msrb.mxu3 %v4073_v2  ;;  %1780 = vmatpush.bf16.msrb.mxu0 %v4081_v3  ;;  %v3630_v63 = vld [vmem:[%s4323_s25 + $0x20] sm:$0x1]  ;;  %v4125_v2 = vld [vmem:[%s5114_s1 + $0x238] sm:$0xff]  ;;  %v574_v3 = vshll.u32 %v508_v52, 16  ;;  %v1502_v13 = vor.u32 %v1501_v58, %v1498_v57  ;;  %v581_v52 = vrot.slane %v579_v34, 4 }
  0x42   : > { %v1515_v16 = vshll.u32 %v3630_v63, 16  ;;  %v511_v58 = vld [vmem:[%s4323_s25 + $0x20] sm:$0x1]  ;;  %v923_v63 = vld [vmem:[%s4323_s25 + $0x1c] sm:$0xf] }
  0x43   : > { %1141 = vmatpush.bf16.msrb.mxu2 %v4056_v7  ;;  %840 = vmatpush.bf16.msrb.mxu1 %v4048_v8  ;;  %v976_v7 = vrot.slane %v4481_v56, 5  ;;  %v4062_v8 = vld [vmem:[%s4323_s25 + $0xc] sm:$0xff]  ;;  %v1503_v30 = vrot.slane %v1502_v13, 4  ;;  %v585_v5 = vor.u32 %v584_v53, %v581_v52  ;;  %v922_v13 = vld [vmem:[%s4323_s25 + $0x18] sm:$0xe]  ;;  %v4106_v35 = vld [vmem:[%s5114_s1 + $0x1a0] sm:$0xff] }
  0x44   : > { %v1517_v32 = vrot.slane %v1515_v16, 5 }
  0x45   : > { %1371 = vmatpush.bf16.msrb.mxu3 %v4072_v20  ;;  %1781 = vmatpush.bf16.msrb.mxu0 %v4080_v21  ;;  %v576_v20 = vrot.slane %v574_v3, 5  ;;  %v4124_v21 = vld [vmem:[%s5114_s1 + $0x230] sm:$0xff]  ;;  %v978_v27 = vrot.slane %v976_v7, 4  ;;  %v1508_v50 = vsel %vm4419_vm4, %v1503_v30, %v4483_v59 }
  0x47   : > { %1142 = vmatpush.bf16.msrb.mxu2 %v4055_v25  ;;  %841 = vmatpush.bf16.msrb.mxu1 %v4047_v26  ;;  %v572_v25 = vrot.slane %v571_v6, 4  ;;  %v3472_v26 = vrot.slane %v919_v11, 9  ;;  %v980_v49 = vsel %vm4425_vm5, %v978_v27, %v979_v29  ;;  %v986_v27 = vrot.slane %v924_v15, 5  ;;  %v4064_v15 = vld [vmem:[%s4323_s25 + $0x24] sm:$0xff] }
  0x49   : > { %1372 = vmatpush.bf16.msrb.mxu3 %v4071_v39  ;;  %1782 = vmatpush.bf16.msrb.mxu0 %v4079_v40  ;;  %v4091_v39 = vld [vmem:[%s5114_s1 + $0x168] sm:$0xff]  ;;  %v1520_v40 = vshrl.u32 %v3631_v28, 16  ;;  %v577_v45 = vsel %vm4419_vm4, %v572_v25, %v576_v20  ;;  %v977_v48 = vsel %vm4425_vm5, %v3472_v26, %v976_v7  ;;  %v598_v7 = vshll.u32 %v511_v58, 16  ;;  %v512_v20 = vld [vmem:[%s4323_s25 + $0x24] sm:$0xf] }
  0x4a   : > { %v758_v57 = vunpack.c.l.b16 %v577_v45  ;;  %v1058_v59 = vunpack.c.l.b16 %v977_v48  ;;  %v3473_v25 = vrot.slane %v922_v13, 9  ;;  %v927_v13 = vld [vmem:[%s4323_s25 + $0x2c] sm:$0x1] }
  0x4b   : > { %1143 = vmatpush.bf16.msrb.mxu2 %v4054_v43  ;;  %842 = vmatpush.bf16.msrb.mxu1 %v4046_v44  ;;  %v4123_v43 = vld [vmem:[%s5114_s1 + $0x228] sm:$0xff]  ;;  %v567_v44 = vsel %vm4419_vm4, %v562_v24, %v4478_v54  ;;  %v4546_v54 = vrot.slane %v588_v36, 5  ;;  %v1522_v60 = vrot.slane %v1520_v40, 4  ;;  %v600_v23 = vrot.slane %v598_v7, 5  ;;  %v4114_v36 = vld [vmem:[%s5114_s1 + $0x1e0] sm:$0xff] }
  0x4c   : > { %v757_v56 = vunpack.c.l.b16 %v567_v44  ;;  %v513_v24 = vld [vmem:[%s4323_s25 + $0x28] sm:$0xf]  ;;  %v4122_v40 = vld [vmem:[%s5114_s1 + $0x220] sm:$0xff]  ;;  %v3635_v44 = vld [vmem:[%s4323_s25 + $0x34] sm:$0xf] }
  0x4d   : > { %1373 = vmatpush.bf16.msrb.mxu3 %v4070_v61  ;;  %1783 = vmatpush.bf16.msrb.mxu0 %v4078_v62  ;;  %v1525_v61 = vrot.slane %v1523_v41, 5  ;;  %v1059_v62 = vunpack.c.l.b16 %v980_v49  ;;  %v595_v6 = vor.u32 %v594_v55, %v4546_v54  ;;  %v616_v34 = vshrl.u32 %v513_v24, 16  ;;  %v514_v49 = vld [vmem:[%s4323_s25 + $0x2c] sm:$0x1]  ;;  %v3636_v7 = vld [vmem:[%s4323_s25 + $0x38] sm:$0x1] }
  0x4e   : > { %843 = vmatmul.bf16.vlgmr.msrb.gmra.mxu1 %v771_v0  ;;  %1144 = vmatmul.bf16.vlgmr.msrb.gmra.mxu2 %v1072_v4  ;;  %v4550_v0 = vrot.slane %v1529_v46, 5  ;;  %v3633_v4 = vld [vmem:[%s4323_s25 + $0x2c] sm:$0x1]  ;;  %v772_v11 = vpack.c.b16 %v758_v57, %v757_v56  ;;  %v1557_v55 = vshrl.u32 %v3635_v44, 16 }
  0x4f   : > { %2304 = vmatpush.bf16.msra.mxu2 %v4109_v47  ;;  %2074 = vmatpush.bf16.msra.mxu1 %v4093_v51  ;;  %v1533_v47 = vshrl.u32 %v3632_v33, 16  ;;  %v1518_v51 = vsel %vm4419_vm4, %v1513_v31, %v1517_v32  ;;  %v1073_v12 = vpack.c.b16 %v1059_v62, %v1058_v59  ;;  %v596_v22 = vrot.slane %v595_v6, 4 }
  0x50   : > { %1374 = vmatmul.bf16.vlgmr.msrb.gmra.mxu3 %v4062_v8  ;;  %1784 = vmatmul.bf16.vlgmr.msrb.gmra.mxu0 %v1712_v10  ;;  %v1699_v3 = vunpack.c.l.b16 %v1518_v51  ;;  %v983_v8 = vrot.slane %v923_v63, 5  ;;  %v1526_v10 = vor.u32 %v1525_v61, %v1522_v60  ;;  %v603_v31 = vshrl.u32 %v512_v20, 16  ;;  %v926_v63 = vld [vmem:[%s4323_s25 + $0x28] sm:$0xf] }
  0x51   : > { %2714 = vmatpush.bf16.msra.mxu3 %v4117_v1  ;;  %3012 = vmatpush.bf16.msra.mxu0 %v4125_v2  ;;  %v1535_v1 = vrot.slane %v1533_v47, 4  ;;  %v1698_v2 = vunpack.c.l.b16 %v1508_v50  ;;  %v606_v32 = vshll.u32 %v512_v20, 16  ;;  %v612_v33 = vshll.u32 %v513_v24, 16 }
  0x52   : > { %v985_v26 = vrot.slane %v983_v8, 4  ;;  %v1527_v28 = vrot.slane %v1526_v10, 4  ;;  %v601_v41 = vsel %vm4419_vm4, %v596_v22, %v600_v23  ;;  %v605_v47 = vrot.slane %v603_v31, 4 }
  0x53   : > { %2305 = vmatpush.bf16.msra.mxu2 %v4108_v17  ;;  %2075 = vmatpush.bf16.msra.mxu1 %v4092_v19  ;;  %v1536_v16 = vor.u32 %v1535_v1, %v4550_v0  ;;  %v1539_v17 = vshll.u32 %v3633_v4, 16  ;;  %v1713_v19 = vpack.c.b16 %v1699_v3, %v1698_v2  ;;  %v608_v48 = vrot.slane %v606_v32, 5  ;;  %v4105_v32 = vld [vmem:[%s5114_s1 + $0x198] sm:$0xff] }
  0x54   : > { %v1532_v45 = vsel %vm4419_vm4, %v1527_v28, %v4550_v0  ;;  %v4589_v50 = vrot.slane %v612_v33, 5  ;;  %v618_v51 = vrot.slane %v616_v34, 4  ;;  %v760_v57 = vunpack.c.l.b16 %v601_v41  ;;  %v3638_v28 = vld [vmem:[%s4323_s25 + $0x40] sm:$0xf]  ;;  %v4113_v33 = vld [vmem:[%s5114_s1 + $0x1d8] sm:$0xff] }
  0x55   : > { %2715 = vmatpush.bf16.msra.mxu3 %v4116_v18  ;;  %3013 = vmatpush.bf16.msra.mxu0 %v4124_v21  ;;  %v4063_v18 = vld [vmem:[%s4323_s25 + $0x18] sm:$0xff]  ;;  %v586_v21 = vrot.slane %v585_v5, 4  ;;  %v1537_v29 = vrot.slane %v1536_v16, 4  ;;  %v1541_v30 = vrot.slane %v1539_v17, 5  ;;  %v1700_v61 = vunpack.c.l.b16 %v1532_v45 }
  0x56   : > { %v622_v62 = vshll.u32 %v514_v49, 16  ;;  %v609_v0 = vor.u32 %v608_v48, %v605_v47  ;;  %v619_v1 = vor.u32 %v618_v51, %v4589_v50  ;;  %v1559_v5 = vrot.slane %v1557_v55, 4  ;;  %v4089_v34 = vld [vmem:[%s5114_s1 + $0x158] sm:$0xff] }
  0x57   : > { %2306 = vmatpush.bf16.msra.mxu2 %v4107_v38  ;;  %2076 = vmatpush.bf16.msra.mxu1 %v4091_v39  ;;  %v591_v38 = vsel %vm4419_vm4, %v586_v21, %v4546_v54  ;;  %v3634_v39 = vld [vmem:[%s4323_s25 + $0x30] sm:$0xf]  ;;  %v1542_v46 = vsel %vm4419_vm4, %v1537_v29, %v1541_v30  ;;  %v1553_v54 = vshll.u32 %v3635_v44, 16  ;;  %v990_v6 = vrot.slane %v926_v63, 5 }
  0x58   : > { %v1544_v52 = vshrl.u32 %v3634_v39, 16  ;;  %v1547_v53 = vshll.u32 %v3634_v39, 16  ;;  %v759_v56 = vunpack.c.l.b16 %v591_v38  ;;  %v1701_v59 = vunpack.c.l.b16 %v1542_v46  ;;  %v4121_v39 = vld [vmem:[%s5114_s1 + $0x218] sm:$0xff] }
  0x59   : > { %2716 = vmatpush.bf16.msra.mxu3 %v4115_v42  ;;  %3014 = vmatpush.bf16.msra.mxu0 %v4123_v43  ;;  %v984_v42 = vsel %vm4425_vm5, %v3473_v25, %v983_v8  ;;  %v987_v43 = vsel %vm4425_vm5, %v985_v26, %v986_v27  ;;  %v4593_v4 = vrot.slane %v1553_v54, 5  ;;  %v610_v16 = vrot.slane %v609_v0, 4  ;;  %v515_v25 = vld [vmem:[%s4323_s25 + $0x30] sm:$0xf]  ;;  %v516_v26 = vld [vmem:[%s4323_s25 + $0x34] sm:$0xf] }
  0x5a   : > { %v1060_v58 = vunpack.c.l.b16 %v984_v42  ;;  %v1061_v60 = vunpack.c.l.b16 %v987_v43  ;;  %v1546_v2 = vrot.slane %v1544_v52, 4  ;;  %v1549_v3 = vrot.slane %v1547_v53, 5  ;;  %v3637_v27 = vld [vmem:[%s4323_s25 + $0x3c] sm:$0xf] }
  0x5b   : > { %2307 = vmatpush.bf16.msra.mxu2 %v4106_v35  ;;  %2077 = vmatpush.bf16.msra.mxu1 %v4090_v37  ;;  %v773_v8 = vpack.c.b16 %v760_v57, %v759_v56  ;;  %v620_v17 = vrot.slane %v619_v1, 4  ;;  %v1560_v20 = vor.u32 %v1559_v5, %v4593_v4  ;;  %v1563_v21 = vshll.u32 %v3636_v7, 16  ;;  %v517_v56 = vld [vmem:[%s4323_s25 + $0x38] sm:$0x1] }
  0x5c   : > { %v1074_v10 = vpack.c.b16 %v1061_v60, %v1060_v58  ;;  %v992_v23 = vrot.slane %v990_v6, 4  ;;  %v993_v24 = vrot.slane %v927_v13, 5  ;;  %v615_v29 = vsel %vm4419_vm4, %v610_v16, %v4589_v50  ;;  %v929_v60 = vld [vmem:[%s4323_s25 + $0x34] sm:$0xf] }
  0x5d   : > { %2717 = vmatpush.bf16.msra.mxu3 %v4114_v36  ;;  %3015 = vmatpush.bf16.msra.mxu0 %v4122_v40  ;;  %v1561_v35 = vrot.slane %v1560_v20, 4  ;;  %v1565_v36 = vrot.slane %v1563_v21, 5  ;;  %v627_v37 = vshrl.u32 %v515_v25, 16  ;;  %v630_v38 = vshll.u32 %v515_v25, 16  ;;  %v4065_v16 = vld [vmem:[%s4323_s25 + $0x30] sm:$0xff] }
  0x5e   : > { %848 = vmatmul.bf16.gmra.mxu1 %v772_v11  ;;  %1149 = vmatmul.bf16.gmra.mxu2 %v1073_v12  ;;  %v1714_v11 = vpack.c.b16 %v1701_v59, %v1700_v61  ;;  %v925_v12 = vld [vmem:[%s4323_s25 + $0x24] sm:$0xe]  ;;  %v994_v41 = vsel %vm4425_vm5, %v992_v23, %v993_v24  ;;  %v636_v42 = vshll.u32 %v516_v26, 16  ;;  %v640_v43 = vshrl.u32 %v516_v26, 16  ;;  %v519_v21 = vld [vmem:[%s4323_s25 + $0x40] sm:$0xf] }
  0x5f   : > { %v3474_v22 = vrot.slane %v925_v12, 9  ;;  %2308 = vmatpush.bf16.msra.mxu2 %v4105_v32  ;;  %v1568_v44 = vshrl.u32 %v3637_v27, 16  ;;  %v1571_v45 = vshll.u32 %v3637_v27, 16  ;;  %v1577_v46 = vshll.u32 %v3638_v28, 16  ;;  %2078 = vmatpush.bf16.msra.mxu1 %v4089_v34  ;;  %v4112_v34 = vld [vmem:[%s5114_s1 + $0x1d0] sm:$0xff] }
  0x60   : > { %1379 = vmatmul.bf16.gmra.mxu3 %v4063_v18  ;;  %1789 = vmatmul.bf16.gmra.mxu0 %v1713_v19  ;;  %v624_v18 = vrot.slane %v622_v62, 5  ;;  %v1550_v19 = vor.u32 %v1549_v3, %v1546_v2  ;;  %v1581_v47 = vshrl.u32 %v3638_v28, 16  ;;  %v761_v48 = vunpack.c.l.b16 %v615_v29  ;;  %v3639_v2 = vld [vmem:[%s4323_s25 + $0x44] sm:$0x1] }
  0x61   : > { %v991_v40 = vsel %vm4425_vm5, %v3474_v22, %v990_v6  ;;  %2718 = vmatpush.bf16.msra.mxu3 %v4113_v33  ;;  %3016 = vmatpush.bf16.msra.mxu0 %v4121_v39  ;;  %v1566_v51 = vsel %vm4419_vm4, %v1561_v35, %v1565_v36  ;;  %v629_v52 = vrot.slane %v627_v37, 4  ;;  %v632_v53 = vrot.slane %v630_v38, 5  ;;  %v4104_v33 = vld [vmem:[%s5114_s1 + $0x190] sm:$0xff] }
  0x62   : > { %v625_v30 = vsel %vm4419_vm4, %v620_v17, %v624_v18  ;;  %v1551_v31 = vrot.slane %v1550_v19, 4  ;;  %v1062_v54 = vunpack.c.l.b16 %v991_v40  ;;  %v1063_v55 = vunpack.c.l.b16 %v994_v41  ;;  %v518_v18 = vld [vmem:[%s4323_s25 + $0x3c] sm:$0xf]  ;;  %v4088_v35 = vld [vmem:[%s5114_s1 + $0x150] sm:$0xff]  ;;  %v3640_v40 = vld [vmem:[%s4323_s25 + $0x48] sm:$0xf] }
  0x63   : > { %v762_v49 = vunpack.c.l.b16 %v625_v30  ;;  %v4631_v57 = vrot.slane %v636_v42, 5  ;;  %v642_v58 = vrot.slane %v640_v43, 4  ;;  %v1570_v61 = vrot.slane %v1568_v44, 4  ;;  %v4120_v36 = vld [vmem:[%s5114_s1 + $0x210] sm:$0xff]  ;;  %2309 = vmatpush.bf16.msra.mxu2 %v4104_v33  ;;  %v3641_v41 = vld [vmem:[%s4323_s25 + $0x4c] sm:$0xf]  ;;  %2079 = vmatpush.bf16.msra.mxu1 %v4088_v35 }
  0x64   : > { %v1556_v50 = vsel %vm4419_vm4, %v1551_v31, %v4593_v4  ;;  %v1573_v59 = vrot.slane %v1571_v45, 5  ;;  %v4634_v62 = vrot.slane %v1577_v46, 5  ;;  %v1583_v63 = vrot.slane %v1581_v47, 4  ;;  %v3644_v33 = vld [vmem:[%s4323_s25 + $0x58] sm:$0xf] }
  0x65   : > { %v1702_v0 = vunpack.c.l.b16 %v1556_v50  ;;  %v1703_v1 = vunpack.c.l.b16 %v1566_v51  ;;  %v633_v3 = vor.u32 %v632_v53, %v629_v52  ;;  %v646_v4 = vshll.u32 %v517_v56, 16  ;;  %2719 = vmatpush.bf16.msra.mxu3 %v4112_v34  ;;  %3017 = vmatpush.bf16.msra.mxu0 %v4120_v36 }
  0x66   : > { %v774_v5 = vpack.c.b16 %v762_v49, %v761_v48  ;;  %v643_v6 = vor.u32 %v642_v58, %v4631_v57  ;;  %v997_v7 = vrot.slane %v929_v60, 5  ;;  %v1574_v12 = vor.u32 %v1573_v59, %v1570_v61  ;;  %v520_v49 = vld [vmem:[%s4323_s25 + $0x44] sm:$0x1] }
  0x67   : > { %v1584_v13 = vor.u32 %v1583_v63, %v4634_v62  ;;  %v1715_v17 = vpack.c.b16 %v1703_v1, %v1702_v0  ;;  %v634_v19 = vrot.slane %v633_v3, 4  ;;  %v648_v20 = vrot.slane %v646_v4, 5  ;;  %v932_v63 = vld [vmem:[%s4323_s25 + $0x40] sm:$0xf]  ;;  %v3642_v4 = vld [vmem:[%s4323_s25 + $0x50] sm:$0x1] }
  0x68   : > { %v644_v22 = vrot.slane %v643_v6, 4  ;;  %v999_v24 = vrot.slane %v997_v7, 4  ;;  %v1575_v26 = vrot.slane %v1574_v12, 4  ;;  %v651_v29 = vshrl.u32 %v518_v18, 16  ;;  %v931_v12 = vld [vmem:[%s4323_s25 + $0x3c] sm:$0xe] }
  0x69   : > { %v1585_v27 = vrot.slane %v1584_v13, 4  ;;  %v654_v30 = vshll.u32 %v518_v18, 16  ;;  %v660_v31 = vshll.u32 %v519_v21, 16  ;;  %v664_v32 = vshrl.u32 %v519_v21, 16  ;;  %v521_v21 = vld [vmem:[%s4323_s25 + $0x48] sm:$0xf] }
  0x6a   : > { %v639_v37 = vsel %vm4419_vm4, %v634_v19, %v4631_v57  ;;  %v649_v38 = vsel %vm4419_vm4, %v644_v22, %v648_v20  ;;  %v1580_v43 = vsel %vm4419_vm4, %v1575_v26, %v4634_v62  ;;  %v653_v45 = vrot.slane %v651_v29, 4  ;;  %v522_v22 = vld [vmem:[%s4323_s25 + $0x4c] sm:$0xf] }
  0x6b   : > { %v656_v46 = vrot.slane %v654_v30, 5  ;;  %v4672_v47 = vrot.slane %v660_v31, 5  ;;  %v666_v48 = vrot.slane %v664_v32, 4  ;;  %v1592_v50 = vshrl.u32 %v3640_v40, 16  ;;  %v4103_v26 = vld [vmem:[%s5114_s1 + $0x188] sm:$0xff] }
  0x6c   : > { %v1595_v51 = vshll.u32 %v3640_v40, 16  ;;  %v1601_v52 = vshll.u32 %v3641_v41, 16  ;;  %v1605_v53 = vshrl.u32 %v3641_v41, 16  ;;  %v1704_v58 = vunpack.c.l.b16 %v1580_v43  ;;  %2310 = vmatpush.bf16.msra.mxu2 %v4103_v26  ;;  %v4087_v40 = vld [vmem:[%s5114_s1 + $0x148] sm:$0xff]  ;;  %v4102_v26 = vld [vmem:[%s5114_s1 + $0x180] sm:$0xff] }
  0x6d   : > { %v657_v61 = vor.u32 %v656_v46, %v653_v45  ;;  %v667_v59 = vor.u32 %v666_v48, %v4672_v47  ;;  %v670_v62 = vshll.u32 %v520_v49, 16  ;;  %v1594_v0 = vrot.slane %v1592_v50, 4  ;;  %2080 = vmatpush.bf16.msra.mxu1 %v4087_v40  ;;  %v4119_v49 = vld [vmem:[%s5114_s1 + $0x208] sm:$0xff] }
  0x6e   : > { %853 = vmatmul.bf16.gmra.mxu1 %v773_v8  ;;  %1154 = vmatmul.bf16.gmra.mxu2 %v1074_v10  ;;  %v1075_v8 = vpack.c.b16 %v1063_v55, %v1062_v54  ;;  %v928_v10 = vld [vmem:[%s4323_s25 + $0x30] sm:$0xe]  ;;  %v763_v54 = vunpack.c.l.b16 %v639_v37  ;;  %v764_v55 = vunpack.c.l.b16 %v649_v38  ;;  %v1597_v1 = vrot.slane %v1595_v51, 5 }
  0x6f   : > { %v3475_v23 = vrot.slane %v928_v10, 9  ;;  %v1607_v3 = vrot.slane %v1605_v53, 4  ;;  %v658_v10 = vrot.slane %v657_v61, 4  ;;  %v1004_v13 = vrot.slane %v932_v63, 5  ;;  %3018 = vmatpush.bf16.msra.mxu0 %v4119_v49 }
  0x70   : > { %1384 = vmatmul.bf16.gmra.mxu3 %v4064_v15  ;;  %1794 = vmatmul.bf16.gmra.mxu0 %v1714_v11  ;;  %v930_v11 = vld [vmem:[%s4323_s25 + $0x38] sm:$0x1]  ;;  %v1587_v15 = vshll.u32 %v3639_v2, 16  ;;  %v4677_v2 = vrot.slane %v1601_v52, 5  ;;  %v1611_v19 = vshll.u32 %v3642_v4, 16  ;;  %v3476_v20 = vrot.slane %v931_v12, 9 }
  0x71   : > { %v1000_v25 = vrot.slane %v930_v11, 5  ;;  %v998_v39 = vsel %vm4425_vm5, %v3475_v23, %v997_v7  ;;  %v4066_v7 = vld [vmem:[%s4323_s25 + $0x3c] sm:$0xff]  ;;  %v672_v11 = vrot.slane %v670_v62, 5  ;;  %v663_v23 = vsel %vm4419_vm4, %v658_v10, %v4672_v47  ;;  %v936_v12 = vld [vmem:[%s4323_s25 + $0x50] sm:$0x1]  ;;  %2311 = vmatpush.bf16.msra.mxu2 %v4102_v26 }
  0x72   : > { %v1589_v28 = vrot.slane %v1587_v15, 5  ;;  %v1064_v56 = vunpack.c.l.b16 %v998_v39  ;;  %v668_v15 = vrot.slane %v667_v59, 4  ;;  %v1608_v18 = vor.u32 %v1607_v3, %v4677_v2  ;;  %v935_v59 = vld [vmem:[%s4323_s25 + $0x4c] sm:$0xf] }
  0x73   : > { %v1001_v42 = vsel %vm4425_vm5, %v999_v24, %v1000_v25  ;;  %v1006_v24 = vrot.slane %v1004_v13, 4  ;;  %v1613_v32 = vrot.slane %v1611_v19, 5  ;;  %v675_v34 = vshrl.u32 %v521_v21, 16 }
  0x74   : > { %v1590_v44 = vsel %vm4419_vm4, %v1585_v27, %v1589_v28  ;;  %v1065_v57 = vunpack.c.l.b16 %v1001_v42  ;;  %v3643_v27 = vld [vmem:[%s4323_s25 + $0x54] sm:$0xf]  ;;  %v4111_v28 = vld [vmem:[%s5114_s1 + $0x1c8] sm:$0xff]  ;;  %v673_v29 = vsel %vm4419_vm4, %v668_v15, %v672_v11  ;;  %v1609_v31 = vrot.slane %v1608_v18, 4 }
  0x75   : > { %v1705_v60 = vunpack.c.l.b16 %v1590_v44  ;;  %v678_v35 = vshll.u32 %v521_v21, 16  ;;  %v684_v36 = vshll.u32 %v522_v22, 16  ;;  %v688_v37 = vshrl.u32 %v522_v22, 16  ;;  %2720 = vmatpush.bf16.msra.mxu3 %v4111_v28  ;;  %v934_v11 = vld [vmem:[%s4323_s25 + $0x48] sm:$0xe] }
  0x76   : > { %v1076_v6 = vpack.c.b16 %v1065_v57, %v1064_v56  ;;  %v1616_v38 = vshrl.u32 %v3643_v27, 16  ;;  %v1619_v39 = vshll.u32 %v3643_v27, 16  ;;  %v1005_v41 = vsel %vm4425_vm5, %v3476_v20, %v1004_v13  ;;  %v523_v56 = vld [vmem:[%s4323_s25 + $0x50] sm:$0x1]  ;;  %v4110_v27 = vld [vmem:[%s5114_s1 + $0x1c0] sm:$0xff] }
  0x77   : > { %v1625_v43 = vshll.u32 %v3644_v33, 16  ;;  %v1629_v44 = vshrl.u32 %v3644_v33, 16  ;;  %v765_v45 = vunpack.c.l.b16 %v663_v23  ;;  %v766_v46 = vunpack.c.l.b16 %v673_v29  ;;  %v525_v28 = vld [vmem:[%s4323_s25 + $0x58] sm:$0xf] }
  0x78   : > { %v1614_v48 = vsel %vm4419_vm4, %v1609_v31, %v1613_v32  ;;  %v677_v50 = vrot.slane %v675_v34, 4  ;;  %v680_v51 = vrot.slane %v678_v35, 5  ;;  %v4714_v52 = vrot.slane %v684_v36, 5  ;;  %v3646_v31 = vld [vmem:[%s4323_s25 + $0x60] sm:$0xf] }
  0x79   : > { %v690_v53 = vrot.slane %v688_v37, 4  ;;  %v1618_v57 = vrot.slane %v1616_v38, 4  ;;  %v1707_v61 = vunpack.c.l.b16 %v1614_v48  ;;  %v1627_v62 = vrot.slane %v1625_v43, 5  ;;  %v3647_v32 = vld [vmem:[%s4323_s25 + $0x64] sm:$0xf]  ;;  %2721 = vmatpush.bf16.msra.mxu3 %v4110_v27 }
  0x7a   : > { %v1631_v63 = vrot.slane %v1629_v44, 4  ;;  %v694_v3 = vshll.u32 %v523_v56, 16  ;;  %v776_v4 = vpack.c.b16 %v766_v46, %v765_v45  ;;  %v3477_v19 = vrot.slane %v934_v11, 9  ;;  %v4086_v37 = vld [vmem:[%s5114_s1 + $0x140] sm:$0xff]  ;;  %v937_v11 = vld [vmem:[%s4323_s25 + $0x54] sm:$0xe] }
  0x7b   : > { %v1014_v21 = vrot.slane %v936_v12, 5  ;;  %v708_v40 = vshll.u32 %v525_v28, 16  ;;  %v1643_v43 = vshll.u32 %v3646_v31, 16  ;;  %v1649_v44 = vshll.u32 %v3647_v32, 16  ;;  %2081 = vmatpush.bf16.msra.mxu1 %v4086_v37  ;;  %v4118_v46 = vld [vmem:[%s5114_s1 + $0x200] sm:$0xff] }
  0x7c   : > { %v1632_v13 = vor.u32 %v1631_v63, %v1627_v62  ;;  %v696_v18 = vrot.slane %v694_v3, 5  ;;  %v1653_v45 = vshrl.u32 %v3647_v32, 16  ;;  %3019 = vmatpush.bf16.msra.mxu0 %v4118_v46  ;;  %v3648_v63 = vld [vmem:[%s4323_s25 + $0x68] sm:$0x1]  ;;  %v939_v12 = vld [vmem:[%s4323_s25 + $0x5c] sm:$0x1] }
  0x7d   : > { %v710_v56 = vrot.slane %v708_v40, 5 }
  0x7e   : > { %858 = vmatmul.bf16.gmra.mxu1 %v774_v5  ;;  %1159 = vmatmul.bf16.gmra.mxu2 %v1075_v8  ;;  %v775_v5 = vpack.c.b16 %v764_v55, %v763_v54  ;;  %v1716_v8 = vpack.c.b16 %v1705_v60, %v1704_v58  ;;  %v1066_v54 = vunpack.c.l.b16 %v1005_v41  ;;  %v1621_v58 = vrot.slane %v1619_v39, 5 }
  0x7f   : > { %v1633_v23 = vrot.slane %v1632_v13, 4  ;;  %v712_v41 = vshrl.u32 %v525_v28, 16 }
  0x80   : > { %1389 = vmatmul.bf16.gmra.mxu3 %v4065_v16  ;;  %1799 = vmatmul.bf16.gmra.mxu0 %v1715_v17  ;;  %v933_v16 = vld [vmem:[%s4323_s25 + $0x44] sm:$0x1]  ;;  %v1598_v17 = vor.u32 %v1597_v1, %v1594_v0  ;;  %v3645_v0 = vld [vmem:[%s4323_s25 + $0x5c] sm:$0x1]  ;;  %v681_v1 = vor.u32 %v680_v51, %v677_v50 }
  0x81   : > { %v1007_v25 = vrot.slane %v933_v16, 5  ;;  %v1635_v15 = vshll.u32 %v3645_v0, 16 }
  0x82   : > { %v1599_v30 = vrot.slane %v1598_v17, 4  ;;  %v682_v16 = vrot.slane %v681_v1, 4 }
  0x83   : > { %v1008_v42 = vsel %vm4425_vm5, %v1006_v24, %v1007_v25  ;;  %v1637_v24 = vrot.slane %v1635_v15, 5  ;;  %v524_v25 = vld [vmem:[%s4323_s25 + $0x54] sm:$0xf] }
  0x84   : > { %v1604_v47 = vsel %vm4419_vm4, %v1599_v30, %v4677_v2  ;;  %v1067_v55 = vunpack.c.l.b16 %v1008_v42  ;;  %v691_v2 = vor.u32 %v690_v53, %v4714_v52  ;;  %v687_v29 = vsel %vm4419_vm4, %v682_v16, %v4714_v52 }
  0x85   : > { %v1706_v60 = vunpack.c.l.b16 %v1604_v47  ;;  %v699_v35 = vshrl.u32 %v524_v25, 16  ;;  %v702_v36 = vshll.u32 %v524_v25, 16  ;;  %v1638_v39 = vsel %vm4419_vm4, %v1633_v23, %v1637_v24 }
  0x86   : > { %v692_v17 = vrot.slane %v691_v2, 4  ;;  %v1640_v42 = vshrl.u32 %v3646_v31, 16  ;;  %v767_v47 = vunpack.c.l.b16 %v687_v29  ;;  %v1659_v16 = vshll.u32 %v3648_v63, 16  ;;  %v3699_v63 = vld [vmem:[%s4323_s25 + $0x14] sm:$0x1] }
  0x87   : > { %v1717_v10 = vpack.c.b16 %v1707_v61, %v1706_v60  ;;  %v701_v51 = vrot.slane %v699_v35, 4  ;;  %v704_v52 = vrot.slane %v702_v36, 5  ;;  %v1645_v61 = vrot.slane %v1643_v43, 5 }
  0x88   : > { %v697_v30 = vsel %vm4419_vm4, %v692_v17, %v696_v18  ;;  %v1642_v60 = vrot.slane %v1640_v42, 4  ;;  %v1021_v24 = vrot.slane %v939_v12, 5  ;;  %v1661_v27 = vrot.slane %v1659_v16, 5 }
  0x89   : > { %v768_v48 = vunpack.c.l.b16 %v697_v30  ;;  %v705_v2 = vor.u32 %v704_v52, %v701_v51 }
  0x8a   : > { %v1646_v13 = vor.u32 %v1645_v61, %v1642_v60 }
  0x8b   : > { %v777_v0 = vpack.c.b16 %v768_v48, %v767_v47  ;;  %v706_v17 = vrot.slane %v705_v2, 4 }
  0x8c   : > { %v1647_v25 = vrot.slane %v1646_v13, 4  ;;  %v1910_v13 = vrot.slane %v3699_v63, 5 }
  0x8d   : > { %v711_v35 = vsel %vm4419_vm4, %v706_v17, %v710_v56 }
  0x8e   : > { %863 = vmatmul.bf16.gmra.mxu1 %v775_v5  ;;  %1164 = vmatmul.bf16.gmra.mxu2 %v1076_v6  ;;  %v1077_v5 = vpack.c.b16 %v1067_v55, %v1066_v54  ;;  %v1011_v6 = vrot.slane %v935_v59, 5  ;;  %v1709_v54 = vunpack.c.l.b16 %v1638_v39  ;;  %v526_v55 = vld [vmem:[%s4323_s25 + $0x5c] sm:$0x1]  ;;  %v1651_v59 = vrot.slane %v1649_v44, 5 }
  0x8f   : > { %v718_v3 = vshll.u32 %v526_v55, 16  ;;  %v769_v46 = vunpack.c.l.b16 %v711_v35 }
  0x90   : > { %1394 = vmatmul.bf16.gmra.mxu3 %v4066_v7  ;;  %1804 = vmatmul.bf16.gmra.mxu0 %v1716_v8  ;;  %v1622_v7 = vor.u32 %v1621_v58, %v1618_v57  ;;  %v4067_v8 = vld [vmem:[%s4323_s25 + $0x48] sm:$0xff]  ;;  %v1013_v20 = vrot.slane %v1011_v6, 4  ;;  %v1012_v33 = vsel %vm4425_vm5, %v3477_v19, %v1011_v6  ;;  %v714_v57 = vrot.slane %v712_v41, 4  ;;  %v938_v58 = vld [vmem:[%s4323_s25 + $0x58] sm:$0xf] }
  0x91   : > { %v1068_v49 = vunpack.c.l.b16 %v1012_v33  ;;  %v720_v18 = vrot.slane %v718_v3, 5  ;;  %v3875_v19 = vld [vmem:[%s4323_s25 + $0x18] sm:$0xf]  ;;  %v1652_v40 = vsel %vm4419_vm4, %v1647_v25, %v1651_v59  ;;  %v4069_v3 = vld [vmem:[%s4323_s25 + $0x60] sm:$0xff] }
  0x92   : > { %v1623_v22 = vrot.slane %v1622_v7, 4  ;;  %v1015_v34 = vsel %vm4425_vm5, %v1013_v20, %v1014_v21  ;;  %v715_v7 = vor.u32 %v714_v57, %v710_v56  ;;  %v3876_v20 = vld [vmem:[%s4323_s25 + $0x1c] sm:$0xf]  ;;  %v2410_v29 = vshrl.u32 %v3875_v19, 16  ;;  %v3697_v56 = vld [vmem:[%s4323_s25 + $0xc] sm:$0xe] }
  0x93   : > { %v1069_v50 = vunpack.c.l.b16 %v1015_v34  ;;  %v2413_v30 = vshll.u32 %v3875_v19, 16  ;;  %v2419_v31 = vshll.u32 %v3876_v20, 16  ;;  %v2423_v32 = vshrl.u32 %v3876_v20, 16 }
  0x94   : > { %v1628_v38 = vsel %vm4419_vm4, %v1623_v22, %v1627_v62  ;;  %v1655_v62 = vrot.slane %v1653_v45, 4  ;;  %v716_v21 = vrot.slane %v715_v7, 4  ;;  %v3478_v22 = vrot.slane %v937_v11, 9  ;;  %v3949_v7 = vld [vmem:[%s4323_s25 + $0x20] sm:$0x1] }
  0x95   : > { %v1708_v53 = vunpack.c.l.b16 %v1628_v38  ;;  %v1078_v1 = vpack.c.b16 %v1069_v50, %v1068_v49  ;;  %v2412_v42 = vrot.slane %v2410_v29, 4  ;;  %v2415_v43 = vrot.slane %v2413_v30, 5  ;;  %v3698_v50 = vld [vmem:[%s4323_s25 + $0x10] sm:$0xf] }
  0x96   : > { %v1656_v15 = vor.u32 %v1655_v62, %v1651_v59  ;;  %v721_v36 = vsel %vm4419_vm4, %v716_v21, %v720_v18  ;;  %v2421_v44 = vrot.slane %v2419_v31, 5  ;;  %v2425_v45 = vrot.slane %v2423_v32, 4  ;;  %v3878_v21 = vld [vmem:[%s4323_s25 + $0x24] sm:$0xf] }
  0x97   : > { %v1718_v6 = vpack.c.b16 %v1709_v54, %v1708_v53  ;;  %v770_v47 = vunpack.c.l.b16 %v721_v36  ;;  %v1710_v51 = vunpack.c.l.b16 %v1652_v40  ;;  %v3877_v53 = vld [vmem:[%s4323_s25 + $0x20] sm:$0x1]  ;;  %v3948_v54 = vld [vmem:[%s4323_s25 + $0x1c] sm:$0xf]  ;;  %v1907_v57 = vrot.slane %v3698_v50, 5 }
  0x98   : > { %v1657_v26 = vrot.slane %v1656_v15, 4  ;;  %v2426_v60 = vor.u32 %v2425_v45, %v2421_v44  ;;  %v3721_v11 = vrot.slane %v3697_v56, 9  ;;  %v2848_v20 = vrot.slane %v3949_v7, 5 }
  0x99   : > { %v778_v59 = vpack.c.b16 %v770_v47, %v769_v46  ;;  %v1909_v12 = vrot.slane %v1907_v57, 4  ;;  %v2434_v35 = vshrl.u32 %v3878_v21, 16  ;;  %v2437_v36 = vshll.u32 %v3878_v21, 16  ;;  %v3701_v47 = vld [vmem:[%s4323_s25 + $0x1c] sm:$0xf] }
  0x9a   : > { %v1662_v41 = vsel %vm4419_vm4, %v1657_v26, %v1661_v27  ;;  %v2427_v16 = vrot.slane %v2426_v60, 4 }
  0x9b   : > { %v1711_v52 = vunpack.c.l.b16 %v1662_v41  ;;  %v1911_v25 = vsel %vm4425_vm5, %v1909_v12, %v1910_v13  ;;  %v3950_v13 = vld [vmem:[%s4323_s25 + $0x24] sm:$0xe] }
  0x9e   : > { %868 = vmatmul.bf16.gmra.mxu1 %v776_v4  ;;  %1169 = vmatmul.bf16.gmra.mxu2 %v1077_v5  ;;  %v4068_v5 = vld [vmem:[%s4323_s25 + $0x54] sm:$0xff] }
  0xa0   : > { %1399 = vmatmul.bf16.gmra.mxu3 %v4067_v8  ;;  %1809 = vmatmul.bf16.gmra.mxu0 %v1717_v10  ;;  %v1018_v8 = vrot.slane %v938_v58, 5  ;;  %v2416_v58 = vor.u32 %v2415_v43, %v2412_v42  ;;  %v1995_v42 = vunpack.c.l.b16 %v1911_v25  ;;  %v3972_v25 = vrot.slane %v3950_v13, 9 }
  0xa2   : > { %v1020_v23 = vrot.slane %v1018_v8, 4  ;;  %v1019_v37 = vsel %vm4425_vm5, %v3478_v22, %v1018_v8  ;;  %v2417_v15 = vrot.slane %v2416_v58, 4  ;;  %v3879_v22 = vld [vmem:[%s4323_s25 + $0x28] sm:$0xf]  ;;  %v4094_v58 = vld [vmem:[%s4323_s25 + $0x18] sm:$0xff] }
  0xa3   : > { %v1070_v48 = vunpack.c.l.b16 %v1019_v37  ;;  %v2443_v37 = vshll.u32 %v3879_v22, 16 }
  0xa4   : > { %v1022_v38 = vsel %vm4425_vm5, %v1020_v23, %v1021_v24  ;;  %v1908_v24 = vsel %vm4425_vm5, %v3721_v11, %v1907_v57  ;;  %v2422_v27 = vsel %vm4419_vm4, %v2417_v15, %v2421_v44  ;;  %v3702_v11 = vld [vmem:[%s4323_s25 + $0x20] sm:$0x1]  ;;  %v3952_v15 = vld [vmem:[%s4323_s25 + $0x2c] sm:$0x1] }
  0xa5   : > { %v1071_v49 = vunpack.c.l.b16 %v1022_v38  ;;  %v2447_v38 = vshrl.u32 %v3879_v22, 16  ;;  %v1994_v41 = vunpack.c.l.b16 %v1908_v24  ;;  %v2634_v43 = vunpack.c.l.b16 %v2422_v27 }
  0xa6   : > { %v4823_v50 = vrot.slane %v2443_v37, 5 }
  0xa7   : > { %v1079_v62 = vpack.c.b16 %v1071_v49, %v1070_v48  ;;  %v2436_v48 = vrot.slane %v2434_v35, 4  ;;  %v2439_v49 = vrot.slane %v2437_v36, 5  ;;  %v2010_v57 = vpack.c.b16 %v1995_v42, %v1994_v41 }
  0xab   : > { %v4755_v4 = vpop.f32.mrf.mxu1 }
  0xad   : > { %v4758_v10 = vpop.f32.mrf.mxu0 }
  0xae   : > { %873 = vmatmul.bf16.gmra.mxu1 %v777_v0  ;;  %1174 = vmatmul.bf16.gmra.mxu2 %v1078_v1  ;;  %v2429_v0 = vshll.u32 %v3877_v53, 16  ;;  %v2845_v1 = vrot.slane %v3948_v54, 5  ;;  %v3951_v54 = vld [vmem:[%s4323_s25 + $0x28] sm:$0xf] }
  0xaf   : > { %v2852_v12 = vrot.slane %v3951_v54, 5 }
  0xb0   : > { %1404 = vmatmul.bf16.gmra.mxu3 %v4068_v5  ;;  %1814 = vmatmul.bf16.gmra.mxu0 %v1718_v6  ;;  %v1719_v5 = vpack.c.b16 %v1711_v52, %v1710_v51  ;;  %v3947_v6 = vld [vmem:[%s4323_s25 + $0x18] sm:$0xe]  ;;  %v2431_v17 = vrot.slane %v2429_v0, 5  ;;  %v2847_v19 = vrot.slane %v2845_v1, 4  ;;  %v2449_v51 = vrot.slane %v2447_v38, 4 }
  0xb1   : > { %v4764_v28 = vpop.f32.mrf.mxu2  ;;  %v3971_v18 = vrot.slane %v3947_v6, 9  ;;  %v3880_v52 = vld [vmem:[%s4323_s25 + $0x2c] sm:$0x1]  ;;  %v3700_v0 = vld [vmem:[%s4323_s25 + $0x18] sm:$0xe]  ;;  %v2854_v27 = vrot.slane %v2852_v12, 4 }
  0xb2   : > { %v2432_v29 = vsel %vm4419_vm4, %v2427_v16, %v2431_v17  ;;  %v2849_v31 = vsel %vm4425_vm5, %v2847_v19, %v2848_v20  ;;  %v3722_v16 = vrot.slane %v3700_v0, 9  ;;  %v3882_v19 = vld [vmem:[%s4323_s25 + $0x34] sm:$0xf]  ;;  %v1917_v20 = vrot.slane %v3702_v11, 5 }
  0xb3   : > { %v4766_v33 = vpop.f32.mrf.mxu3  ;;  %v4768_v34 = vpop.f32.mrf.mxu1  ;;  %v2846_v30 = vsel %vm4425_vm5, %v3971_v18, %v2845_v1  ;;  %v2635_v44 = vunpack.c.l.b16 %v2432_v29  ;;  %v2933_v46 = vunpack.c.l.b16 %v2849_v31  ;;  %v2440_v1 = vor.u32 %v2439_v49, %v2436_v48  ;;  %v3881_v18 = vld [vmem:[%s4323_s25 + $0x30] sm:$0xf] }
  0xb4   : > { %v2932_v45 = vunpack.c.l.b16 %v2846_v30  ;;  %v2458_v30 = vshrl.u32 %v3881_v18, 16  ;;  %v2461_v31 = vshll.u32 %v3881_v18, 16  ;;  %v2467_v35 = vshll.u32 %v3882_v19, 16 }
  0xb5   : > { %v4778_v39 = vpop.f32.mrf.mxu0  ;;  %v2650_v60 = vpack.c.b16 %v2635_v44, %v2634_v43  ;;  %v2441_v21 = vrot.slane %v2440_v1, 4  ;;  %v2471_v36 = vshrl.u32 %v3882_v19, 16  ;;  %v2853_v49 = vsel %vm4425_vm5, %v3972_v25, %v2852_v12  ;;  %v3703_v12 = vld [vmem:[%s4323_s25 + $0x24] sm:$0xe] }
  0xb6   : > { %v2948_v63 = vpack.c.b16 %v2933_v46, %v2932_v45  ;;  %v2460_v54 = vrot.slane %v2458_v30, 4  ;;  %v2934_v1 = vunpack.c.l.b16 %v2853_v49 }
  0xb7   : > { %v2446_v44 = vsel %vm4419_vm4, %v2441_v21, %v4823_v50 }
  0xb9   : > { %v4787_v55 = vpop.f32.mrf.mxu2 }
  0xbb   : > { %v4790_v61 = vpop.f32.mrf.mxu3  ;;  %v4793_v2 = vpop.f32.mrf.mxu1 }
  0xbd   : > { %v4798_v8 = vpop.f32.mrf.mxu0 }
  0xbe   : > { %878 = vmatmul.bf16.gmra.mxu1 %v778_v59  ;;  %1179 = vmatmul.bf16.gmra.mxu2 %v1079_v62  ;;  %v1914_v59 = vrot.slane %v3701_v47, 5 }
  0xc0   : > { %1409 = vmatmul.bf16.gmra.mxu3 %v4069_v3  ;;  %1819 = vmatmul.bf16.gmra.mxu0 %v1719_v5  ;;  %v2450_v3 = vor.u32 %v2449_v51, %v4823_v50  ;;  %v2453_v5 = vshll.u32 %v3880_v52, 16  ;;  %v1916_v17 = vrot.slane %v1914_v59, 4  ;;  %v1915_v42 = vsel %vm4425_vm5, %v3722_v16, %v1914_v59  ;;  %v3704_v52 = vld [vmem:[%s4323_s25 + $0x28] sm:$0xf] }
  0xc1   : > { %v4802_v23 = vpop.f32.mrf.mxu2  ;;  %v2473_v50 = vrot.slane %v2471_v36, 4 }
  0xc2   : > { %v2451_v22 = vrot.slane %v2450_v3, 4  ;;  %v2455_v24 = vrot.slane %v2453_v5, 5  ;;  %v1918_v43 = vsel %vm4425_vm5, %v1916_v17, %v1917_v20  ;;  %v3954_v5 = vld [vmem:[%s4323_s25 + $0x34] sm:$0xf]  ;;  %v3705_v20 = vld [vmem:[%s4323_s25 + $0x2c] sm:$0x1] }
  0xc3   : > { %v4808_v26 = vpop.f32.mrf.mxu3  ;;  %v4818_v32 = vpop.f32.mrf.mxu1  ;;  %v1997_v59 = vunpack.c.l.b16 %v1918_v43  ;;  %v2859_v21 = vrot.slane %v3954_v5, 5 }
  0xc4   : > { %v2456_v45 = vsel %vm4419_vm4, %v2451_v22, %v2455_v24 }
  0xc5   : > { %v4820_v40 = vpop.f32.mrf.mxu0  ;;  %v2637_v0 = vunpack.c.l.b16 %v2456_v45 }
  0xc9   : > { %v4826_v53 = vpop.f32.mrf.mxu2 }
  0xcb   : > { %v4829_v56 = vpop.f32.mrf.mxu3  ;;  %v844_v62 = vpop.f32.mrf.mxu1 }
  0xcc   : > { %v884_v6 = vadd.f32 %v844_v62, %v4758_v10  ;;  %v2855_v10 = vrot.slane %v3952_v15, 5  ;;  %v3883_v62 = vld [vmem:[%s4323_s25 + $0x38] sm:$0x1] }
  0xcd   : > { %v1785_v7 = vpop.f32.mrf.mxu0  ;;  %v2477_v16 = vshll.u32 %v3883_v62, 16 }
  0xce   : > { %2082 = vmatmul.bf16.vlgmr.msra.gmra.mxu1 %v2010_v57  ;;  %2312 = vmatmul.bf16.vlgmr.msra.gmra.mxu2 %v4094_v58  ;;  %v2856_v51 = vsel %vm4425_vm5, %v2854_v27, %v2855_v10  ;;  %v2463_v57 = vrot.slane %v2461_v31, 5  ;;  %v4855_v58 = vrot.slane %v2467_v35, 5  ;;  %v3953_v27 = vld [vmem:[%s4323_s25 + $0x30] sm:$0xe]  ;;  %v3955_v10 = vld [vmem:[%s4323_s25 + $0x38] sm:$0x1] }
  0xcf   : > { %v2935_v3 = vunpack.c.l.b16 %v2856_v51  ;;  %v3723_v35 = vrot.slane %v3703_v12, 9  ;;  %v3973_v43 = vrot.slane %v3953_v27, 9  ;;  %v2862_v45 = vrot.slane %v3955_v10, 5 }
  0xd0   : > { %2722 = vmatmul.bf16.vlgmr.msra.gmra.mxu3 %v2650_v60  ;;  %3020 = vmatmul.bf16.vlgmr.msra.gmra.mxu0 %v2948_v63  ;;  %v1996_v60 = vunpack.c.l.b16 %v1915_v42  ;;  %v2636_v63 = vunpack.c.l.b16 %v2446_v44  ;;  %v2464_v13 = vor.u32 %v2463_v57, %v2460_v54  ;;  %v2474_v15 = vor.u32 %v2473_v50, %v4855_v58 }
  0xd1   : > { %v1145_v29 = vpop.f32.mrf.mxu2  ;;  %v2949_v25 = vpack.c.b16 %v2935_v3, %v2934_v1  ;;  %v2479_v42 = vrot.slane %v2477_v16, 5  ;;  %v2861_v44 = vrot.slane %v2859_v21, 4 }
  0xd2   : > { %v1185_v37 = vadd.f32 %v1145_v29, %v884_v6  ;;  %v1921_v6 = vrot.slane %v3704_v52, 5  ;;  %v2011_v19 = vpack.c.b16 %v1997_v59, %v1996_v60  ;;  %v2651_v24 = vpack.c.b16 %v2637_v0, %v2636_v63 }
  0xd3   : > { %v1375_v38 = vpop.f32.mrf.mxu3  ;;  %v846_v41 = vpop.f32.mrf.mxu1  ;;  %v2860_v60 = vsel %vm4425_vm5, %v3973_v43, %v2859_v21  ;;  %v2863_v59 = vsel %vm4425_vm5, %v2861_v44, %v2862_v45 }
  0xd4   : > { %v1415_v46 = vadd.f32 %v1375_v38, %v1185_v37  ;;  %v885_v47 = vadd.f32 %v846_v41, %v4778_v39  ;;  %v1923_v36 = vrot.slane %v1921_v6, 4  ;;  %v1924_v37 = vrot.slane %v3705_v20, 5 }
  0xd5   : > { %v1787_v48 = vpop.f32.mrf.mxu0  ;;  %v2465_v38 = vrot.slane %v2464_v13, 4  ;;  %v2475_v41 = vrot.slane %v2474_v15, 4  ;;  %v1922_v51 = vsel %vm4425_vm5, %v3723_v35, %v1921_v6  ;;  %v2936_v16 = vunpack.c.l.b16 %v2860_v60 }
  0xd6   : > { %v4858_v39 = vadd.f32 %v1785_v7, %v1415_v46  ;;  %v4095_v7 = vld [vmem:[%s4323_s25 + $0x24] sm:$0xff]  ;;  %v1925_v52 = vsel %vm4425_vm5, %v1923_v36, %v1924_v37 }
  0xd7   : > { %v2470_v54 = vsel %vm4419_vm4, %v2465_v38, %v4855_v58  ;;  %v1999_v12 = vunpack.c.l.b16 %v1925_v52  ;;  %v3706_v38 = vld [vmem:[%s4323_s25 + $0x30] sm:$0xe]  ;;  %v3958_v52 = vld [vmem:[%s4323_s25 + $0x44] sm:$0x1] }
  0xd8   : > { %v2638_v13 = vunpack.c.l.b16 %v2470_v54  ;;  %v3724_v54 = vrot.slane %v3706_v38, 9 }
  0xd9   : > { %v1147_v11 = vpop.f32.mrf.mxu2 }
  0xda   : > { %v1186_v17 = vadd.f32 %v1147_v11, %v885_v47  ;;  %v3884_v47 = vld [vmem:[%s4323_s25 + $0x3c] sm:$0xf]  ;;  %v1998_v11 = vunpack.c.l.b16 %v1922_v51 }
  0xdb   : > { %v1377_v18 = vpop.f32.mrf.mxu3  ;;  %v849_v22 = vpop.f32.mrf.mxu1  ;;  %v2482_v63 = vshrl.u32 %v3884_v47, 16  ;;  %v2485_v0 = vshll.u32 %v3884_v47, 16  ;;  %v3956_v51 = vld [vmem:[%s4323_s25 + $0x3c] sm:$0xe] }
  0xdc   : > { %v1416_v29 = vadd.f32 %v1377_v18, %v1186_v17  ;;  %v886_v30 = vadd.f32 %v849_v22, %v4798_v8  ;;  %v3885_v8 = vld [vmem:[%s4323_s25 + $0x40] sm:$0xf]  ;;  %v2937_v17 = vunpack.c.l.b16 %v2863_v59 }
  0xdd   : > { %v1790_v31 = vpop.f32.mrf.mxu0  ;;  %v2491_v1 = vshll.u32 %v3885_v8, 16  ;;  %v2495_v3 = vshrl.u32 %v3885_v8, 16  ;;  %v2487_v20 = vrot.slane %v2485_v0, 5  ;;  %v3708_v8 = vld [vmem:[%s4323_s25 + $0x38] sm:$0x1] }
  0xde   : > { %2087 = vmatmul.bf16.gmra.mxu1 %v2011_v19  ;;  %2317 = vmatmul.bf16.gmra.mxu2 %v4095_v7  ;;  %v4868_v46 = vadd.f32 %v1787_v48, %v1416_v29  ;;  %v2480_v48 = vsel %vm4419_vm4, %v2475_v41, %v2479_v42  ;;  %v3707_v19 = vld [vmem:[%s4323_s25 + $0x34] sm:$0xf]  ;;  %v2484_v7 = vrot.slane %v2482_v63, 4  ;;  %v2012_v29 = vpack.c.b16 %v1999_v12, %v1998_v11 }
  0xdf   : > { %v2639_v15 = vunpack.c.l.b16 %v2480_v48  ;;  %v4889_v21 = vrot.slane %v2491_v1, 5  ;;  %v2497_v22 = vrot.slane %v2495_v3, 4  ;;  %v2950_v37 = vpack.c.b16 %v2937_v17, %v2936_v16  ;;  %v3888_v48 = vld [vmem:[%s4323_s25 + $0x4c] sm:$0xf] }
  0xe0   : > { %2727 = vmatmul.bf16.gmra.mxu3 %v2651_v24  ;;  %3025 = vmatmul.bf16.gmra.mxu0 %v2949_v25  ;;  %v3886_v24 = vld [vmem:[%s4323_s25 + $0x44] sm:$0x1]  ;;  %v3957_v25 = vld [vmem:[%s4323_s25 + $0x40] sm:$0xf]  ;;  %v2488_v41 = vor.u32 %v2487_v20, %v2484_v7  ;;  %v1931_v59 = vrot.slane %v3708_v8, 5  ;;  %v2869_v3 = vrot.slane %v3958_v52, 5 }
  0xe1   : > { %v1150_v49 = vpop.f32.mrf.mxu2  ;;  %v2652_v35 = vpack.c.b16 %v2639_v15, %v2638_v13  ;;  %v2498_v42 = vor.u32 %v2497_v22, %v4889_v21  ;;  %v2501_v43 = vshll.u32 %v3886_v24, 16  ;;  %v2515_v12 = vshll.u32 %v3888_v48, 16 }
  0xe2   : > { %v1187_v57 = vadd.f32 %v1150_v49, %v886_v30  ;;  %v4096_v30 = vld [vmem:[%s4323_s25 + $0x30] sm:$0xff]  ;;  %v2866_v49 = vrot.slane %v3957_v25, 5  ;;  %v2519_v13 = vshrl.u32 %v3888_v48, 16 }
  0xe3   : > { %v1380_v50 = vpop.f32.mrf.mxu3  ;;  %v851_v62 = vpop.f32.mrf.mxu1  ;;  %v2499_v63 = vrot.slane %v2498_v42, 4  ;;  %v2503_v0 = vrot.slane %v2501_v43, 5 }
  0xe4   : > { %v1417_v5 = vadd.f32 %v1380_v50, %v1187_v57  ;;  %v887_v58 = vadd.f32 %v851_v62, %v4820_v40  ;;  %v3887_v50 = vld [vmem:[%s4323_s25 + $0x48] sm:$0xf]  ;;  %v2489_v62 = vrot.slane %v2488_v41, 4  ;;  %v2868_v1 = vrot.slane %v2866_v49, 4 }
  0xe5   : > { %v1792_v6 = vpop.f32.mrf.mxu0  ;;  %v2509_v11 = vshll.u32 %v3887_v50, 16  ;;  %v2504_v20 = vsel %vm4419_vm4, %v2499_v63, %v2503_v0 }
  0xe6   : > { %v4886_v18 = vadd.f32 %v1790_v31, %v1417_v5  ;;  %v1928_v31 = vrot.slane %v3707_v19, 5  ;;  %v2494_v7 = vsel %vm4419_vm4, %v2489_v62, %v4889_v21  ;;  %v2521_v21 = vrot.slane %v2519_v13, 4 }
  0xe7   : > { %v2640_v38 = vunpack.c.l.b16 %v2494_v7  ;;  %v2641_v41 = vunpack.c.l.b16 %v2504_v20 }
  0xe8   : > { %v1930_v57 = vrot.slane %v1928_v31, 4 }
  0xe9   : > { %v1152_v40 = vpop.f32.mrf.mxu2  ;;  %v2653_v0 = vpack.c.b16 %v2641_v41, %v2640_v38 }
  0xea   : > { %v1188_v27 = vadd.f32 %v1152_v40, %v887_v58  ;;  %v2506_v58 = vshrl.u32 %v3887_v50, 16  ;;  %v1932_v19 = vsel %vm4425_vm5, %v1930_v57, %v1931_v59  ;;  %v3711_v59 = vld [vmem:[%s4323_s25 + $0x44] sm:$0x1] }
  0xeb   : > { %v1382_v10 = vpop.f32.mrf.mxu3  ;;  %v854_v36 = vpop.f32.mrf.mxu1 }
  0xec   : > { %v1418_v44 = vadd.f32 %v1382_v10, %v1188_v27  ;;  %v888_v45 = vadd.f32 %v854_v36, %v4755_v4  ;;  %v3974_v4 = vrot.slane %v3956_v51, 9  ;;  %v2870_v27 = vsel %vm4425_vm5, %v2868_v1, %v2869_v3  ;;  %v3710_v10 = vld [vmem:[%s4323_s25 + $0x40] sm:$0xf]  ;;  %v3959_v1 = vld [vmem:[%s4323_s25 + $0x48] sm:$0xe] }
  0xed   : > { %v1795_v47 = vpop.f32.mrf.mxu0  ;;  %v2001_v36 = vunpack.c.l.b16 %v1932_v19  ;;  %v2939_v43 = vunpack.c.l.b16 %v2870_v27  ;;  %v3961_v3 = vld [vmem:[%s4323_s25 + $0x50] sm:$0x1]  ;;  %v3975_v19 = vrot.slane %v3959_v1, 9 }
  0xee   : > { %2092 = vmatmul.bf16.gmra.mxu1 %v2012_v29  ;;  %2322 = vmatmul.bf16.gmra.mxu2 %v4096_v30  ;;  %v4902_v60 = vadd.f32 %v1792_v6, %v1418_v44  ;;  %v1929_v6 = vsel %vm4425_vm5, %v3724_v54, %v1928_v31  ;;  %v2867_v25 = vsel %vm4425_vm5, %v3974_v4, %v2866_v49  ;;  %v2508_v29 = vrot.slane %v2506_v58, 4  ;;  %v3960_v44 = vld [vmem:[%s4323_s25 + $0x4c] sm:$0xf]  ;;  %v3709_v49 = vld [vmem:[%s4323_s25 + $0x3c] sm:$0xe] }
  0xef   : > { %v2511_v30 = vrot.slane %v2509_v11, 5  ;;  %v2000_v31 = vunpack.c.l.b16 %v1929_v6  ;;  %v2938_v42 = vunpack.c.l.b16 %v2867_v25  ;;  %v2873_v62 = vrot.slane %v3960_v44, 5 }
  0xf0   : > { %2732 = vmatmul.bf16.gmra.mxu3 %v2652_v35  ;;  %3030 = vmatmul.bf16.gmra.mxu0 %v2950_v37  ;;  %v4919_v35 = vrot.slane %v2515_v12, 5  ;;  %v3889_v37 = vld [vmem:[%s4323_s25 + $0x50] sm:$0x1]  ;;  %v3725_v12 = vrot.slane %v3709_v49, 9  ;;  %v2876_v20 = vrot.slane %v3961_v3, 5 }
  0xf1   : > { %v1155_v5 = vpop.f32.mrf.mxu2  ;;  %v2512_v51 = vor.u32 %v2511_v30, %v2508_v29  ;;  %v2525_v54 = vshll.u32 %v3889_v37, 16  ;;  %v2013_v48 = vpack.c.b16 %v2001_v36, %v2000_v31  ;;  %v2951_v4 = vpack.c.b16 %v2939_v43, %v2938_v42 }
  0xf2   : > { %v1189_v15 = vadd.f32 %v1155_v5, %v888_v45  ;;  %v1935_v45 = vrot.slane %v3710_v10, 5  ;;  %v2522_v52 = vor.u32 %v2521_v21, %v4919_v35  ;;  %v2875_v7 = vrot.slane %v2873_v62, 4 }
  0xf3   : > { %v1385_v16 = vpop.f32.mrf.mxu3  ;;  %v856_v17 = vpop.f32.mrf.mxu1  ;;  %v2527_v6 = vrot.slane %v2525_v54, 5  ;;  %v2874_v31 = vsel %vm4425_vm5, %v3975_v19, %v2873_v62 }
  0xf4   : > { %v1419_v22 = vadd.f32 %v1385_v16, %v1189_v15  ;;  %v889_v24 = vadd.f32 %v856_v17, %v4768_v34  ;;  %v1937_v13 = vrot.slane %v1935_v45, 4  ;;  %v1938_v15 = vrot.slane %v3711_v59, 5 }
  0xf5   : > { %v1797_v40 = vpop.f32.mrf.mxu0  ;;  %v2513_v16 = vrot.slane %v2512_v51, 4  ;;  %v2523_v17 = vrot.slane %v2522_v52, 4  ;;  %v1936_v27 = vsel %vm4425_vm5, %v3725_v12, %v1935_v45  ;;  %v2877_v36 = vsel %vm4425_vm5, %v2875_v7, %v2876_v20 }
  0xf6   : > { %v4922_v34 = vadd.f32 %v1795_v47, %v1419_v22  ;;  %v4097_v47 = vld [vmem:[%s4323_s25 + $0x3c] sm:$0xff]  ;;  %v1939_v10 = vsel %vm4425_vm5, %v1937_v13, %v1938_v15  ;;  %v2940_v54 = vunpack.c.l.b16 %v2874_v31 }
  0xf7   : > { %v2518_v29 = vsel %vm4419_vm4, %v2513_v16, %v4919_v35  ;;  %v2003_v49 = vunpack.c.l.b16 %v1939_v10  ;;  %v3712_v16 = vld [vmem:[%s4323_s25 + $0x48] sm:$0xe] }
  0xf8   : > { %v2642_v51 = vunpack.c.l.b16 %v2518_v29  ;;  %v3726_v10 = vrot.slane %v3712_v16, 9 }
  0xf9   : > { %v1157_v8 = vpop.f32.mrf.mxu2 }
  0xfa   : > { %v1190_v57 = vadd.f32 %v1157_v8, %v889_v24  ;;  %v3890_v24 = vld [vmem:[%s4323_s25 + $0x54] sm:$0xf]  ;;  %v2002_v8 = vunpack.c.l.b16 %v1936_v27  ;;  %v3964_v27 = vld [vmem:[%s4323_s25 + $0x5c] sm:$0x1] }
  0xfb   : > { %v1387_v50 = vpop.f32.mrf.mxu3  ;;  %v859_v63 = vpop.f32.mrf.mxu1  ;;  %v2530_v38 = vshrl.u32 %v3890_v24, 16  ;;  %v2533_v41 = vshll.u32 %v3890_v24, 16  ;;  %v3714_v24 = vld [vmem:[%s4323_s25 + $0x50] sm:$0x1] }
  0xfc   : > { %v1420_v5 = vadd.f32 %v1387_v50, %v1190_v57  ;;  %v890_v58 = vadd.f32 %v859_v63, %v4793_v2  ;;  %v3891_v2 = vld [vmem:[%s4323_s25 + $0x58] sm:$0xf]  ;;  %v2941_v57 = vunpack.c.l.b16 %v2877_v36  ;;  %v1945_v31 = vrot.slane %v3714_v24, 5 }
  0xfd   : > { %v1800_v11 = vpop.f32.mrf.mxu0  ;;  %v2539_v42 = vshll.u32 %v3891_v2, 16  ;;  %v2543_v43 = vshrl.u32 %v3891_v2, 16  ;;  %v2535_v59 = vrot.slane %v2533_v41, 5 }
  0xfe   : > { %2097 = vmatmul.bf16.gmra.mxu1 %v2013_v48  ;;  %2327 = vmatmul.bf16.gmra.mxu2 %v4097_v47  ;;  %v4932_v22 = vadd.f32 %v1797_v40, %v1420_v5  ;;  %v2528_v40 = vsel %vm4419_vm4, %v2523_v17, %v2527_v6  ;;  %v3713_v48 = vld [vmem:[%s4323_s25 + $0x4c] sm:$0xf]  ;;  %v2532_v47 = vrot.slane %v2530_v38, 4  ;;  %v2014_v5 = vpack.c.b16 %v2003_v49, %v2002_v8 }
  0xff   : > { %v2643_v52 = vunpack.c.l.b16 %v2528_v40  ;;  %v4953_v62 = vrot.slane %v2539_v42, 5  ;;  %v2545_v63 = vrot.slane %v2543_v43, 4  ;;  %v2952_v15 = vpack.c.b16 %v2941_v57, %v2940_v54 }
 0x100   : > { %2737 = vmatmul.bf16.gmra.mxu3 %v2653_v0  ;;  %3035 = vmatmul.bf16.gmra.mxu0 %v2951_v4  ;;  %v3892_v0 = vld [vmem:[%s4323_s25 + $0x5c] sm:$0x1]  ;;  %v3963_v4 = vld [vmem:[%s4323_s25 + $0x58] sm:$0xf]  ;;  %v2536_v17 = vor.u32 %v2535_v59, %v2532_v47 }
 0x101   : > { %v1160_v25 = vpop.f32.mrf.mxu2  ;;  %v2654_v12 = vpack.c.b16 %v2643_v52, %v2642_v51  ;;  %v2546_v6 = vor.u32 %v2545_v63, %v4953_v62  ;;  %v2549_v19 = vshll.u32 %v3892_v0, 16  ;;  %v2880_v2 = vrot.slane %v3963_v4, 5 }
 0x102   : > { %v1191_v30 = vadd.f32 %v1160_v25, %v890_v58  ;;  %v4098_v58 = vld [vmem:[%s4323_s25 + $0x48] sm:$0xff]  ;;  %v3962_v25 = vld [vmem:[%s4323_s25 + $0x54] sm:$0xe]  ;;  %v2537_v36 = vrot.slane %v2536_v17, 4 }
 0x103   : > { %v1390_v21 = vpop.f32.mrf.mxu3  ;;  %v861_v37 = vpop.f32.mrf.mxu1  ;;  %v2551_v38 = vrot.slane %v2549_v19, 5  ;;  %v3976_v42 = vrot.slane %v3962_v25, 9  ;;  %v2882_v43 = vrot.slane %v2880_v2, 4 }
 0x104   : > { %v1421_v44 = vadd.f32 %v1390_v21, %v1191_v30  ;;  %v891_v35 = vadd.f32 %v861_v37, %v4818_v32  ;;  %v3893_v30 = vld [vmem:[%s4323_s25 + $0x60] sm:$0xf]  ;;  %v3894_v21 = vld [vmem:[%s4323_s25 + $0x64] sm:$0xf]  ;;  %v2547_v37 = vrot.slane %v2546_v6, 4 }
 0x105   : > { %v1802_v45 = vpop.f32.mrf.mxu0  ;;  %v2554_v8 = vshrl.u32 %v3893_v30, 16  ;;  %v2557_v49 = vshll.u32 %v3893_v30, 16  ;;  %v2563_v51 = vshll.u32 %v3894_v21, 16  ;;  %v2567_v52 = vshrl.u32 %v3894_v21, 16 }
 0x106   : > { %v4950_v50 = vadd.f32 %v1800_v11, %v1421_v44  ;;  %v1942_v11 = vrot.slane %v3713_v48, 5  ;;  %v2883_v44 = vrot.slane %v3964_v27, 5  ;;  %v2552_v0 = vsel %vm4419_vm4, %v2547_v37, %v2551_v38  ;;  %v3715_v27 = vld [vmem:[%s4323_s25 + $0x54] sm:$0xe]  ;;  %v3717_v37 = vld [vmem:[%s4323_s25 + $0x5c] sm:$0x1] }
 0x107   : > { %v2645_v17 = vunpack.c.l.b16 %v2552_v0 }
 0x108   : > { %v1944_v29 = vrot.slane %v1942_v11, 4  ;;  %v1943_v48 = vsel %vm4425_vm5, %v3726_v10, %v1942_v11  ;;  %v2884_v4 = vsel %vm4425_vm5, %v2882_v43, %v2883_v44  ;;  %v3965_v44 = vld [vmem:[%s4323_s25 + $0x60] sm:$0xe] }
 0x109   : > { %v1162_v32 = vpop.f32.mrf.mxu2  ;;  %v2943_v19 = vunpack.c.l.b16 %v2884_v4  ;;  %v3897_v4 = vld [vmem:[%s4323_s25 + $0x70] sm:$0xf] }
 0x10a   : > { %v1192_v1 = vadd.f32 %v1162_v32, %v891_v35  ;;  %v1946_v47 = vsel %vm4425_vm5, %v1944_v29, %v1945_v31  ;;  %v2881_v32 = vsel %vm4425_vm5, %v3976_v42, %v2880_v2 }
 0x10b   : > { %v1392_v3 = vpop.f32.mrf.mxu3  ;;  %v864_v13 = vpop.f32.mrf.mxu1  ;;  %v2005_v11 = vunpack.c.l.b16 %v1946_v47  ;;  %v2942_v6 = vunpack.c.l.b16 %v2881_v32  ;;  %v3896_v32 = vld [vmem:[%s4323_s25 + $0x6c] sm:$0xf] }
 0x10c   : > { %v1422_v7 = vadd.f32 %v1392_v3, %v1192_v1  ;;  %v892_v41 = vadd.f32 %v864_v13, %v4764_v28  ;;  %v2542_v28 = vsel %vm4419_vm4, %v2537_v36, %v4953_v62  ;;  %v3716_v1 = vld [vmem:[%s4323_s25 + $0x58] sm:$0xf]  ;;  %v2556_v3 = vrot.slane %v2554_v8, 4  ;;  %v3895_v13 = vld [vmem:[%s4323_s25 + $0x68] sm:$0x1] }
 0x10d   : > { %v1805_v20 = vpop.f32.mrf.mxu0  ;;  %v2004_v62 = vunpack.c.l.b16 %v1943_v48  ;;  %v2644_v16 = vunpack.c.l.b16 %v2542_v28  ;;  %v1949_v2 = vrot.slane %v3716_v1, 5  ;;  %v2573_v30 = vshll.u32 %v3895_v13, 16  ;;  %v4099_v36 = vld [vmem:[%s4323_s25 + $0x54] sm:$0xff] }
 0x10e   : > { %2102 = vmatmul.bf16.gmra.mxu1 %v2014_v5  ;;  %2332 = vmatmul.bf16.gmra.mxu2 %v4098_v58  ;;  %v4965_v40 = vadd.f32 %v1802_v45, %v1422_v7  ;;  %v2559_v5 = vrot.slane %v2557_v49, 5  ;;  %v4982_v58 = vrot.slane %v2563_v51, 5  ;;  %v3966_v7 = vld [vmem:[%s4323_s25 + $0x64] sm:$0xf]  ;;  %v2953_v43 = vpack.c.b16 %v2943_v19, %v2942_v6 }
 0x10f   : > { %v2015_v31 = vpack.c.b16 %v2005_v11, %v2004_v62  ;;  %v2887_v38 = vrot.slane %v3966_v7, 5  ;;  %v2655_v42 = vpack.c.b16 %v2645_v17, %v2644_v16  ;;  %v3727_v49 = vrot.slane %v3715_v27, 9 }
 0x110   : > { %2742 = vmatmul.bf16.gmra.mxu3 %v2654_v12  ;;  %3040 = vmatmul.bf16.gmra.mxu0 %v2952_v15  ;;  %v2569_v12 = vrot.slane %v2567_v52, 4  ;;  %v2560_v10 = vor.u32 %v2559_v5, %v2556_v3  ;;  %v1951_v51 = vrot.slane %v1949_v2, 4  ;;  %v1952_v52 = vrot.slane %v3717_v37, 5 }
 0x111   : > { %v1165_v35 = vpop.f32.mrf.mxu2  ;;  %v3977_v48 = vrot.slane %v3965_v44, 9  ;;  %v2889_v47 = vrot.slane %v2887_v38, 4  ;;  %v1950_v3 = vsel %vm4425_vm5, %v3727_v49, %v1949_v2  ;;  %v2578_v17 = vshrl.u32 %v3896_v32, 16  ;;  %v3969_v44 = vld [vmem:[%s4323_s25 + $0x70] sm:$0xf] }
 0x112   : > { %v1193_v54 = vadd.f32 %v1165_v35, %v892_v41  ;;  %v2570_v29 = vor.u32 %v2569_v12, %v4982_v58  ;;  %v1953_v5 = vsel %vm4425_vm5, %v1951_v51, %v1952_v52  ;;  %v2581_v6 = vshll.u32 %v3896_v32, 16  ;;  %v4100_v51 = vld [vmem:[%s4323_s25 + $0x60] sm:$0xff]  ;;  %v3720_v32 = vld [vmem:[%s4323_s25 + $0x68] sm:$0x1] }
 0x113   : > { %v1395_v45 = vpop.f32.mrf.mxu3  ;;  %v866_v57 = vpop.f32.mrf.mxu1  ;;  %v2587_v19 = vshll.u32 %v3897_v4, 16  ;;  %v2591_v7 = vshrl.u32 %v3897_v4, 16  ;;  %v2006_v2 = vunpack.c.l.b16 %v1950_v3  ;;  %v2894_v4 = vrot.slane %v3969_v44, 5  ;;  %v3970_v3 = vld [vmem:[%s4323_s25 + $0x74] sm:$0x1] }
 0x114   : > { %v1423_v59 = vadd.f32 %v1395_v45, %v1193_v54  ;;  %v893_v24 = vadd.f32 %v866_v57, %v4787_v55  ;;  %v3967_v55 = vld [vmem:[%s4323_s25 + $0x68] sm:$0x1]  ;;  %v2561_v54 = vrot.slane %v2560_v10, 4  ;;  %v2571_v45 = vrot.slane %v2570_v29, 4 }
 0x115   : > { %v1807_v63 = vpop.f32.mrf.mxu0  ;;  %v2575_v57 = vrot.slane %v2573_v30, 5  ;;  %v2890_v28 = vrot.slane %v3967_v55, 5  ;;  %v2589_v37 = vrot.slane %v2587_v19, 5  ;;  %v2897_v19 = vrot.slane %v3970_v3, 5 }
 0x116   : > { %v4985_v15 = vadd.f32 %v1805_v20, %v1423_v59  ;;  %v2566_v12 = vsel %vm4419_vm4, %v2561_v54, %v4982_v58 }
 0x117   : > { %v2576_v11 = vsel %vm4419_vm4, %v2571_v45, %v2575_v57  ;;  %v2891_v13 = vsel %vm4425_vm5, %v2889_v47, %v2890_v28  ;;  %v2646_v27 = vunpack.c.l.b16 %v2566_v12  ;;  %v3718_v57 = vld [vmem:[%s4323_s25 + $0x60] sm:$0xe] }
 0x118   : > { %v2647_v10 = vunpack.c.l.b16 %v2576_v11  ;;  %v2945_v30 = vunpack.c.l.b16 %v2891_v13 }
 0x119   : > { %v1167_v25 = vpop.f32.mrf.mxu2 }
 0x11a   : > { %v1194_v20 = vadd.f32 %v1167_v25, %v893_v24  ;;  %v2007_v25 = vunpack.c.l.b16 %v1953_v5  ;;  %v3728_v5 = vrot.slane %v3718_v57, 9 }
 0x11b   : > { %v1397_v21 = vpop.f32.mrf.mxu3  ;;  %v869_v41 = vpop.f32.mrf.mxu1 }
 0x11c   : > { %v1424_v35 = vadd.f32 %v1397_v21, %v1194_v20  ;;  %v894_v0 = vadd.f32 %v869_v41, %v4802_v23  ;;  %v2888_v23 = vsel %vm4425_vm5, %v3977_v48, %v2887_v38  ;;  %v3719_v21 = vld [vmem:[%s4323_s25 + $0x64] sm:$0xf]  ;;  %v2593_v38 = vrot.slane %v2591_v7, 4 }
 0x11d   : > { %v1810_v8 = vpop.f32.mrf.mxu0  ;;  %v2944_v29 = vunpack.c.l.b16 %v2888_v23  ;;  %v2016_v49 = vpack.c.b16 %v2007_v25, %v2006_v2  ;;  %v1956_v52 = vrot.slane %v3719_v21, 5 }
 0x11e   : > { %2107 = vmatmul.bf16.gmra.mxu1 %v2015_v31  ;;  %2337 = vmatmul.bf16.gmra.mxu2 %v4099_v36  ;;  %v4995_v59 = vadd.f32 %v1807_v63, %v1424_v35  ;;  %v2580_v31 = vrot.slane %v2578_v17, 4  ;;  %v2583_v36 = vrot.slane %v2581_v6, 5  ;;  %v2594_v47 = vor.u32 %v2593_v38, %v2589_v37 }
 0x11f   : > { %v2954_v45 = vpack.c.b16 %v2945_v30, %v2944_v29  ;;  %v1958_v12 = vrot.slane %v1956_v52, 4  ;;  %v2896_v6 = vrot.slane %v2894_v4, 4 }
 0x120   : > { %2747 = vmatmul.bf16.gmra.mxu3 %v2655_v42  ;;  %3045 = vmatmul.bf16.gmra.mxu0 %v2953_v43  ;;  %v3898_v42 = vld [vmem:[%s4323_s25 + $0x74] sm:$0x1]  ;;  %v2584_v48 = vor.u32 %v2583_v36, %v2580_v31  ;;  %v2595_v23 = vrot.slane %v2594_v47, 4 }
 0x121   : > { %v1170_v1 = vpop.f32.mrf.mxu2  ;;  %v2597_v28 = vshll.u32 %v3898_v42, 16  ;;  %v2898_v31 = vsel %vm4425_vm5, %v2896_v6, %v2897_v19 }
 0x122   : > { %v1195_v62 = vadd.f32 %v1170_v1, %v894_v0  ;;  %v3968_v1 = vld [vmem:[%s4323_s25 + $0x6c] sm:$0xe]  ;;  %v2585_v11 = vrot.slane %v2584_v48, 4 }
 0x123   : > { %v1400_v63 = vpop.f32.mrf.mxu3  ;;  %v871_v16 = vpop.f32.mrf.mxu1  ;;  %v2599_v13 = vrot.slane %v2597_v28, 5  ;;  %v3978_v17 = vrot.slane %v3968_v1, 9 }
 0x124   : > { %v1425_v24 = vadd.f32 %v1400_v63, %v1195_v62  ;;  %v895_v41 = vadd.f32 %v871_v16, %v4826_v53  ;;  %v1959_v63 = vrot.slane %v3720_v32, 5 }
 0x125   : > { %v1812_v58 = vpop.f32.mrf.mxu0  ;;  %v2895_v21 = vsel %vm4425_vm5, %v3978_v17, %v2894_v4 }
 0x126   : > { %v5013_v20 = vadd.f32 %v1810_v8, %v1425_v24  ;;  %v2656_v8 = vpack.c.b16 %v2647_v10, %v2646_v27  ;;  %v1957_v27 = vsel %vm4425_vm5, %v3728_v5, %v1956_v52  ;;  %v2590_v10 = vsel %vm4419_vm4, %v2585_v11, %v2589_v37 }
 0x127   : > { %v2008_v36 = vunpack.c.l.b16 %v1957_v27  ;;  %v2648_v42 = vunpack.c.l.b16 %v2590_v10  ;;  %v2946_v44 = vunpack.c.l.b16 %v2895_v21  ;;  %v2947_v37 = vunpack.c.l.b16 %v2898_v31 }
 0x129   : > { %v1172_v43 = vpop.f32.mrf.mxu2  ;;  %v2955_v14 = vpack.c.b16 %v2947_v37, %v2946_v44 }
 0x12a   : > { %v1196_v55 = vadd.f32 %v1172_v43, %v895_v41 }
 0x12b   : > { %v1402_v35 = vpop.f32.mrf.mxu3  ;;  %v874_v54 = vpop.f32.mrf.mxu1 }
 0x12c   : > { %v1426_v0 = vadd.f32 %v1402_v35, %v1196_v55  ;;  %v896_v16 = vadd.f32 %v874_v54, %v4766_v33  ;;  %v2600_v33 = vsel %vm4419_vm4, %v2595_v23, %v2599_v13 }
 0x12d   : > { %v1815_v53 = vpop.f32.mrf.mxu0  ;;  %v2649_v43 = vunpack.c.l.b16 %v2600_v33 }
 0x12e   : > { %2112 = vmatmul.bf16.gmra.mxu1 %v2016_v49  ;;  %2342 = vmatmul.bf16.gmra.mxu2 %v4100_v51  ;;  %v5024_v62 = vadd.f32 %v1812_v58, %v1426_v0  ;;  %v1960_v58 = vsel %vm4425_vm5, %v1958_v12, %v1959_v63 }
 0x12f   : > { %v2009_v38 = vunpack.c.l.b16 %v1960_v58  ;;  %v2657_v54 = vpack.c.b16 %v2649_v43, %v2648_v42 }
 0x130   : > { %2752 = vmatmul.bf16.gmra.mxu3 %v2656_v8  ;;  %3050 = vmatmul.bf16.gmra.mxu0 %v2954_v45  ;;  %v4101_v8 = vld [vmem:[%s4323_s25 + $0x6c] sm:$0xff]  ;;  %s3351_s25 = sshll.u32 %s4213_s15, 4 }
 0x131   : > { %v1175_v7 = vpop.f32.mrf.mxu2  ;;  %v2017_v51 = vpack.c.b16 %v2009_v38, %v2008_v36  ;;  %p237_p6 = scmp.lt.s32.totalorder %s3351_s25, 31 }
 0x132   : > { %v1197_v24 = vadd.f32 %v1175_v7, %v896_v16 }
 0x133   : > { %v1405_v2 = vpop.f32.mrf.mxu3  ;;  %v876_v25 = vpop.f32.mrf.mxu1  ;;  %s5133_s25 = smov (!%p237_p6, %s3351_s25), 31 }
 0x134   : > { %v1427_v29 = vadd.f32 %v1405_v2, %v1197_v24  ;;  %v897_v55 = vadd.f32 %v876_v25, %v4790_v61  ;;  %s240_s11 = sadd.s32 %s3352_s10, %s5133_s25 }
 0x135   : > { %v1817_v30 = vpop.f32.mrf.mxu0  ;;  %s3353_s12 = sshll.u32 %s240_s11, 3 }
 0x136   : > { %v5039_v41 = vadd.f32 %v1815_v53, %v1427_v29  ;;  %s5057_s22 = scalar_lea.vmem %s5115_s2, %s3353_s12 }
 0x139   : > { %v1177_v35 = vpop.f32.mrf.mxu2 }
 0x13a   : > { %v1198_v9 = vadd.f32 %v1177_v35, %v897_v55 }
 0x13b   : > { %v1407_v49 = vpop.f32.mrf.mxu3  ;;  %v879_v52 = vpop.f32.mrf.mxu1 }
 0x13c   : > { %v1428_v45 = vadd.f32 %v1407_v49, %v1198_v9  ;;  %v898_v47 = vadd.f32 %v879_v52, %v4808_v26 }
 0x13d   : > { %v1820_v57 = vpop.f32.mrf.mxu0 }
 0x13e   : > { %2117 = vmatmul.bf16.gmra.mxu1 %v2017_v51  ;;  %2347 = vmatmul.bf16.gmra.mxu2 %v4101_v8  ;;  %v5043_v48 = vadd.f32 %v1817_v30, %v1428_v45 }
 0x140   : > { %2757 = vmatmul.bf16.gmra.mxu3 %v2657_v54  ;;  %3055 = vmatmul.bf16.gmra.mxu0 %v2955_v14 }
 0x141   : > { %v1180_v61 = vpop.f32.mrf.mxu2 }
 0x142   : > { %v1199_v28 = vadd.f32 %v1180_v61, %v898_v47 }
 0x143   : > { %v1410_v0 = vpop.f32.mrf.mxu3  ;;  %v881_v53 = vpop.f32.mrf.mxu1 }
 0x144   : > { %v1429_v32 = vadd.f32 %v1410_v0, %v1199_v28  ;;  %v899_v3 = vadd.f32 %v881_v53, %v4829_v56 }
 0x145   : > { %v1822_v4 = vpop.f32.mrf.mxu0 }
 0x146   : > { %v5047_v1 = vadd.f32 %v1820_v57, %v1429_v32 }
 0x149   : > { %v1182_v5 = vpop.f32.mrf.mxu2 }
 0x14a   : > { %v1200_v12 = vadd.f32 %v1182_v5, %v899_v3 }
 0x14b   : > { %v1412_v63 = vpop.f32.mrf.mxu3  ;;  %v2083_v11 = vpop.f32.mrf.mxu1 }
 0x14c   : > { %v1430_v23 = vadd.f32 %v1412_v63, %v1200_v12  ;;  %v2123_v16 = vadd.f32 %v2083_v11, %v4858_v39 }
 0x14d   : > { %v3021_v26 = vpop.f32.mrf.mxu0 }
 0x14e   : > { %v5051_v13 = vadd.f32 %v1822_v4, %v1430_v23 }
 0x151   : > { %v2313_v17 = vpop.f32.mrf.mxu2 }
 0x152   : > { %v2353_v6 = vadd.f32 %v2313_v17, %v2123_v16 }
 0x153   : > { %v2723_v19 = vpop.f32.mrf.mxu3  ;;  %v2085_v7 = vpop.f32.mrf.mxu1 }
 0x154   : > { %v2763_v24 = vadd.f32 %v2723_v19, %v2353_v6  ;;  %v2124_v25 = vadd.f32 %v2085_v7, %v4868_v46 }
 0x155   : > { %v3023_v56 = vpop.f32.mrf.mxu0 }
 0x156   : > { %v3061_v2 = vadd.f32 %v3021_v26, %v2763_v24 }
 0x158   : > { %3109 = vst [vmem:[%s5057_s22] sm:$0xff] %v3061_v2  ;;  %v3147_v21 = vmul.f32 %v3061_v2, %v3061_v2 }
 0x159   : > { %v2315_v27 = vpop.f32.mrf.mxu2 }
 0x15a   : > { %v2354_v39 = vadd.f32 %v2315_v27, %v2124_v25 }
 0x15b   : > { %v2725_v58 = vpop.f32.mrf.mxu3  ;;  %v2088_v10 = vpop.f32.mrf.mxu1 }
 0x15c   : > { %v2764_v29 = vadd.f32 %v2725_v58, %v2354_v39  ;;  %v2125_v38 = vadd.f32 %v2088_v10, %v4886_v18 }
 0x15d   : > { %v3026_v30 = vpop.f32.mrf.mxu0 }
 0x15e   : > { %v3062_v33 = vadd.f32 %v3023_v56, %v2764_v29 }
 0x160   : > { %3110 = vst [vmem:[%s5057_s22 + $0x8] sm:$0xff] %v3062_v33  ;;  %v3125_v31 = vadd.f32 %v3062_v33, %v3061_v2  ;;  %v3148_v36 = vmul.f32 %v3062_v33, %v3062_v33 }
 0x161   : > { %v2318_v42 = vpop.f32.mrf.mxu2 }
 0x162   : > { %v3163_v43 = vadd.f32 %v3148_v36, %v3147_v21  ;;  %v2355_v44 = vadd.f32 %v2318_v42, %v2125_v38 }
 0x163   : > { %v2728_v37 = vpop.f32.mrf.mxu3  ;;  %v2090_v55 = vpop.f32.mrf.mxu1 }
 0x164   : > { %v2765_v46 = vadd.f32 %v2728_v37, %v2355_v44  ;;  %v2126_v8 = vadd.f32 %v2090_v55, %v4902_v60 }
 0x165   : > { %v3028_v35 = vpop.f32.mrf.mxu0 }
 0x166   : > { %v3063_v9 = vadd.f32 %v3026_v30, %v2765_v46 }
 0x168   : > { %3111 = vst [vmem:[%s5057_s22 + $0x10] sm:$0xff] %v3063_v9  ;;  %v3126_v49 = vadd.f32 %v3125_v31, %v3063_v9  ;;  %v3149_v51 = vmul.f32 %v3063_v9, %v3063_v9 }
 0x169   : > { %v2320_v52 = vpop.f32.mrf.mxu2 }
 0x16a   : > { %v3164_v54 = vadd.f32 %v3163_v43, %v3149_v51  ;;  %v2356_v14 = vadd.f32 %v2320_v52, %v2126_v8 }
 0x16b   : > { %v2730_v45 = vpop.f32.mrf.mxu3  ;;  %v2093_v57 = vpop.f32.mrf.mxu1 }
 0x16c   : > { %v2766_v18 = vadd.f32 %v2730_v45, %v2356_v14  ;;  %v2127_v53 = vadd.f32 %v2093_v57, %v4922_v34 }
 0x16d   : > { %v3031_v47 = vpop.f32.mrf.mxu0 }
 0x16e   : > { %v3064_v61 = vadd.f32 %v3028_v35, %v2766_v18 }
 0x170   : > { %3112 = vst [vmem:[%s5057_s22 + $0x18] sm:$0xff] %v3064_v61  ;;  %v3127_v28 = vadd.f32 %v3126_v49, %v3064_v61  ;;  %v3150_v0 = vmul.f32 %v3064_v61, %v3064_v61 }
 0x171   : > { %v2323_v32 = vpop.f32.mrf.mxu2 }
 0x172   : > { %v3165_v4 = vadd.f32 %v3164_v54, %v3150_v0  ;;  %v2357_v3 = vadd.f32 %v2323_v32, %v2127_v53 }
 0x173   : > { %v2733_v5 = vpop.f32.mrf.mxu3  ;;  %v2095_v12 = vpop.f32.mrf.mxu1 }
 0x174   : > { %v2767_v60 = vadd.f32 %v2733_v5, %v2357_v3  ;;  %v2128_v16 = vadd.f32 %v2095_v12, %v4932_v22 }
 0x175   : > { %v3033_v63 = vpop.f32.mrf.mxu0 }
 0x176   : > { %v3065_v11 = vadd.f32 %v3031_v47, %v2767_v60 }
 0x178   : > { %3113 = vst [vmem:[%s5057_s22 + $0x20] sm:$0xff] %v3065_v11  ;;  %v3128_v23 = vadd.f32 %v3127_v28, %v3065_v11  ;;  %v3151_v26 = vmul.f32 %v3065_v11, %v3065_v11 }
 0x179   : > { %v2325_v17 = vpop.f32.mrf.mxu2 }
 0x17a   : > { %v3166_v6 = vadd.f32 %v3165_v4, %v3151_v26  ;;  %v2358_v19 = vadd.f32 %v2325_v17, %v2128_v16 }
 0x17b   : > { %v2735_v7 = vpop.f32.mrf.mxu3  ;;  %v2098_v24 = vpop.f32.mrf.mxu1 }
 0x17c   : > { %v2768_v34 = vadd.f32 %v2735_v7, %v2358_v19  ;;  %v2129_v39 = vadd.f32 %v2098_v24, %v4950_v50 }
 0x17d   : > { %v3036_v56 = vpop.f32.mrf.mxu0 }
 0x17e   : > { %v3066_v2 = vadd.f32 %v3033_v63, %v2768_v34 }
 0x180   : > { %3114 = vst [vmem:[%s5057_s22 + $0x28] sm:$0xff] %v3066_v2  ;;  %v3129_v25 = vadd.f32 %v3128_v23, %v3066_v2  ;;  %v3152_v27 = vmul.f32 %v3066_v2, %v3066_v2 }
 0x181   : > { %v2328_v58 = vpop.f32.mrf.mxu2 }
 0x182   : > { %v3167_v10 = vadd.f32 %v3166_v6, %v3152_v27  ;;  %v2359_v29 = vadd.f32 %v2328_v58, %v2129_v39 }
 0x183   : > { %v2738_v30 = vpop.f32.mrf.mxu3  ;;  %v2100_v33 = vpop.f32.mrf.mxu1 }
 0x184   : > { %v2769_v22 = vadd.f32 %v2738_v30, %v2359_v29  ;;  %v2130_v42 = vadd.f32 %v2100_v33, %v4965_v40 }
 0x185   : > { %v3038_v21 = vpop.f32.mrf.mxu0 }
 0x186   : > { %v3067_v31 = vadd.f32 %v3036_v56, %v2769_v22 }
 0x188   : > { %3115 = vst [vmem:[%s5057_s22 + $0x30] sm:$0xff] %v3067_v31  ;;  %v3130_v36 = vadd.f32 %v3129_v25, %v3067_v31  ;;  %v3153_v38 = vmul.f32 %v3067_v31, %v3067_v31 }
 0x189   : > { %v2330_v43 = vpop.f32.mrf.mxu2 }
 0x18a   : > { %v3168_v44 = vadd.f32 %v3167_v10, %v3153_v38  ;;  %v2360_v37 = vadd.f32 %v2330_v43, %v2130_v42 }
 0x18b   : > { %v2740_v55 = vpop.f32.mrf.mxu3  ;;  %v2103_v46 = vpop.f32.mrf.mxu1 }
 0x18c   : > { %v2770_v50 = vadd.f32 %v2740_v55, %v2360_v37  ;;  %v2131_v8 = vadd.f32 %v2103_v46, %v4985_v15 }
 0x18d   : > { %v3041_v35 = vpop.f32.mrf.mxu0 }
 0x18e   : > { %v3068_v9 = vadd.f32 %v3038_v21, %v2770_v50 }
 0x190   : > { %3116 = vst [vmem:[%s5057_s22 + $0x38] sm:$0xff] %v3068_v9  ;;  %v3131_v49 = vadd.f32 %v3130_v36, %v3068_v9  ;;  %v3154_v51 = vmul.f32 %v3068_v9, %v3068_v9 }
 0x191   : > { %v2333_v52 = vpop.f32.mrf.mxu2 }
 0x192   : > { %v3169_v54 = vadd.f32 %v3168_v44, %v3154_v51  ;;  %v2361_v14 = vadd.f32 %v2333_v52, %v2131_v8 }
 0x193   : > { %v2743_v45 = vpop.f32.mrf.mxu3  ;;  %v2105_v57 = vpop.f32.mrf.mxu1 }
 0x194   : > { %v2771_v40 = vadd.f32 %v2743_v45, %v2361_v14  ;;  %v2132_v0 = vadd.f32 %v2105_v57, %v4995_v59 }
 0x195   : > { %v3043_v18 = vpop.f32.mrf.mxu0 }
 0x196   : > { %v3069_v47 = vadd.f32 %v3041_v35, %v2771_v40 }
 0x198   : > { %3117 = vst [vmem:[%s5057_s22 + $0x40] sm:$0xff] %v3069_v47  ;;  %v3132_v61 = vadd.f32 %v3131_v49, %v3069_v47  ;;  %v3155_v28 = vmul.f32 %v3069_v47, %v3069_v47 }
 0x199   : > { %v2335_v53 = vpop.f32.mrf.mxu2 }
 0x19a   : > { %v3170_v32 = vadd.f32 %v3169_v54, %v3155_v28  ;;  %v2362_v4 = vadd.f32 %v2335_v53, %v2132_v0 }
 0x19b   : > { %v2745_v3 = vpop.f32.mrf.mxu3  ;;  %v2108_v5 = vpop.f32.mrf.mxu1 }
 0x19c   : > { %v2772_v15 = vadd.f32 %v2745_v3, %v2362_v4  ;;  %v2133_v23 = vadd.f32 %v2108_v5, %v5013_v20 }
 0x19d   : > { %v3046_v12 = vpop.f32.mrf.mxu0 }
 0x19e   : > { %v3070_v60 = vadd.f32 %v3043_v18, %v2772_v15 }
 0x1a0   : > { %3118 = vst [vmem:[%s5057_s22 + $0x48] sm:$0xff] %v3070_v60  ;;  %v3133_v63 = vadd.f32 %v3132_v61, %v3070_v60  ;;  %v3156_v11 = vmul.f32 %v3070_v60, %v3070_v60 }
 0x1a1   : > { %v2338_v26 = vpop.f32.mrf.mxu2 }
 0x1a2   : > { %v3171_v16 = vadd.f32 %v3170_v32, %v3156_v11  ;;  %v2363_v17 = vadd.f32 %v2338_v26, %v2133_v23 }
 0x1a3   : > { %v2748_v6 = vpop.f32.mrf.mxu3  ;;  %v2110_v19 = vpop.f32.mrf.mxu1 }
 0x1a4   : > { %v2773_v59 = vadd.f32 %v2748_v6, %v2363_v17  ;;  %v2134_v2 = vadd.f32 %v2110_v19, %v5024_v62 }
 0x1a5   : > { %v3048_v7 = vpop.f32.mrf.mxu0 }
 0x1a6   : > { %v3071_v24 = vadd.f32 %v3046_v12, %v2773_v59 }
 0x1a8   : > { %3119 = vst [vmem:[%s5057_s22 + $0x50] sm:$0xff] %v3071_v24  ;;  %v3134_v34 = vadd.f32 %v3133_v63, %v3071_v24  ;;  %v3157_v56 = vmul.f32 %v3071_v24, %v3071_v24 }
 0x1a9   : > { %v2340_v25 = vpop.f32.mrf.mxu2 }
 0x1aa   : > { %v3172_v27 = vadd.f32 %v3171_v16, %v3157_v56  ;;  %v2364_v39 = vadd.f32 %v2340_v25, %v2134_v2 }
 0x1ab   : > { %v2750_v58 = vpop.f32.mrf.mxu3  ;;  %v2113_v20 = vpop.f32.mrf.mxu1 }
 0x1ac   : > { %v2774_v10 = vadd.f32 %v2750_v58, %v2364_v39  ;;  %v2135_v21 = vadd.f32 %v2113_v20, %v5039_v41 }
 0x1ad   : > { %v3051_v30 = vpop.f32.mrf.mxu0 }
 0x1ae   : > { %v3072_v29 = vadd.f32 %v3048_v7, %v2774_v10 }
 0x1b0   : > { %3120 = vst [vmem:[%s5057_s22 + $0x58] sm:$0xff] %v3072_v29  ;;  %v3135_v33 = vadd.f32 %v3134_v34, %v3072_v29  ;;  %v3158_v22 = vmul.f32 %v3072_v29, %v3072_v29 }
 0x1b1   : > { %v2343_v31 = vpop.f32.mrf.mxu2 }
 0x1b2   : > { %v3173_v36 = vadd.f32 %v3172_v27, %v3158_v22  ;;  %v2365_v38 = vadd.f32 %v2343_v31, %v2135_v21 }
 0x1b3   : > { %v2753_v42 = vpop.f32.mrf.mxu3  ;;  %v2115_v62 = vpop.f32.mrf.mxu1 }
 0x1b4   : > { %v2775_v43 = vadd.f32 %v2753_v42, %v2365_v38  ;;  %v2136_v46 = vadd.f32 %v2115_v62, %v5043_v48 }
 0x1b5   : > { %v3053_v50 = vpop.f32.mrf.mxu0 }
 0x1b6   : > { %v3073_v44 = vadd.f32 %v3051_v30, %v2775_v43 }
 0x1b8   : > { %3121 = vst [vmem:[%s5057_s22 + $0x60] sm:$0xff] %v3073_v44  ;;  %v3136_v37 = vadd.f32 %v3135_v33, %v3073_v44  ;;  %v3159_v55 = vmul.f32 %v3073_v44, %v3073_v44 }
 0x1b9   : > { %v2345_v35 = vpop.f32.mrf.mxu2 }
 0x1ba   : > { %v3174_v9 = vadd.f32 %v3173_v36, %v3159_v55  ;;  %v2366_v49 = vadd.f32 %v2345_v35, %v2136_v46 }
 0x1bb   : > { %v2755_v51 = vpop.f32.mrf.mxu3  ;;  %v2118_v41 = vpop.f32.mrf.mxu1 }
 0x1bc   : > { %v2776_v8 = vadd.f32 %v2755_v51, %v2366_v49  ;;  %v2137_v45 = vadd.f32 %v2118_v41, %v5047_v1 }
 0x1bd   : > { %v3056_v48 = vpop.f32.mrf.mxu0 }
 0x1be   : > { %v3074_v52 = vadd.f32 %v3053_v50, %v2776_v8 }
 0x1c0   : > { %3122 = vst [vmem:[%s5057_s22 + $0x68] sm:$0xff] %v3074_v52  ;;  %v3137_v54 = vadd.f32 %v3136_v37, %v3074_v52  ;;  %v3160_v14 = vmul.f32 %v3074_v52, %v3074_v52 }
 0x1c1   : > { %v2348_v57 = vpop.f32.mrf.mxu2 }
 0x1c2   : > { %v3175_v40 = vadd.f32 %v3174_v9, %v3160_v14  ;;  %v2367_v18 = vadd.f32 %v2348_v57, %v2137_v45 }
 0x1c3   : > { %v2758_v47 = vpop.f32.mrf.mxu3  ;;  %v2120_v28 = vpop.f32.mrf.mxu1 }
 0x1c4   : > { %v2777_v61 = vadd.f32 %v2758_v47, %v2367_v18  ;;  %v2138_v4 = vadd.f32 %v2120_v28, %v5051_v13 }
 0x1c5   : > { %v3058_v60 = vpop.f32.mrf.mxu0 }
 0x1c6   : > { %v3075_v0 = vadd.f32 %v3056_v48, %v2777_v61 }
 0x1c8   : > { %3123 = vst [vmem:[%s5057_s22 + $0x70] sm:$0xff] %v3075_v0  ;;  %v3138_v53 = vadd.f32 %v3137_v54, %v3075_v0  ;;  %v3161_v32 = vmul.f32 %v3075_v0, %v3075_v0 }
 0x1c9   : > { %v2350_v3 = vpop.f32.mrf.mxu2 }
 0x1ca   : > { %v3176_v5 = vadd.f32 %v3175_v40, %v3161_v32  ;;  %v2368_v15 = vadd.f32 %v2350_v3, %v2138_v4 }
 0x1cb   : > { %v2760_v1 = vpop.f32.mrf.mxu3 }
 0x1cc   : > { %v2778_v12 = vadd.f32 %v2760_v1, %v2368_v15 }
 0x1ce   : > { %v3076_v63 = vadd.f32 %v3058_v60, %v2778_v12 }
 0x1d0   : > { %3124 = vst [vmem:[%s5057_s22 + $0x78] sm:$0xff] %v3076_v63  ;;  %v3139_v11 = vadd.f32 %v3138_v53, %v3076_v63  ;;  %v3162_v23 = vmul.f32 %v3076_v63, %v3076_v63 }
 0x1d2   : > { %v3140_v26 = vrot.slane %v3139_v11, 4  ;;  %v3177_v16 = vadd.f32 %v3176_v5, %v3162_v23 }
 0x1d4   : > { %v3141_v17 = vadd.f32 %v3140_v26, %v3139_v11  ;;  %v3178_v6 = vrot.slane %v3177_v16, 4 }
 0x1d6   : > { %v3142_v19 = vrot.slane %v3141_v17, 2  ;;  %v3179_v59 = vadd.f32 %v3178_v6, %v3177_v16 }
 0x1d8   : > { %v3143_v13 = vadd.f32 %v3142_v19, %v3141_v17  ;;  %v3180_v7 = vrot.slane %v3179_v59, 2 }
 0x1da   : > { %v3144_v24 = vrot.slane %v3143_v13, 1  ;;  %v3181_v34 = vadd.f32 %v3180_v7, %v3179_v59 }
 0x1dc   : > { %v3145_v56 = vadd.f32 %v3144_v24, %v3143_v13  ;;  %v3182_v2 = vrot.slane %v3181_v34, 1 }
 0x1de   : > { %3146 = vst [vmem:[%s248_s16] sm:$0x1] %v3145_v56  ;;  %v3183_v25 = vadd.f32 %v3182_v2, %v3181_v34 }
 0x1e0   : > { %3184 = vst [vmem:[%s255_s28] sm:$0x1] %v3183_v25 }
 0x1e1 PF: > { %s15_s19 = sadd.s32 1, %s4229_s19   ;;  %s5122_s15 = smov %s4221_s17 }
 0x1e2   : > { %p12_p8 = scmp.ge.s32.totalorder %s15_s19, 6   ;;  %s5123_s16 = smov %s4225_s18 }
 0x1e3   : > { %s5124_s17 = smov %s5127_s20  ;;  %s5125_s18 = smov %s5131_s21 }
 0x1e4   :  { %14 = sbr.rel (!%p12_p8) target bundleno = 3 (0x3), region = 93 }

</bundles_post_ra>
